<compile_context>
chip_gen: v7x
topology: tpu7x:2x2x1
jax: 0.10.0
libtpu: 0.0.40
codegen_flags: <defaults>
</compile_context>

<pallas_src>
import math

import numpy as np
import jax
import jax.numpy as jnp
from jax import lax
from jax.experimental import pallas as pl
from jax.experimental.pallas import tpu as pltpu


# Row order of the stacked per-branch bias tensor (8, K, 1).
_B_C4, _B_M4, _B_U3, _B_C3, _B_U2, _B_C2, _B_U1, _B_C1 = range(8)


# ----------------------------------------------------------------------------
# Pallas kernel: whole top-down path, both images, one grid step
# ----------------------------------------------------------------------------
def _top_down_kernel(c4_ref, mem_ref, c3_ref, c2_ref, c1_ref,
                     wc4_ref, wm4_ref, wu3_ref, wc3_ref,
                     wu2_ref, wc2_ref, wu1_ref, wc1_ref,
                     bias_ref, u43_ref, u32_ref, u21_ref, o_ref):
    bf16 = jnp.bfloat16

    def cbr(w_ref, b_idx, x):
        # relu(bn(conv1x1(x))) with BN (eval mode) folded into w; bias stays f32.
        y = jnp.dot(w_ref[...], x, preferred_element_type=jnp.float32)
        return jnp.maximum(y + bias_ref[b_idx], 0.0)

    # p4 = c4_conv(c4) + m4_conv(memory)                       (K, N*P4) f32
    p4 = cbr(wc4_ref, _B_C4, c4_ref[...]) + cbr(wm4_ref, _B_M4, mem_ref[...])

    # p3 = up_conv3(upsample(p4)) + c3_conv(c3)
    u3 = jnp.dot(p4.astype(bf16), u43_ref[...], preferred_element_type=jnp.float32)
    p3 = cbr(wu3_ref, _B_U3, u3.astype(bf16)) + cbr(wc3_ref, _B_C3, c3_ref[...])

    # p2 = up_conv2(upsample(p3)) + c2_conv(c2)
    u2 = jnp.dot(p3.astype(bf16), u32_ref[...], preferred_element_type=jnp.float32)
    p2 = cbr(wu2_ref, _B_U2, u2.astype(bf16)) + cbr(wc2_ref, _B_C2, c2_ref[...])

    # p1 = up_conv1(upsample(p2)) + c1_conv(c1)
    # Level 2->1 upsample is applied per image: slice/concat boundaries are
    # multiples of 128 lanes (256 / 1024), so these are clean vreg-tile views.
    p2b = p2.astype(bf16)
    pix2, pix1 = u21_ref.shape
    n_img = o_ref.shape[1] // pix1
    parts = [jnp.dot(p2b[:, n * pix2:(n + 1) * pix2], u21_ref[...],
                     preferred_element_type=jnp.float32).astype(bf16)
             for n in range(n_img)]
    u1 = parts[0] if n_img == 1 else jnp.concatenate(parts, axis=1)
    p1 = cbr(wu1_ref, _B_U1, u1) + cbr(wc1_ref, _B_C1, c1_ref[...])

    o_ref[...] = p1.astype(o_ref.dtype)


def _full_spec(arr):
    nd = arr.ndim
    return pl.BlockSpec(arr.shape, lambda i, _nd=nd: (0,) * _nd)


# ----------------------------------------------------------------------------
# Fixed 2x bilinear (align_corners=False) upsample as a dense right-multiply
# ----------------------------------------------------------------------------
def _upsample1d_matrix(S):
    """(S, 2S) right-multiply stencil of torch 2x bilinear, align_corners=False."""
    m = np.zeros((S, 2 * S), np.float32)
    for k in range(S):
        m[max(k - 1, 0), 2 * k] += 0.25      # out 2k   <- src k - 0.25
        m[k, 2 * k] += 0.75
        m[k, 2 * k + 1] += 0.75              # out 2k+1 <- src k + 0.25
        m[min(k + 1, S - 1), 2 * k + 1] += 0.25
    return m


def _upsample2d_matrix(H, W):
    # (H*W, 4*H*W), row-major pixel flattening both sides (separable kron).
    return np.kron(_upsample1d_matrix(H), _upsample1d_matrix(W))


# ----------------------------------------------------------------------------
# Wrapper
# ----------------------------------------------------------------------------
@jax.jit
def top_down_forward(params, x, memory):
    """x = (c1, c2, c3, c4) NCHW feature maps; memory: NCHW.  Returns p1 NCHW."""
    c1, c2, c3, c4 = x
    N, _, H1, W1 = c1.shape
    H2, W2 = c2.shape[2], c2.shape[3]
    H3, W3 = c3.shape[2], c3.shape[3]
    H4, W4 = c4.shape[2], c4.shape[3]
    K = params["bias"].shape[1]
    P1, P2, P3, P4 = H1 * W1, H2 * W2, H3 * W3, H4 * W4

    # NCHW -> (C, N*H*W) bf16: channels on sublanes, batch-major pixels on lanes.
    def flat(t):
        n, c, h, w = t.shape
        return jnp.transpose(t, (1, 0, 2, 3)).reshape(c, n * h * w).astype(jnp.bfloat16)

    c4f, memf, c3f, c2f, c1f = flat(c4), flat(memory), flat(c3), flat(c2), flat(c1)

    # Fixed bilinear upsample matrices; entries are k/16 so exact in bf16.
    # 4->3 and 3->2 are block-diagonal over the batch (tiny); 2->1 is per-image.
    eye = np.eye(N, dtype=np.float32)
    u43 = jnp.asarray(np.kron(eye, _upsample2d_matrix(H4, W4)), jnp.bfloat16)
    u32 = jnp.asarray(np.kron(eye, _upsample2d_matrix(H3, W3)), jnp.bfloat16)
    u21 = jnp.asarray(_upsample2d_matrix(H2, W2), jnp.bfloat16)

    operands = (c4f, memf, c3f, c2f, c1f,
                params["w_c4"], params["w_m4"], params["w_u3"], params["w_c3"],
                params["w_u2"], params["w_c2"], params["w_u1"], params["w_c1"],
                params["bias"], u43, u32, u21)

    # Advisory cost hint so XLA can schedule neighbouring ops around this call.
    C1c, C2c, C3c, C4c, Mc = (c1.shape[1], c2.shape[1], c3.shape[1],
                              c4.shape[1], memory.shape[1])
    flops = 2 * K * ((C4c + Mc) * N * P4
                     + (N * P4) * (N * P3) + (K + C3c) * N * P3
                     + (N * P3) * (N * P2) + (K + C2c) * N * P2
                     + N * P2 * P1 + (K + C1c) * N * P1)
    bytes_accessed = sum(a.size * a.dtype.itemsize for a in operands) + K * N * P1 * 4
    cost = pl.CostEstimate(flops=int(flops), transcendentals=0,
                           bytes_accessed=int(bytes_accessed))

    out = pl.pallas_call(
        _top_down_kernel,
        out_shape=jax.ShapeDtypeStruct((K, N * P1), jnp.float32),
        grid=(1,),
        in_specs=[_full_spec(a) for a in operands],
        out_specs=pl.BlockSpec((K, N * P1), lambda i: (0, 0)),
        compiler_params=pltpu.CompilerParams(dimension_semantics=("arbitrary",)),
        cost_estimate=cost,
    )(*operands)

    # (K, N*P1) -> NCHW
    return jnp.transpose(out.reshape(K, N, H1, W1), (1, 0, 2, 3))


# ----------------------------------------------------------------------------
# Parameter construction (deterministic, synthetic) with BN folded into weights
# ----------------------------------------------------------------------------
def make_branch(key, cin, cout, eps=1e-5):
    # TODO(synk): BatchNorm is folded with running stats (eval mode only);
    # training-mode batch statistics are not reproduced.
    k1, k2, k3, k4, k5 = jax.random.split(key, 5)
    w = jax.random.normal(k1, (cout, cin), jnp.float32) * (1.0 / math.sqrt(cin))
    gamma = jax.random.uniform(k2, (cout,), jnp.float32, 0.5, 1.5)
    beta = 0.1 * jax.random.normal(k3, (cout,), jnp.float32)
    running_mean = 0.1 * jax.random.normal(k4, (cout,), jnp.float32)
    running_var = jax.random.uniform(k5, (cout,), jnp.float32, 0.5, 1.5)
    scale = gamma / jnp.sqrt(running_var + eps)
    w_folded = w * scale[:, None]                 # fold BN scale into conv weight
    b = beta - running_mean * scale               # remaining per-channel bias
    return w_folded, b


def build_params(key, in_channels, channel, m_dim):
    keys = jax.random.split(key, 8)
    raw = dict(
        c4=make_branch(keys[0], in_channels[3], channel),
        m4=make_branch(keys[1], m_dim, channel),
        u3=make_branch(keys[2], channel, channel),   # up_conv3
        c3=make_branch(keys[3], in_channels[2], channel),
        u2=make_branch(keys[4], channel, channel),   # up_conv2
        c2=make_branch(keys[5], in_channels[1], channel),
        u1=make_branch(keys[6], channel, channel),   # up_conv1
        c1=make_branch(keys[7], in_channels[0], channel),
    )
    order = ("c4", "m4", "u3", "c3", "u2", "c2", "u1", "c1")   # == _B_* order
    params = {"w_" + n: raw[n][0].astype(jnp.bfloat16) for n in order}
    params["bias"] = jnp.stack([raw[n][1] for n in order]).reshape(
        len(order), channel, 1)
    return params, raw


# ----------------------------------------------------------------------------
# Pure-JAX f32 reference (independent upsample implementation) for validation
# ----------------------------------------------------------------------------
def _cbr_ref(wb, x):
    w, b = wb
    y = jnp.einsum("kc,nchw->nkhw", w, x, precision=lax.Precision.HIGHEST)
    return jnp.maximum(y + b[None, :, None, None], 0.0)


def _upsample2x_ref(x):  # NCHW, torch align_corners=False semantics
    def up(a, axis):
        S = a.shape[axis]
        prev = jnp.concatenate([lax.slice_in_dim(a, 0, 1, axis=axis),
                                lax.slice_in_dim(a, 0, S - 1, axis=axis)], axis=axis)
        nxt = jnp.concatenate([lax.slice_in_dim(a, 1, S, axis=axis),
                               lax.slice_in_dim(a, S - 1, S, axis=axis)], axis=axis)
        even = 0.25 * prev + 0.75 * a
        odd = 0.75 * a + 0.25 * nxt
        out = jnp.stack([even, odd], axis=axis + 1)
        shp = list(a.shape)
        shp[axis] = 2 * S
        return out.reshape(shp)
    return up(up(x, 2), 3)


def top_down_reference(raw, x, memory):
    c1, c2, c3, c4 = x
    p4 = _cbr_ref(raw["c4"], c4) + _cbr_ref(raw["m4"], memory)
    p3 = _cbr_ref(raw["u3"], _upsample2x_ref(p4)) + _cbr_ref(raw["c3"], c3)
    p2 = _cbr_ref(raw["u2"], _upsample2x_ref(p3)) + _cbr_ref(raw["c2"], c2)
    p1 = _cbr_ref(raw["u1"], _upsample2x_ref(p2)) + _cbr_ref(raw["c1"], c1)
    return p1


# ----------------------------------------------------------------------------
# Demo
# ----------------------------------------------------------------------------
if __name__ == "__main__":
    key = jax.random.PRNGKey(0)
    keys = jax.random.split(key, 6)

    N = 2
    channel = 32                      # top_down `channel`
    m_dim = 64                        # transformer memory dim
    in_channels = [8, 16, 24, 32]     # c1..c4 channel counts

    # NCHW inputs, same convention as the PyTorch module.
    c1 = jax.random.normal(keys[0], (N, in_channels[0], 32, 32), jnp.float32)
    c2 = jax.random.normal(keys[1], (N, in_channels[1], 16, 16), jnp.float32)
    c3 = jax.random.normal(keys[2], (N, in_channels[2], 8, 8), jnp.float32)
    c4 = jax.random.normal(keys[3], (N, in_channels[3], 4, 4), jnp.float32)
    memory = jax.random.normal(keys[4], (N, m_dim, 4, 4), jnp.float32)

    params, raw = build_params(keys[5], in_channels, channel, m_dim)

    p1 = top_down_forward(params, (c1, c2, c3, c4), memory)
    p1 = jax.block_until_ready(p1)

    assert p1.shape == (N, channel, 32, 32), p1.shape
    assert p1.dtype == jnp.float32
    assert bool(jnp.all(jnp.isfinite(p1)))

    ref = top_down_reference(raw, (c1, c2, c3, c4), memory)
    err = float(jnp.max(jnp.abs(p1 - ref)))
    scale = float(jnp.max(jnp.abs(ref))) + 1e-6
    # bf16 matmul operands with f32 accumulation: expected relative error ~1e-3.
    assert err / scale < 2e-2, (err, scale)

    print("KERNEL_OK")
</pallas_src>

<mosaic_0001>
module attributes {stable_mosaic.version = 11 : i64} {
  func.func @_top_down_kernel(%arg0: i32, %arg1: memref<32x32xbf16, #tpu.memory_space<vmem>>, %arg2: memref<64x32xbf16, #tpu.memory_space<vmem>>, %arg3: memref<24x128xbf16, #tpu.memory_space<vmem>>, %arg4: memref<16x512xbf16, #tpu.memory_space<vmem>>, %arg5: memref<8x2048xbf16, #tpu.memory_space<vmem>>, %arg6: memref<32x32xbf16, #tpu.memory_space<vmem>>, %arg7: memref<32x64xbf16, #tpu.memory_space<vmem>>, %arg8: memref<32x32xbf16, #tpu.memory_space<vmem>>, %arg9: memref<32x24xbf16, #tpu.memory_space<vmem>>, %arg10: memref<32x32xbf16, #tpu.memory_space<vmem>>, %arg11: memref<32x16xbf16, #tpu.memory_space<vmem>>, %arg12: memref<32x32xbf16, #tpu.memory_space<vmem>>, %arg13: memref<32x8xbf16, #tpu.memory_space<vmem>>, %arg14: memref<8x32x1xf32, #tpu.memory_space<vmem>>, %arg15: memref<32x128xbf16, #tpu.memory_space<vmem>>, %arg16: memref<128x512xbf16, #tpu.memory_space<vmem>>, %arg17: memref<256x1024xbf16, #tpu.memory_space<vmem>>, %arg18: memref<32x2048xf32, #tpu.memory_space<vmem>>) attributes {dimension_semantics = [#tpu.dimension_semantics<arbitrary>], iteration_bounds = array<i64: 1>, scalar_prefetch = 0 : i64, scratch_operands = 0 : i64, tpu.core_type = #tpu.core_type<tc>, window_params = [{pipeline_mode = #tpu.pipeline_mode<synchronous>, transform_indices = @transform_0, window_bounds = array<i64: 32, 32>}, {pipeline_mode = #tpu.pipeline_mode<synchronous>, transform_indices = @transform_1, window_bounds = array<i64: 64, 32>}, {pipeline_mode = #tpu.pipeline_mode<synchronous>, transform_indices = @transform_2, window_bounds = array<i64: 24, 128>}, {pipeline_mode = #tpu.pipeline_mode<synchronous>, transform_indices = @transform_3, window_bounds = array<i64: 16, 512>}, {pipeline_mode = #tpu.pipeline_mode<synchronous>, transform_indices = @transform_4, window_bounds = array<i64: 8, 2048>}, {pipeline_mode = #tpu.pipeline_mode<synchronous>, transform_indices = @transform_5, window_bounds = array<i64: 32, 32>}, {pipeline_mode = #tpu.pipeline_mode<synchronous>, transform_indices = @transform_6, window_bounds = array<i64: 32, 64>}, {pipeline_mode = #tpu.pipeline_mode<synchronous>, transform_indices = @transform_7, window_bounds = array<i64: 32, 32>}, {pipeline_mode = #tpu.pipeline_mode<synchronous>, transform_indices = @transform_8, window_bounds = array<i64: 32, 24>}, {pipeline_mode = #tpu.pipeline_mode<synchronous>, transform_indices = @transform_9, window_bounds = array<i64: 32, 32>}, {pipeline_mode = #tpu.pipeline_mode<synchronous>, transform_indices = @transform_10, window_bounds = array<i64: 32, 16>}, {pipeline_mode = #tpu.pipeline_mode<synchronous>, transform_indices = @transform_11, window_bounds = array<i64: 32, 32>}, {pipeline_mode = #tpu.pipeline_mode<synchronous>, transform_indices = @transform_12, window_bounds = array<i64: 32, 8>}, {pipeline_mode = #tpu.pipeline_mode<synchronous>, transform_indices = @transform_13, window_bounds = array<i64: 8, 32, 1>}, {pipeline_mode = #tpu.pipeline_mode<synchronous>, transform_indices = @transform_14, window_bounds = array<i64: 32, 128>}, {pipeline_mode = #tpu.pipeline_mode<synchronous>, transform_indices = @transform_15, window_bounds = array<i64: 128, 512>}, {pipeline_mode = #tpu.pipeline_mode<synchronous>, transform_indices = @transform_16, window_bounds = array<i64: 256, 1024>}, {pipeline_mode = #tpu.pipeline_mode<synchronous>, transform_indices = @transform_17, window_bounds = array<i64: 32, 2048>}]} {
    %c0 = arith.constant 0 : index
    %c0_0 = arith.constant 0 : index
    %0 = vector.load %arg1[%c0, %c0_0] : memref<32x32xbf16, #tpu.memory_space<vmem>>, vector<32x32xbf16>
    %c0_1 = arith.constant 0 : index
    %c0_2 = arith.constant 0 : index
    %1 = vector.load %arg6[%c0_1, %c0_2] : memref<32x32xbf16, #tpu.memory_space<vmem>>, vector<32x32xbf16>
    %cst = arith.constant dense<0.000000e+00> : vector<32x32xf32>
    %2 = tpu.matmul %1, %0, %cst {dimension_numbers = #tpu.dot_dimension_numbers<[1], [0], [0], [1], [0, 0, 1, 1], [], []>} : vector<32x32xbf16>, vector<32x32xbf16>, vector<32x32xf32> -> vector<32x32xf32>
    %c0_3 = arith.constant 0 : index
    %c0_4 = arith.constant 0 : index
    %c0_5 = arith.constant 0 : index
    %3 = vector.load %arg14[%c0_3, %c0_4, %c0_5] : memref<8x32x1xf32, #tpu.memory_space<vmem>>, vector<1x32x1xf32>
    %4 = vector.shape_cast %3 : vector<1x32x1xf32> to vector<32x1xf32>
    %5 = vector.broadcast %4 : vector<32x1xf32> to vector<32x32xf32>
    %6 = arith.addf %2, %5 : vector<32x32xf32>
    %cst_6 = arith.constant 0.000000e+00 : f32
    %7 = vector.broadcast %cst_6 : f32 to vector<32x32xf32>
    %8 = arith.maximumf %6, %7 : vector<32x32xf32>
    %c0_7 = arith.constant 0 : index
    %c0_8 = arith.constant 0 : index
    %9 = vector.load %arg2[%c0_7, %c0_8] : memref<64x32xbf16, #tpu.memory_space<vmem>>, vector<64x32xbf16>
    %c0_9 = arith.constant 0 : index
    %c0_10 = arith.constant 0 : index
    %10 = vector.load %arg7[%c0_9, %c0_10] : memref<32x64xbf16, #tpu.memory_space<vmem>>, vector<32x64xbf16>
    %cst_11 = arith.constant dense<0.000000e+00> : vector<32x32xf32>
    %11 = tpu.matmul %10, %9, %cst_11 {dimension_numbers = #tpu.dot_dimension_numbers<[1], [0], [0], [1], [0, 0, 1, 1], [], []>} : vector<32x64xbf16>, vector<64x32xbf16>, vector<32x32xf32> -> vector<32x32xf32>
    %c1 = arith.constant 1 : index
    %c0_12 = arith.constant 0 : index
    %c0_13 = arith.constant 0 : index
    %12 = vector.load %arg14[%c1, %c0_12, %c0_13] : memref<8x32x1xf32, #tpu.memory_space<vmem>>, vector<1x32x1xf32>
    %13 = vector.shape_cast %12 : vector<1x32x1xf32> to vector<32x1xf32>
    %14 = vector.broadcast %13 : vector<32x1xf32> to vector<32x32xf32>
    %15 = arith.addf %11, %14 : vector<32x32xf32>
    %cst_14 = arith.constant 0.000000e+00 : f32
    %16 = vector.broadcast %cst_14 : f32 to vector<32x32xf32>
    %17 = arith.maximumf %15, %16 : vector<32x32xf32>
    %18 = arith.addf %8, %17 : vector<32x32xf32>
    %19 = arith.truncf %18 : vector<32x32xf32> to vector<32x32xbf16>
    %c0_15 = arith.constant 0 : index
    %c0_16 = arith.constant 0 : index
    %20 = vector.load %arg15[%c0_15, %c0_16] : memref<32x128xbf16, #tpu.memory_space<vmem>>, vector<32x128xbf16>
    %cst_17 = arith.constant dense<0.000000e+00> : vector<32x128xf32>
    %21 = tpu.matmul %19, %20, %cst_17 {dimension_numbers = #tpu.dot_dimension_numbers<[1], [0], [0], [1], [0, 0, 1, 1], [], []>} : vector<32x32xbf16>, vector<32x128xbf16>, vector<32x128xf32> -> vector<32x128xf32>
    %22 = arith.truncf %21 : vector<32x128xf32> to vector<32x128xbf16>
    %c0_18 = arith.constant 0 : index
    %c0_19 = arith.constant 0 : index
    %23 = vector.load %arg8[%c0_18, %c0_19] : memref<32x32xbf16, #tpu.memory_space<vmem>>, vector<32x32xbf16>
    %cst_20 = arith.constant dense<0.000000e+00> : vector<32x128xf32>
    %24 = tpu.matmul %23, %22, %cst_20 {dimension_numbers = #tpu.dot_dimension_numbers<[1], [0], [0], [1], [0, 0, 1, 1], [], []>} : vector<32x32xbf16>, vector<32x128xbf16>, vector<32x128xf32> -> vector<32x128xf32>
    %c2 = arith.constant 2 : index
    %c0_21 = arith.constant 0 : index
    %c0_22 = arith.constant 0 : index
    %25 = vector.load %arg14[%c2, %c0_21, %c0_22] : memref<8x32x1xf32, #tpu.memory_space<vmem>>, vector<1x32x1xf32>
    %26 = vector.shape_cast %25 : vector<1x32x1xf32> to vector<32x1xf32>
    %27 = vector.broadcast %26 : vector<32x1xf32> to vector<32x128xf32>
    %28 = arith.addf %24, %27 : vector<32x128xf32>
    %cst_23 = arith.constant 0.000000e+00 : f32
    %29 = vector.broadcast %cst_23 : f32 to vector<32x128xf32>
    %30 = arith.maximumf %28, %29 : vector<32x128xf32>
    %c0_24 = arith.constant 0 : index
    %c0_25 = arith.constant 0 : index
    %31 = vector.load %arg3[%c0_24, %c0_25] : memref<24x128xbf16, #tpu.memory_space<vmem>>, vector<24x128xbf16>
    %c0_26 = arith.constant 0 : index
    %c0_27 = arith.constant 0 : index
    %32 = vector.load %arg9[%c0_26, %c0_27] : memref<32x24xbf16, #tpu.memory_space<vmem>>, vector<32x24xbf16>
    %cst_28 = arith.constant dense<0.000000e+00> : vector<32x128xf32>
    %33 = tpu.matmul %32, %31, %cst_28 {dimension_numbers = #tpu.dot_dimension_numbers<[1], [0], [0], [1], [0, 0, 1, 1], [], []>} : vector<32x24xbf16>, vector<24x128xbf16>, vector<32x128xf32> -> vector<32x128xf32>
    %c3 = arith.constant 3 : index
    %c0_29 = arith.constant 0 : index
    %c0_30 = arith.constant 0 : index
    %34 = vector.load %arg14[%c3, %c0_29, %c0_30] : memref<8x32x1xf32, #tpu.memory_space<vmem>>, vector<1x32x1xf32>
    %35 = vector.shape_cast %34 : vector<1x32x1xf32> to vector<32x1xf32>
    %36 = vector.broadcast %35 : vector<32x1xf32> to vector<32x128xf32>
    %37 = arith.addf %33, %36 : vector<32x128xf32>
    %cst_31 = arith.constant 0.000000e+00 : f32
    %38 = vector.broadcast %cst_31 : f32 to vector<32x128xf32>
    %39 = arith.maximumf %37, %38 : vector<32x128xf32>
    %40 = arith.addf %30, %39 : vector<32x128xf32>
    %41 = arith.truncf %40 : vector<32x128xf32> to vector<32x128xbf16>
    %c0_32 = arith.constant 0 : index
    %c0_33 = arith.constant 0 : index
    %42 = vector.load %arg16[%c0_32, %c0_33] : memref<128x512xbf16, #tpu.memory_space<vmem>>, vector<128x512xbf16>
    %cst_34 = arith.constant dense<0.000000e+00> : vector<32x512xf32>
    %43 = tpu.matmul %41, %42, %cst_34 {dimension_numbers = #tpu.dot_dimension_numbers<[1], [0], [0], [1], [0, 0, 1, 1], [], []>} : vector<32x128xbf16>, vector<128x512xbf16>, vector<32x512xf32> -> vector<32x512xf32>
    %44 = arith.truncf %43 : vector<32x512xf32> to vector<32x512xbf16>
    %c0_35 = arith.constant 0 : index
    %c0_36 = arith.constant 0 : index
    %45 = vector.load %arg10[%c0_35, %c0_36] : memref<32x32xbf16, #tpu.memory_space<vmem>>, vector<32x32xbf16>
    %cst_37 = arith.constant dense<0.000000e+00> : vector<32x512xf32>
    %46 = tpu.matmul %45, %44, %cst_37 {dimension_numbers = #tpu.dot_dimension_numbers<[1], [0], [0], [1], [0, 0, 1, 1], [], []>} : vector<32x32xbf16>, vector<32x512xbf16>, vector<32x512xf32> -> vector<32x512xf32>
    %c4 = arith.constant 4 : index
    %c0_38 = arith.constant 0 : index
    %c0_39 = arith.constant 0 : index
    %47 = vector.load %arg14[%c4, %c0_38, %c0_39] : memref<8x32x1xf32, #tpu.memory_space<vmem>>, vector<1x32x1xf32>
    %48 = vector.shape_cast %47 : vector<1x32x1xf32> to vector<32x1xf32>
    %49 = vector.broadcast %48 : vector<32x1xf32> to vector<32x512xf32>
    %50 = arith.addf %46, %49 : vector<32x512xf32>
    %cst_40 = arith.constant 0.000000e+00 : f32
    %51 = vector.broadcast %cst_40 : f32 to vector<32x512xf32>
    %52 = arith.maximumf %50, %51 : vector<32x512xf32>
    %c0_41 = arith.constant 0 : index
    %c0_42 = arith.constant 0 : index
    %53 = vector.load %arg4[%c0_41, %c0_42] : memref<16x512xbf16, #tpu.memory_space<vmem>>, vector<16x512xbf16>
    %c0_43 = arith.constant 0 : index
    %c0_44 = arith.constant 0 : index
    %54 = vector.load %arg11[%c0_43, %c0_44] : memref<32x16xbf16, #tpu.memory_space<vmem>>, vector<32x16xbf16>
    %cst_45 = arith.constant dense<0.000000e+00> : vector<32x512xf32>
    %55 = tpu.matmul %54, %53, %cst_45 {dimension_numbers = #tpu.dot_dimension_numbers<[1], [0], [0], [1], [0, 0, 1, 1], [], []>} : vector<32x16xbf16>, vector<16x512xbf16>, vector<32x512xf32> -> vector<32x512xf32>
    %c5 = arith.constant 5 : index
    %c0_46 = arith.constant 0 : index
    %c0_47 = arith.constant 0 : index
    %56 = vector.load %arg14[%c5, %c0_46, %c0_47] : memref<8x32x1xf32, #tpu.memory_space<vmem>>, vector<1x32x1xf32>
    %57 = vector.shape_cast %56 : vector<1x32x1xf32> to vector<32x1xf32>
    %58 = vector.broadcast %57 : vector<32x1xf32> to vector<32x512xf32>
    %59 = arith.addf %55, %58 : vector<32x512xf32>
    %cst_48 = arith.constant 0.000000e+00 : f32
    %60 = vector.broadcast %cst_48 : f32 to vector<32x512xf32>
    %61 = arith.maximumf %59, %60 : vector<32x512xf32>
    %62 = arith.addf %52, %61 : vector<32x512xf32>
    %63 = arith.truncf %62 : vector<32x512xf32> to vector<32x512xbf16>
    %64 = vector.extract_strided_slice %63 {offsets = [0, 0], sizes = [32, 256], strides = [1, 1]} : vector<32x512xbf16> to vector<32x256xbf16>
    %c0_49 = arith.constant 0 : index
    %c0_50 = arith.constant 0 : index
    %65 = vector.load %arg17[%c0_49, %c0_50] : memref<256x1024xbf16, #tpu.memory_space<vmem>>, vector<256x1024xbf16>
    %cst_51 = arith.constant dense<0.000000e+00> : vector<32x1024xf32>
    %66 = tpu.matmul %64, %65, %cst_51 {dimension_numbers = #tpu.dot_dimension_numbers<[1], [0], [0], [1], [0, 0, 1, 1], [], []>} : vector<32x256xbf16>, vector<256x1024xbf16>, vector<32x1024xf32> -> vector<32x1024xf32>
    %67 = arith.truncf %66 : vector<32x1024xf32> to vector<32x1024xbf16>
    %68 = vector.extract_strided_slice %63 {offsets = [0, 256], sizes = [32, 256], strides = [1, 1]} : vector<32x512xbf16> to vector<32x256xbf16>
    %c0_52 = arith.constant 0 : index
    %c0_53 = arith.constant 0 : index
    %69 = vector.load %arg17[%c0_52, %c0_53] : memref<256x1024xbf16, #tpu.memory_space<vmem>>, vector<256x1024xbf16>
    %cst_54 = arith.constant dense<0.000000e+00> : vector<32x1024xf32>
    %70 = tpu.matmul %68, %69, %cst_54 {dimension_numbers = #tpu.dot_dimension_numbers<[1], [0], [0], [1], [0, 0, 1, 1], [], []>} : vector<32x256xbf16>, vector<256x1024xbf16>, vector<32x1024xf32> -> vector<32x1024xf32>
    %71 = arith.truncf %70 : vector<32x1024xf32> to vector<32x1024xbf16>
    %72 = tpu.concatenate %67, %71 in 1 : vector<32x1024xbf16>, vector<32x1024xbf16> -> vector<32x2048xbf16>
    %c0_55 = arith.constant 0 : index
    %c0_56 = arith.constant 0 : index
    %73 = vector.load %arg12[%c0_55, %c0_56] : memref<32x32xbf16, #tpu.memory_space<vmem>>, vector<32x32xbf16>
    %cst_57 = arith.constant dense<0.000000e+00> : vector<32x2048xf32>
    %74 = tpu.matmul %73, %72, %cst_57 {dimension_numbers = #tpu.dot_dimension_numbers<[1], [0], [0], [1], [0, 0, 1, 1], [], []>} : vector<32x32xbf16>, vector<32x2048xbf16>, vector<32x2048xf32> -> vector<32x2048xf32>
    %c6 = arith.constant 6 : index
    %c0_58 = arith.constant 0 : index
    %c0_59 = arith.constant 0 : index
    %75 = vector.load %arg14[%c6, %c0_58, %c0_59] : memref<8x32x1xf32, #tpu.memory_space<vmem>>, vector<1x32x1xf32>
    %76 = vector.shape_cast %75 : vector<1x32x1xf32> to vector<32x1xf32>
    %77 = vector.broadcast %76 : vector<32x1xf32> to vector<32x2048xf32>
    %78 = arith.addf %74, %77 : vector<32x2048xf32>
    %cst_60 = arith.constant 0.000000e+00 : f32
    %79 = vector.broadcast %cst_60 : f32 to vector<32x2048xf32>
    %80 = arith.maximumf %78, %79 : vector<32x2048xf32>
    %c0_61 = arith.constant 0 : index
    %c0_62 = arith.constant 0 : index
    %81 = vector.load %arg5[%c0_61, %c0_62] : memref<8x2048xbf16, #tpu.memory_space<vmem>>, vector<8x2048xbf16>
    %c0_63 = arith.constant 0 : index
    %c0_64 = arith.constant 0 : index
    %82 = vector.load %arg13[%c0_63, %c0_64] : memref<32x8xbf16, #tpu.memory_space<vmem>>, vector<32x8xbf16>
    %cst_65 = arith.constant dense<0.000000e+00> : vector<32x2048xf32>
    %83 = tpu.matmul %82, %81, %cst_65 {dimension_numbers = #tpu.dot_dimension_numbers<[1], [0], [0], [1], [0, 0, 1, 1], [], []>} : vector<32x8xbf16>, vector<8x2048xbf16>, vector<32x2048xf32> -> vector<32x2048xf32>
    %c7 = arith.constant 7 : index
    %c0_66 = arith.constant 0 : index
    %c0_67 = arith.constant 0 : index
    %84 = vector.load %arg14[%c7, %c0_66, %c0_67] : memref<8x32x1xf32, #tpu.memory_space<vmem>>, vector<1x32x1xf32>
    %85 = vector.shape_cast %84 : vector<1x32x1xf32> to vector<32x1xf32>
    %86 = vector.broadcast %85 : vector<32x1xf32> to vector<32x2048xf32>
    %87 = arith.addf %83, %86 : vector<32x2048xf32>
    %cst_68 = arith.constant 0.000000e+00 : f32
    %88 = vector.broadcast %cst_68 : f32 to vector<32x2048xf32>
    %89 = arith.maximumf %87, %88 : vector<32x2048xf32>
    %90 = arith.addf %80, %89 : vector<32x2048xf32>
    %c0_69 = arith.constant 0 : index
    %c0_70 = arith.constant 0 : index
    %91 = vector.load %arg18[%c0_69, %c0_70] : memref<32x2048xf32, #tpu.memory_space<vmem>>, vector<32x2048xf32>
    tpu.vector_store %arg18[%c0_69, %c0_70], %90 {strides = array<i32>} : memref<32x2048xf32, #tpu.memory_space<vmem>>, vector<32x2048xf32>,
    return
  }
  func.func @transform_0(%arg0: i32) -> (i32, i32) {
    %c0_i32 = arith.constant 0 : i32
    %c0_i32_0 = arith.constant 0 : i32
    %c0_i32_1 = arith.constant 0 : i32
    return %c0_i32, %c0_i32_0 : i32, i32
  }
  func.func @transform_1(%arg0: i32) -> (i32, i32) {
    %c0_i32 = arith.constant 0 : i32
    %c0_i32_0 = arith.constant 0 : i32
    %c0_i32_1 = arith.constant 0 : i32
    return %c0_i32, %c0_i32_0 : i32, i32
  }
  func.func @transform_2(%arg0: i32) -> (i32, i32) {
    %c0_i32 = arith.constant 0 : i32
    %c0_i32_0 = arith.constant 0 : i32
    %c0_i32_1 = arith.constant 0 : i32
    return %c0_i32, %c0_i32_0 : i32, i32
  }
  func.func @transform_3(%arg0: i32) -> (i32, i32) {
    %c0_i32 = arith.constant 0 : i32
    %c0_i32_0 = arith.constant 0 : i32
    %c0_i32_1 = arith.constant 0 : i32
    return %c0_i32, %c0_i32_0 : i32, i32
  }
  func.func @transform_4(%arg0: i32) -> (i32, i32) {
    %c0_i32 = arith.constant 0 : i32
    %c0_i32_0 = arith.constant 0 : i32
    %c0_i32_1 = arith.constant 0 : i32
    return %c0_i32, %c0_i32_0 : i32, i32
  }
  func.func @transform_5(%arg0: i32) -> (i32, i32) {
    %c0_i32 = arith.constant 0 : i32
    %c0_i32_0 = arith.constant 0 : i32
    %c0_i32_1 = arith.constant 0 : i32
    return %c0_i32, %c0_i32_0 : i32, i32
  }
  func.func @transform_6(%arg0: i32) -> (i32, i32) {
    %c0_i32 = arith.constant 0 : i32
    %c0_i32_0 = arith.constant 0 : i32
    %c0_i32_1 = arith.constant 0 : i32
    return %c0_i32, %c0_i32_0 : i32, i32
  }
  func.func @transform_7(%arg0: i32) -> (i32, i32) {
    %c0_i32 = arith.constant 0 : i32
    %c0_i32_0 = arith.constant 0 : i32
    %c0_i32_1 = arith.constant 0 : i32
    return %c0_i32, %c0_i32_0 : i32, i32
  }
  func.func @transform_8(%arg0: i32) -> (i32, i32) {
    %c0_i32 = arith.constant 0 : i32
    %c0_i32_0 = arith.constant 0 : i32
    %c0_i32_1 = arith.constant 0 : i32
    return %c0_i32, %c0_i32_0 : i32, i32
  }
  func.func @transform_9(%arg0: i32) -> (i32, i32) {
    %c0_i32 = arith.constant 0 : i32
    %c0_i32_0 = arith.constant 0 : i32
    %c0_i32_1 = arith.constant 0 : i32
    return %c0_i32, %c0_i32_0 : i32, i32
  }
  func.func @transform_10(%arg0: i32) -> (i32, i32) {
    %c0_i32 = arith.constant 0 : i32
    %c0_i32_0 = arith.constant 0 : i32
    %c0_i32_1 = arith.constant 0 : i32
    return %c0_i32, %c0_i32_0 : i32, i32
  }
  func.func @transform_11(%arg0: i32) -> (i32, i32) {
    %c0_i32 = arith.constant 0 : i32
    %c0_i32_0 = arith.constant 0 : i32
    %c0_i32_1 = arith.constant 0 : i32
    return %c0_i32, %c0_i32_0 : i32, i32
  }
  func.func @transform_12(%arg0: i32) -> (i32, i32) {
    %c0_i32 = arith.constant 0 : i32
    %c0_i32_0 = arith.constant 0 : i32
    %c0_i32_1 = arith.constant 0 : i32
    return %c0_i32, %c0_i32_0 : i32, i32
  }
  func.func @transform_13(%arg0: i32) -> (i32, i32, i32) {
    %c0_i32 = arith.constant 0 : i32
    %c0_i32_0 = arith.constant 0 : i32
    %c0_i32_1 = arith.constant 0 : i32
    %c0_i32_2 = arith.constant 0 : i32
    return %c0_i32, %c0_i32_0, %c0_i32_1 : i32, i32, i32
  }
  func.func @transform_14(%arg0: i32) -> (i32, i32) {
    %c0_i32 = arith.constant 0 : i32
    %c0_i32_0 = arith.constant 0 : i32
    %c0_i32_1 = arith.constant 0 : i32
    return %c0_i32, %c0_i32_0 : i32, i32
  }
  func.func @transform_15(%arg0: i32) -> (i32, i32) {
    %c0_i32 = arith.constant 0 : i32
    %c0_i32_0 = arith.constant 0 : i32
    %c0_i32_1 = arith.constant 0 : i32
    return %c0_i32, %c0_i32_0 : i32, i32
  }
  func.func @transform_16(%arg0: i32) -> (i32, i32) {
    %c0_i32 = arith.constant 0 : i32
    %c0_i32_0 = arith.constant 0 : i32
    %c0_i32_1 = arith.constant 0 : i32
    return %c0_i32, %c0_i32_0 : i32, i32
  }
  func.func @transform_17(%arg0: i32) -> (i32, i32) {
    %c0_i32 = arith.constant 0 : i32
    %c0_i32_0 = arith.constant 0 : i32
    %c0_i32_1 = arith.constant 0 : i32
    return %c0_i32, %c0_i32_0 : i32, i32
  }
}

</mosaic_0001>

<bundles_post_ra>
// kernel: top_down_forward.1
= control target key start
LH: loop header
LB: loop body
LE: loop exit
PB: predicated region body
PF: predicated region fallthrough
CT: control target
= control target key end

     0   :  { %v6680_v2 = vmov 0   ;;  %vm111_vm0 = vcmask 261120   ;;  %vm242_vm1 = vcmask 523264   ;;  %vm530_vm2 = vcmask 195584   ;;  %s6659_s0 = inlined_call_operand.vmem [shape: bf16[32,32], index: 0, kind: input, shape index: {}]   ;;  %s6660_s1 = inlined_call_operand.vmem [shape: bf16[64,32], index: 1, kind: input, shape index: {}]   ;;  %s6661_s5 = inlined_call_operand.vmem [shape: bf16[32,32], index: 5, kind: input, shape index: {}]   ;;  %s6662_s6 = inlined_call_operand.vmem [shape: bf16[32,64], index: 6, kind: input, shape index: {}]   ;;  %s6663_s2 = inlined_call_operand.vmem [shape: bf16[24,128], index: 2, kind: input, shape index: {}]   ;;  %s6664_s8 = inlined_call_operand.vmem [shape: bf16[32,24], index: 8, kind: input, shape index: {}]   ;;  %s6665_s13 = inlined_call_operand.vmem [shape: f32[8,32,1], index: 13, kind: input, shape index: {}]   ;;  %s6666_s14 = inlined_call_operand.vmem [shape: bf16[32,128], index: 14, kind: input, shape index: {}]   ;;  %s6667_s7 = inlined_call_operand.vmem [shape: bf16[32,32], index: 7, kind: input, shape index: {}]   ;;  %s6668_s15 = inlined_call_operand.vmem [shape: bf16[128,512], index: 15, kind: input, shape index: {}]   ;;  %s6669_s9 = inlined_call_operand.vmem [shape: bf16[32,32], index: 9, kind: input, shape index: {}]   ;;  %s6670_s3 = inlined_call_operand.vmem [shape: bf16[16,512], index: 3, kind: input, shape index: {}]   ;;  %s6671_s10 = inlined_call_operand.vmem [shape: bf16[32,16], index: 10, kind: input, shape index: {}]   ;;  %s6672_s16 = inlined_call_operand.vmem [shape: bf16[256,1024], index: 16, kind: input, shape index: {}]   ;;  %s6673_s11 = inlined_call_operand.vmem [shape: bf16[32,32], index: 11, kind: input, shape index: {}]   ;;  %s6674_s12 = inlined_call_operand.vmem [shape: bf16[32,8], index: 12, kind: input, shape index: {}]   ;;  %s6675_s4 = inlined_call_operand.vmem [shape: bf16[8,2048], index: 4, kind: input, shape index: {}]   ;;  %s6676_s17 = inlined_call_operand.vmem [shape: f32[32,2048], index: 17, kind: output, shape index: {}]  }
   0x1   :  { %6776 = sst [smem:[#allocation81_spill]] %s6659_s0  ;;  %4169 = vset.pattern.permute.xlu1 %v6680_v2  ;;  %4168 = vset.pattern.permute.xlu0 %v6680_v2  ;;  %v4174_v5 = vld [vmem:[%s6661_s5] sm:$0xff]   ;;  %v4175_v6 = vld [vmem:[%s6661_s5 + $0x8] sm:$0xff]   ;;  %vm537_vm3 = vcmask 1043456   ;;  %v68_v18 = vld [vmem:[%s6665_s13 + $0x18] sm:$0xff]  ;;  %vm1136_vm4 = vcmask 130048  }
   0x2   :  { %6777 = sst [smem:[#allocation82_spill]] %s6660_s1  ;;  %s6779_s26 = sld [smem:[#allocation81_spill]]  ;;  %4126 = vmatprep.mubr.msk.bf16.mxu0 %vm111_vm0, %v4174_v5  ;;  %v4178_v8 = vld [vmem:[%s6662_s6] sm:$0xff]   ;;  %v4179_v13 = vld [vmem:[%s6662_s6 + $0x8] sm:$0xff]   ;;  %v67_v19 = vld [vmem:[%s6665_s13 + $0x10] sm:$0xff]  ;;  %vm3133_vm5 = vcmask 64512  }
   0x3   :  { %6778 = sst [smem:[#allocation83_spill]] %s6671_s10  ;;  %s6780_s10 = sld [smem:[#allocation82_spill]]  ;;  %4138 = vmatprep.mubr.msk.bf16.mxu1 %vm242_vm1, %v4178_v8  ;;  %v4180_v10 = vld [vmem:[%s6663_s2] sm:$0xff]   ;;  %v3815_v14 = vld [vmem:[%s6665_s13 + $0x28] sm:$0xff]  ;;  %v3817_v22 = vld [vmem:[%s6665_s13 + $0x38] sm:$0xff] }
   0x4   :  { %v3814_v11 = vld [vmem:[%s6665_s13 + $0x20] sm:$0xff]  ;;  %v66_v16 = vld [vmem:[%s6665_s13 + $0x8] sm:$0xff]  ;;  %v3816_v23 = vld [vmem:[%s6665_s13 + $0x30] sm:$0xff] }
   0x5   :  { %190 = vperm.xlu1 %4169, %v3814_v11   ;;  %v65_v12 = vld [vmem:[%s6665_s13] sm:$0xff]  ;;  %v4181_v17 = vld [vmem:[%s6663_s2 + $0x8] ss:$0 sps:$4 sm:$0xff]   ;;  %v3833_v28 = vld [vmem:[%s6665_s13 + $0x58] sm:$0xff] }
   0x6   :  { %71 = vperm.xlu0 %4168, %v65_v12   ;;  %v4182_v15 = vld [vmem:[%s6664_s8] sm:$0xff]   ;;  %v539_v20 = vsel %vm537_vm3, %v4181_v17, 0  ;;  %v4183_v21 = vld [vmem:[%s6664_s8 + $0x8] sm:$0xff]   ;;  %v3832_v29 = vld [vmem:[%s6665_s13 + $0x50] sm:$0xff] }
   0x7   :  { %v3831_v24 = vld [vmem:[%s6665_s13 + $0x48] sm:$0xff]  ;;  %v3830_v25 = vld [vmem:[%s6665_s13 + $0x40] sm:$0xff]  ;;  %v3841_v30 = vld [vmem:[%s6665_s13 + $0x78] sm:$0xff] }
   0x8   :  { %v4170_v0 = vld [vmem:[%s6779_s26] sm:$0xff]   ;;  %v4172_v3 = vld [vmem:[%s6779_s26 + $0x8] sm:$0xff]   ;;  %v3840_v31 = vld [vmem:[%s6665_s13 + $0x70] sm:$0xff]  ;;  %s6781_s26 = sld [smem:[#allocation83_spill]] }
   0x9   :  { %v4171_v1 = vld [vmem:[%s6780_s10] sm:$0xff]   ;;  %4122 = vmatprep.subr.bf16.mxu0 %v4170_v0  ;;  %v4173_v4 = vld [vmem:[%s6780_s10 + $0x8] sm:$0xff]   ;;  %v4176_v7 = vld [vmem:[%s6780_s10 + $0x10] sm:$0xff]   ;;  %195 = vperm.xlu1 %4169, %v3815_v14  }
   0xa   :  { %4130 = vmatprep.subr.bf16.mxu1 %v4171_v1  ;;  %4123 = vmatpush3.bf16.msra.mxu0 %v4170_v0  ;;  %v4177_v9 = vld [vmem:[%s6780_s10 + $0x18] sm:$0xff]   ;;  %v3839_v26 = vld [vmem:[%s6665_s13 + $0x68] sm:$0xff]  ;;  %v3838_v27 = vld [vmem:[%s6665_s13 + $0x60] sm:$0xff] }
   0xb   :  { %4131 = vmatpush3.bf16.msra.mxu1 %v4171_v1  ;;  %4124 = vmatprep.subr.bf16.mxu0 %v4172_v3  ;;  %v3881_v32 = vld [vmem:[%s6665_s13 + $0x88] sm:$0xff]  ;;  %v3880_v33 = vld [vmem:[%s6665_s13 + $0x80] sm:$0xff]  ;;  %v3883_v36 = vld [vmem:[%s6665_s13 + $0x98] sm:$0xff] }
   0xc   :  { %4132 = vmatprep.subr.bf16.mxu1 %v4173_v4  ;;  %76 = vperm.xlu0 %4168, %v66_v16   ;;  %v3891_v34 = vld [vmem:[%s6665_s13 + $0xa8] sm:$0xff]  ;;  %v3890_v35 = vld [vmem:[%s6665_s13 + $0xa0] sm:$0xff]  ;;  %v3882_v37 = vld [vmem:[%s6665_s13 + $0x90] sm:$0xff] }
   0xd   :  { %86 = vperm.xlu1 %4169, %v68_v18   ;;  %v3893_v38 = vld [vmem:[%s6665_s13 + $0xb8] sm:$0xff]  ;;  %v3892_v39 = vld [vmem:[%s6665_s13 + $0xb0] sm:$0xff]  ;;  %v4033_v40 = vld [vmem:[%s6665_s13 + $0xc8] sm:$0xff] }
   0xe   :  { %4125 = vmatpush3.bf16.msra.mxu0 %v4172_v3  ;;  %v4032_v41 = vld [vmem:[%s6665_s13 + $0xc0] sm:$0xff]  ;;  %v4035_v42 = vld [vmem:[%s6665_s13 + $0xd8] sm:$0xff]  ;;  %v4034_v43 = vld [vmem:[%s6665_s13 + $0xd0] sm:$0xff] }
   0xf   :  { %4133 = vmatpush3.bf16.msra.mxu1 %v4173_v4  ;;  %v4055_v44 = vld [vmem:[%s6665_s13 + $0xe8] sm:$0xff]  ;;  %v4054_v45 = vld [vmem:[%s6665_s13 + $0xe0] sm:$0xff]  ;;  %v4057_v46 = vld [vmem:[%s6665_s13 + $0xf8] sm:$0xff] }
  0x10   :  { %4134 = vmatprep.subr.bf16.mxu1 %v4176_v7  ;;  %81 = vperm.xlu0 %4168, %v67_v19   ;;  %v4056_v47 = vld [vmem:[%s6665_s13 + $0xf0] sm:$0xff]  ;;  %v4184_v48 = vld [vmem:[%s6666_s14] sm:$0xff]   ;;  %v4185_v49 = vld [vmem:[%s6666_s14 + $0x8] sm:$0xff]  }
  0x11   :  { %4127 = vmatmul.mubr.msk.bf16.vlgmr.msra.gmra.mrb[0].mxu0 %vm111_vm0, %v4175_v6  ;;  %205 = vperm.xlu1 %4169, %v3817_v22  }
  0x12   :  { %4142 = vmatprep.subr.bf16.mxu0 %v4184_v48 }
  0x13   :  { %4135 = vmatpush3.bf16.msra.mxu1 %v4176_v7  ;;  %4143 = vmatpush3.bf16.msra.mxu0 %v4184_v48  ;;  %v4188_v48 = vld [vmem:[%s6668_s15] ss:$16 sps:$4 sm:$0xff]  }
  0x14   :  { %4136 = vmatprep.subr.bf16.mxu1 %v4177_v9  ;;  %200 = vperm.xlu0 %4168, %v3816_v23  }
  0x15   :  { %397 = vperm.xlu1 %4169, %v3831_v24   ;;  %4144 = vmatprep.subr.bf16.mxu0 %v4185_v49 }
  0x17   :  { %4137 = vmatpush3.bf16.msra.mxu1 %v4177_v9  ;;  %4145 = vmatpush3.bf16.msra.mxu0 %v4185_v49  ;;  %v4196_v49 = vld [vmem:[%s6668_s15 + $0x24] ss:$16 sps:$4 sm:$0xff]  }
  0x18   :  { %4158 = vmatprep.subr.bf16.mxu1 %v4180_v10  ;;  %392 = vperm.xlu0 %4168, %v3830_v25  }
  0x19   :  { %498 = vperm.xlu1 %4169, %v3839_v26  }
  0x1a   :  { %4139 = vmatmul.mubr.msk.bf16.vlgmr.msra.gmra.mrb[0].mxu1 %vm242_vm1, %v4179_v13 }
  0x1b   :  { %4159 = vmatpush3.bf16.msra.mxu1 %v4180_v10  ;;  %4162 = vmatprep.mubr.msk.bf16.mxu1 %vm530_vm2, %v4182_v15 }
  0x1c   :  { %4166 = vmatprep.subr.msk.bf16.mxu1 %vm537_vm3, %v4181_v17  ;;  %493 = vperm.xlu0 %4168, %v3838_v27  }
  0x1d   :  { %407 = vperm.xlu1 %4169, %v3833_v28  }
  0x1f   :  { %4161 = vmatpush3.bf16.msra.mxu1 %v539_v20 }
  0x20   :  { %402 = vperm.xlu0 %4168, %v3832_v29   ;;  %v4186_v29 = vld [vmem:[%s6667_s7] sm:$0xff]  }
  0x21   :  { %508 = vperm.xlu1 %4169, %v3841_v30   ;;  %v4191_v30 = vld [vmem:[%s6668_s15 + $0x8] ss:$16 sps:$4 sm:$0xff]  }
  0x22   :  { %4163 = vmatmul.mubr.msk.bf16.vlgmr.msra.gmra.mrb[4].mxu1 %vm530_vm2, %v4183_v21 }
  0x23   :  { %877 = vmatprep.mubr.bf16.mxu1 %v6680_v2 }
  0x24   :  { %503 = vperm.xlu0 %4168, %v3840_v31   ;;  %v4193_v31 = vld [vmem:[%s6668_s15 + $0xc] ss:$16 sps:$4 sm:$0xff]  }
  0x25   :  { %922 = vperm.xlu1 %4169, %v3881_v32   ;;  %845 = vmatprep.subr.bf16.mxu1 %v4193_v31  ;;  %v4197_v32 = vld [vmem:[%s6668_s15 + $0x28] ss:$16 sps:$4 sm:$0xff]  }
  0x26   :  { %846 = vmatpush1.bf16.msra.mxu1 %v4191_v30 }
  0x28   :  { %917 = vperm.xlu0 %4168, %v3880_v33   ;;  %v4199_v33 = vld [vmem:[%s6668_s15 + $0x2c] ss:$16 sps:$4 sm:$0xff]  }
  0x29   :  { %1093 = vperm.xlu1 %4169, %v3891_v34   ;;  %847 = vmatprep.subr.bf16.mxu1 %v4199_v33  ;;  %v4205_v34 = vld [vmem:[%s6668_s15 + $0x4c] ss:$16 sps:$4 sm:$0xff]  }
  0x2a   :  { %848 = vmatpush1.bf16.msra.mxu1 %v4197_v32 }
  0x2b   :  { %849 = vmatprep.subr.bf16.mxu1 %v4205_v34 }
  0x2c   :  { %1088 = vperm.xlu0 %4168, %v3890_v35   ;;  %v4203_v35 = vld [vmem:[%s6668_s15 + $0x48] ss:$16 sps:$4 sm:$0xff]  }
  0x2d   :  { %932 = vperm.xlu1 %4169, %v3883_v36   ;;  %v4211_v36 = vld [vmem:[%s6668_s15 + $0x6c] ss:$16 sps:$4 sm:$0xff]  }
  0x2e   :  { %850 = vmatpush1.bf16.msra.mxu1 %v4203_v35 }
  0x2f   :  { %851 = vmatprep.subr.bf16.mxu1 %v4211_v36 }
  0x30   :  { %927 = vperm.xlu0 %4168, %v3882_v37   ;;  %v4209_v37 = vld [vmem:[%s6668_s15 + $0x68] ss:$16 sps:$4 sm:$0xff]  }
  0x31   :  { %1103 = vperm.xlu1 %4169, %v3893_v38   ;;  %v4217_v38 = vld [vmem:[%s6668_s15 + $0x8c] ss:$16 sps:$4 sm:$0xff]  }
  0x32   :  { %852 = vmatpush1.bf16.msra.mxu1 %v4209_v37 }
  0x33   :  { %853 = vmatprep.subr.bf16.mxu1 %v4217_v38 }
  0x34   :  { %1098 = vperm.xlu0 %4168, %v3892_v39   ;;  %v4215_v39 = vld [vmem:[%s6668_s15 + $0x88] ss:$16 sps:$4 sm:$0xff]  }
  0x35   :  { %2529 = vperm.xlu1 %4169, %v4033_v40  }
  0x36   :  { %854 = vmatpush1.bf16.msra.mxu1 %v4215_v39 }
  0x38   :  { %2524 = vperm.xlu0 %4168, %v4032_v41  }
  0x39   :  { %2539 = vperm.xlu1 %4169, %v4035_v42  }
  0x3c   :  { %2534 = vperm.xlu0 %4168, %v4034_v43  }
  0x3d   :  { %3070 = vperm.xlu1 %4169, %v4055_v44  }
  0x40   :  { %3065 = vperm.xlu0 %4168, %v4054_v45  }
  0x41   :  { %3080 = vperm.xlu1 %4169, %v4057_v46   ;;  %v4190_v46 = vld [vmem:[%s6668_s15 + $0x4] ss:$16 sps:$4 sm:$0xff]  }
  0x44   :  { %3075 = vperm.xlu0 %4168, %v4056_v47   ;;  %v4187_v47 = vld [vmem:[%s6667_s7 + $0x8] sm:$0xff]  }
  0x84   :  { %v191_v51 = vpop.permute.xlu1 %190 }
  0x85   :  { %v72_v50 = vpop.permute.xlu0 %71 }
  0x88   :  { %v196_v53 = vpop.permute.xlu1 %195 }
  0x8b   :  { %v77_v52 = vpop.permute.xlu0 %76 }
  0x8c   :  { %v87_v59 = vpop.permute.xlu1 %86 }
  0x8f   :  { %v82_v57 = vpop.permute.xlu0 %81 }
  0x90   :  { %v206_v4 = vpop.permute.xlu1 %205 }
  0x93   :  { %v201_v61 = vpop.permute.xlu0 %200 }
  0xe4   :  { %v4128_v54 = vpop.f32.mrb[0].mxu0 }
  0xe5   :  { %v152_v55 = vpop.f32.mrb[1].mxu0  ;;  %v161_v60 = vadd.f32 %v4128_v54, %v82_v57  ;;  %v4206_v54 = vld [vmem:[%s6668_s15 + $0x60] ss:$16 sps:$4 sm:$0xff]   ;;  %v4220_v57 = vld [vmem:[%s6668_s15 + $0xa4] ss:$16 sps:$4 sm:$0xff]  }
  0xe6   :  { %v4129_v56 = vpop.f32.mrb[2].mxu0  ;;  %v153_v62 = vadd.f32 %v152_v55, %v72_v50  ;;  %v4194_v50 = vld [vmem:[%s6668_s15 + $0x20] ss:$16 sps:$4 sm:$0xff]   ;;  %v4214_v55 = vld [vmem:[%s6668_s15 + $0x84] ss:$16 sps:$4 sm:$0xff]  }
  0xe7   :  { %v155_v58 = vpop.f32.mrb[3].mxu0  ;;  %v164_v0 = vadd.f32 %v4129_v56, %v87_v59  ;;  %v169_v8 = vmax.f32 %v161_v60, 0.0  ;;  %v4212_v56 = vld [vmem:[%s6668_s15 + $0x80] ss:$16 sps:$4 sm:$0xff]   ;;  %v4221_v60 = vld [vmem:[%s6668_s15 + $0xa8] ss:$16 sps:$4 sm:$0xff]  }
  0xe8   :  { %v156_v5 = vadd.f32 %v155_v58, %v77_v52  ;;  %v167_v12 = vmax.f32 %v153_v62, 0.0  ;;  %v4200_v52 = vld [vmem:[%s6668_s15 + $0x40] ss:$16 sps:$4 sm:$0xff]   ;;  %v4223_v58 = vld [vmem:[%s6668_s15 + $0xac] ss:$16 sps:$4 sm:$0xff]  }
  0xe9   :  { %v170_v15 = vmax.f32 %v164_v0, 0.0  ;;  %v4218_v59 = vld [vmem:[%s6668_s15 + $0xa0] ss:$16 sps:$4 sm:$0xff]   ;;  %855 = vmatprep.subr.bf16.mxu1 %v4223_v58  ;;  %v4229_v62 = vld [vmem:[%s6668_s15 + $0xcc] ss:$16 sps:$4 sm:$0xff]  }
  0xea   :  { %v168_v18 = vmax.f32 %v156_v5, 0.0  ;;  %856 = vmatpush1.bf16.msra.mxu1 %v4221_v60  ;;  %v4227_v0 = vld [vmem:[%s6668_s15 + $0xc8] ss:$16 sps:$4 sm:$0xff]  }
  0xeb   :  { %857 = vmatprep.subr.bf16.mxu1 %v4229_v62  ;;  %v4233_v5 = vld [vmem:[%s6668_s15 + $0xe8] ss:$16 sps:$4 sm:$0xff]  }
  0xed   :  { %v4140_v63 = vpop.f32.mrb[0].mxu1 }
  0xee   :  { %v292_v1 = vadd.f32 %v4140_v63, %v201_v61  ;;  %v283_v3 = vpop.f32.mrb[1].mxu1  ;;  %v4226_v61 = vld [vmem:[%s6668_s15 + $0xc4] ss:$16 sps:$4 sm:$0xff]   ;;  %v4224_v63 = vld [vmem:[%s6668_s15 + $0xc0] ss:$16 sps:$4 sm:$0xff]   ;;  %858 = vmatpush1.bf16.msra.mxu1 %v4227_v0 }
  0xef   :  { %v284_v6 = vadd.f32 %v283_v3, %v191_v51  ;;  %v4141_v7 = vpop.f32.mrb[2].mxu1  ;;  %v4202_v51 = vld [vmem:[%s6668_s15 + $0x44] ss:$16 sps:$4 sm:$0xff]   ;;  %v4235_v3 = vld [vmem:[%s6668_s15 + $0xec] ss:$16 sps:$4 sm:$0xff]  }
  0xf0   :  { %v300_v9 = vmax.f32 %v292_v1, 0.0  ;;  %v295_v10 = vadd.f32 %v4141_v7, %v206_v4  ;;  %v286_v11 = vpop.f32.mrb[3].mxu1  ;;  %v4232_v1 = vld [vmem:[%s6668_s15 + $0xe4] ss:$16 sps:$4 sm:$0xff]   ;;  %v4230_v4 = vld [vmem:[%s6668_s15 + $0xe0] ss:$16 sps:$4 sm:$0xff]   ;;  %859 = vmatprep.subr.bf16.mxu1 %v4235_v3  ;;  %v398_v7 = vpop.permute.xlu1 %397 }
  0xf1   :  { %v298_v13 = vmax.f32 %v284_v6, 0.0  ;;  %v287_v14 = vadd.f32 %v286_v11, %v196_v53  ;;  %v4208_v53 = vld [vmem:[%s6668_s15 + $0x64] ss:$16 sps:$4 sm:$0xff]   ;;  %v393_v6 = vpop.permute.xlu0 %392 }
  0xf2   :  { %v304_v16 = vadd.f32 %v300_v9, %v169_v8  ;;  %v301_v17 = vmax.f32 %v295_v10, 0.0  ;;  %860 = vmatpush1.bf16.msra.mxu1 %v4233_v5  ;;  %v4239_v0 = vld [vmem:[%s6670_s3 + $0x4] ss:$16 sps:$4 sm:$0xff]  }
  0xf3   :  { %v302_v19 = vadd.f32 %v298_v13, %v167_v12  ;;  %v299_v20 = vmax.f32 %v287_v14, 0.0  ;;  %v4236_v3 = vld [vmem:[%s6669_s9] sm:$0xff]  }
  0xf4   :  { %v305_v21 = vadd.f32 %v301_v17, %v170_v15  ;;  %v499_v9 = vpop.permute.xlu1 %498  ;;  %v1293_v5 = vld [vmem:[%s6672_s16 + $0x20] sm:$0xff] }
  0xf5   :  { %v303_v22 = vadd.f32 %v299_v20, %v168_v18  ;;  %v4512_v23 = vpop.f32.mrb[4].mxu1  ;;  %v494_v8 = vpop.permute.xlu0 %493 }
  0xf6   :  { %v307_v24 = vpack.c.bf16 %v305_v21, %v304_v16  ;;  %v4514_v25 = vpop.f32.mrb[5].mxu1 }
  0xf7   :  { %v306_v26 = vpack.c.bf16 %v303_v22, %v302_v19  ;;  %v4516_v27 = vpop.f32.mrb[6].mxu1  ;;  %v576_v15 = vadd.f32 %v4514_v25, %v494_v8  ;;  %v4237_v8 = vld [vmem:[%s6670_s3] ss:$16 sps:$4 sm:$0xff]  }
  0xf8   :  { %v4518_v28 = vpop.f32.mrb[7].mxu1  ;;  %v408_v11 = vpop.permute.xlu1 %407 }
  0xf9   :  { %4146 = vmatprep.mubr.msk.bf16.mxu0 %vm111_vm0, %v306_v26  ;;  %v403_v10 = vpop.permute.xlu0 %402  ;;  %v579_v20 = vadd.f32 %v4518_v28, %v499_v9  ;;  %v590_v31 = vmax.f32 %v576_v15, 0.0  ;;  %v4241_v9 = vld [vmem:[%s6670_s3 + $0x8] ss:$16 sps:$4 sm:$0xff]   ;;  %v1301_v15 = vld [vmem:[%s6672_s16 + $0x60] sm:$0xff] }
  0xfa   :  { %4147 = vmatmul.mubr.msk.bf16.vlgmr.msra.gmra.mrb[4].mxu0 %vm111_vm0, %v307_v24 }
  0xfb   :  { %4154 = vmatprep.mubr.msk.bf16.mxu0 %vm111_vm0, %v4186_v29  ;;  %v591_v25 = vmax.f32 %v579_v20, 0.0 }
  0xfc   :  { %v509_v14 = vpop.permute.xlu1 %508 }
  0xfd   :  { %v504_v12 = vpop.permute.xlu0 %503  ;;  %v587_v17 = vadd.f32 %v4516_v27, %v509_v14  ;;  %v1297_v14 = vld [vmem:[%s6672_s16 + $0x40] sm:$0xff] }
  0xfe   :  { %v584_v13 = vadd.f32 %v4512_v23, %v504_v12  ;;  %v4240_v12 = vld [vmem:[%s6669_s9 + $0x8] sm:$0xff]   ;;  %v4698_v20 = vcombine.high %v1297_v14, %v1301_v15 }
  0xff   :  { %v593_v23 = vmax.f32 %v587_v17, 0.0  ;;  %v1302_v17 = vld [vmem:[%s6672_s16 + $0x68] sm:$0xff] }
 0x100   :  { %v592_v24 = vmax.f32 %v584_v13, 0.0  ;;  %v4244_v13 = vld [vmem:[%s6781_s26] sm:$0xff]  }
 0x1cd   :  { %v4148_v40 = vpop.f32.mrb[4].mxu0 }
 0x1ce   :  { %v364_v41 = vpop.f32.mrb[5].mxu0 }
 0x1cf   :  { %v4149_v42 = vpop.f32.mrb[6].mxu0 }
 0x1d0   :  { %v380_v43 = vpack.c.bf16 %v4149_v42, %v4148_v40  ;;  %v367_v44 = vpop.f32.mrb[7].mxu0 }
 0x1d1   :  { %v379_v45 = vpack.c.bf16 %v367_v44, %v364_v41 }
 0x1d3   :  { %4150 = vmatprep.subr.bf16.mxu0 %v379_v45 }
 0x1d4   :  { %4151 = vmatpush3.bf16.msra.mxu0 %v379_v45 }
 0x1d5   :  { %4152 = vmatprep.subr.bf16.mxu0 %v380_v43 }
 0x1d8   :  { %4153 = vmatpush3.bf16.msra.mxu0 %v380_v43 }
 0x1d9   :  { %792 = vmatprep.subr.bf16.mxu0 %v4190_v46 }
 0x1db   :  { %4155 = vmatmul.mubr.msk.bf16.vlgmr.msra.gmra.mrb[8].mxu0 %vm111_vm0, %v4187_v47 }
 0x1dc   :  { %793 = vmatpush1.bf16.msra.mxu0 %v4188_v48  ;;  %824 = vmatprep.mubr.bf16.mxu0 %v6680_v2 }
 0x1dd   :  { %794 = vmatprep.subr.bf16.mxu0 %v4196_v49 }
 0x1e0   :  { %795 = vmatpush1.bf16.msra.mxu0 %v4194_v50 }
 0x1e1   :  { %796 = vmatprep.subr.bf16.mxu0 %v4202_v51 }
 0x1e4   :  { %797 = vmatpush1.bf16.msra.mxu0 %v4200_v52 }
 0x1e5   :  { %798 = vmatprep.subr.bf16.mxu0 %v4208_v53 }
 0x1e8   :  { %799 = vmatpush1.bf16.msra.mxu0 %v4206_v54 }
 0x1e9   :  { %800 = vmatprep.subr.bf16.mxu0 %v4214_v55 }
 0x1ec   :  { %801 = vmatpush1.bf16.msra.mxu0 %v4212_v56 }
 0x1ed   :  { %802 = vmatprep.subr.bf16.mxu0 %v4220_v57 }
 0x1f0   :  { %803 = vmatpush1.bf16.msra.mxu0 %v4218_v59 }
 0x1f1   :  { %804 = vmatprep.subr.bf16.mxu0 %v4226_v61 }
 0x1f4   :  { %805 = vmatpush1.bf16.msra.mxu0 %v4224_v63 }
 0x1f5   :  { %806 = vmatprep.subr.bf16.mxu0 %v4232_v1  ;;  %v4243_v1 = vld [vmem:[%s6670_s3 + $0xc] ss:$16 sps:$4 sm:$0xff]  }
 0x1f8   :  { %807 = vmatpush1.bf16.msra.mxu0 %v4230_v4  ;;  %v1289_v4 = vld [vmem:[%s6672_s16] sm:$0xff] }
 0x2ae   :  { %v4156_v16 = vpop.f32.mrb[8].mxu0 }
 0x2af   :  { %v469_v18 = vadd.f32 %v4156_v16, %v403_v10  ;;  %v460_v19 = vpop.f32.mrb[9].mxu0  ;;  %v4662_v10 = vcombine.high %v1289_v4, %v1293_v5  ;;  %v1298_v16 = vld [vmem:[%s6672_s16 + $0x48] sm:$0xff] }
 0x2b0   :  { %v461_v21 = vadd.f32 %v460_v19, %v393_v6  ;;  %v4157_v22 = vpop.f32.mrb[10].mxu0  ;;  %v1290_v6 = vld [vmem:[%s6672_s16 + $0x8] sm:$0xff] }
 0x2b1   :  { %v477_v26 = vmax.f32 %v469_v18, 0.0  ;;  %v472_v29 = vadd.f32 %v4157_v22, %v408_v11  ;;  %v463_v30 = vpop.f32.mrb[11].mxu0  ;;  %v4694_v18 = vcombine.low %v1289_v4, %v1293_v5  ;;  %v1305_v22 = vld [vmem:[%s6672_s16 + $0x80] sm:$0xff] }
 0x2b2   :  { %v475_v32 = vmax.f32 %v461_v21, 0.0  ;;  %v464_v33 = vadd.f32 %v463_v30, %v398_v7  ;;  %v1294_v7 = vld [vmem:[%s6672_s16 + $0x28] sm:$0xff]  ;;  %v4700_v21 = vcombine.high %v1298_v16, %v1302_v17  ;;  %v4720_v30 = vcombine.low %v1297_v14, %v1301_v15 }
 0x2b3   :  { %v596_v34 = vadd.f32 %v592_v24, %v477_v26  ;;  %v478_v35 = vmax.f32 %v472_v29, 0.0  ;;  %v4664_v11 = vcombine.high %v1290_v6, %v1294_v7  ;;  %v4696_v19 = vcombine.low %v1290_v6, %v1294_v7  ;;  %v1309_v24 = vld [vmem:[%s6672_s16 + $0xa0] sm:$0xff]  ;;  %v1306_v26 = vld [vmem:[%s6672_s16 + $0x88] sm:$0xff] }
 0x2b4   :  { %v594_v36 = vadd.f32 %v590_v31, %v475_v32  ;;  %v476_v37 = vmax.f32 %v464_v33, 0.0  ;;  %v1310_v29 = vld [vmem:[%s6672_s16 + $0xa8] sm:$0xff]  ;;  %v4722_v31 = vcombine.low %v1298_v16, %v1302_v17  ;;  %v4729_v33 = vcombine.high %v1305_v22, %v1309_v24 }
 0x2b5   :  { %v597_v27 = vadd.f32 %v593_v23, %v478_v35  ;;  %v4245_v32 = vld [vmem:[%s6781_s26 + $0x8] sm:$0xff]   ;;  %v4731_v23 = vcombine.high %v1306_v26, %v1310_v29  ;;  %v1317_v35 = vld [vmem:[%s6672_s16 + $0xe0] sm:$0xff] }
 0x2b6   :  { %v595_v38 = vadd.f32 %v591_v25, %v476_v37  ;;  %v1314_v25 = vld [vmem:[%s6672_s16 + $0xc8] sm:$0xff]  ;;  %v4747_v37 = vcombine.low %v1305_v22, %v1309_v24 }
 0x2b7   :  { %v599_v39 = vpack.c.bf16 %v597_v27, %v596_v34  ;;  %v1313_v34 = vld [vmem:[%s6672_s16 + $0xc0] sm:$0xff]  ;;  %v4749_v27 = vcombine.low %v1306_v26, %v1310_v29 }
 0x2b8   :  { %v598_v40 = vpack.c.bf16 %v595_v38, %v594_v36  ;;  %v1318_v36 = vld [vmem:[%s6672_s16 + $0xe8] sm:$0xff]  ;;  %v4753_v38 = vcombine.high %v1313_v34, %v1317_v35  ;;  %v1361_v26 = vld [vmem:[%s6672_s16 + $0x240] sm:$0xff] }
 0x2b9   :  { %v1365_v29 = vld [vmem:[%s6672_s16 + $0x260] sm:$0xff] }
 0x2ba   :  { %825 = vmatmul.mubr.bf16.vlgmr.msra.gmra.mrb[12].mxu0 %v598_v40  ;;  %878 = vmatmul.mubr.bf16.vlgmr.msra.gmra.mrb[8].mxu1 %v598_v40  ;;  %v1321_v40 = vld [vmem:[%s6672_s16 + $0x100] sm:$0xff] }
 0x2bb   :  { %834 = vmatprep.mubr.bf16.mxu0 %v6680_v2  ;;  %887 = vmatprep.mubr.bf16.mxu1 %v6680_v2 }
 0x2c2   :  { %835 = vmatmul.mubr.bf16.gmra.mrb[16].mxu0 %v599_v39  ;;  %888 = vmatmul.mubr.bf16.gmra.mrb[12].mxu1 %v599_v39  ;;  %v4755_v39 = vcombine.high %v1314_v25, %v1318_v36 }
 0x2c3   :  { %983 = vmatprep.mubr.bf16.mxu0 %v6680_v2  ;;  %1036 = vmatprep.mubr.bf16.mxu1 %v6680_v2 }
 0x38d   :  { %v826_v28 = vpop.f32.mrb[12].mxu0  ;;  %v879_v41 = vpop.f32.mrb[8].mxu1 }
 0x38e   :  { %v828_v42 = vpop.f32.mrb[13].mxu0  ;;  %v881_v43 = vpop.f32.mrb[9].mxu1 }
 0x38f   :  { %v830_v44 = vpop.f32.mrb[14].mxu0  ;;  %v883_v45 = vpop.f32.mrb[10].mxu1 }
 0x390   :  { %v898_v46 = vpack.c.bf16 %v830_v44, %v826_v28  ;;  %v900_v47 = vpack.c.bf16 %v883_v45, %v879_v41  ;;  %v832_v48 = vpop.f32.mrb[15].mxu0  ;;  %v885_v49 = vpop.f32.mrb[11].mxu1  ;;  %v1325_v28 = vld [vmem:[%s6672_s16 + $0x120] sm:$0xff]  ;;  %v1322_v41 = vld [vmem:[%s6672_s16 + $0x108] sm:$0xff]  ;;  %v4775_v44 = vcombine.low %v1314_v25, %v1318_v36  ;;  %v4903_v25 = vcombine.low %v1361_v26, %v1365_v29 }
 0x391   :  { %v899_v50 = vpack.c.bf16 %v832_v48, %v828_v42  ;;  %v901_v51 = vpack.c.bf16 %v885_v49, %v881_v43  ;;  %v1326_v42 = vld [vmem:[%s6672_s16 + $0x128] sm:$0xff]  ;;  %v4773_v43 = vcombine.low %v1313_v34, %v1317_v35  ;;  %v4779_v45 = vcombine.high %v1321_v40, %v1325_v28  ;;  %v1333_v48 = vld [vmem:[%s6672_s16 + $0x160] sm:$0xff] }
 0x392   :  { %6783 = vst [vmem:[#allocation3_spill] sm:$0xff] %v4775_v44  ;;  %v1330_v49 = vld [vmem:[%s6672_s16 + $0x148] sm:$0xff]  ;;  %v4898_v34 = vcombine.high %v1361_v26, %v1365_v29  ;;  %6805 = vst [vmem:[#allocation25_spill] sm:$0xff] %v4903_v25 }
 0x393   :  { %951 = vmatprep.subr.bf16.mxu0 %v899_v50  ;;  %1004 = vmatprep.subr.bf16.mxu1 %v901_v51  ;;  %6782 = vst [vmem:[#allocation2_spill] sm:$0xff] %v4773_v43  ;;  %6784 = vst [vmem:[#allocation4_spill] sm:$0xff] %v4779_v45  ;;  %v1334_v50 = vld [vmem:[%s6672_s16 + $0x168] sm:$0xff]  ;;  %v4797_v51 = vcombine.low %v1321_v40, %v1325_v28  ;;  %v1369_v28 = vld [vmem:[%s6672_s16 + $0x280] sm:$0xff] }
 0x394   :  { %952 = vmatpush1.bf16.msra.mxu0 %v898_v46  ;;  %1005 = vmatpush1.bf16.msra.mxu1 %v900_v47  ;;  %v4781_v46 = vcombine.high %v1322_v41, %v1326_v42  ;;  %v1329_v47 = vld [vmem:[%s6672_s16 + $0x140] sm:$0xff]  ;;  %6804 = vst [vmem:[#allocation24_spill] sm:$0xff] %v4898_v34  ;;  %v1366_v35 = vld [vmem:[%s6672_s16 + $0x268] sm:$0xff] }
 0x395   :  { %v836_v52 = vpop.f32.mrb[16].mxu0  ;;  %v889_v53 = vpop.f32.mrb[12].mxu1  ;;  %6786 = vst [vmem:[#allocation6_spill] sm:$0xff] %v4797_v51  ;;  %v1390_v29 = vld [vmem:[%s6672_s16 + $0x328] sm:$0xff] }
 0x396   :  { %v838_v54 = vpop.f32.mrb[17].mxu0  ;;  %v891_v55 = vpop.f32.mrb[13].mxu1  ;;  %6785 = vst [vmem:[#allocation5_spill] sm:$0xff] %v4781_v46 }
 0x397   :  { %v840_v56 = vpop.f32.mrb[18].mxu0  ;;  %v893_v57 = vpop.f32.mrb[14].mxu1 }
 0x398   :  { %v902_v58 = vpack.c.bf16 %v840_v56, %v836_v52  ;;  %v904_v59 = vpack.c.bf16 %v893_v57, %v889_v53  ;;  %v842_v60 = vpop.f32.mrb[19].mxu0  ;;  %v895_v61 = vpop.f32.mrb[15].mxu1  ;;  %v4799_v52 = vcombine.low %v1322_v41, %v1326_v42  ;;  %v4803_v53 = vcombine.high %v1329_v47, %v1333_v48  ;;  %v1341_v56 = vld [vmem:[%s6672_s16 + $0x1a0] sm:$0xff]  ;;  %v1338_v57 = vld [vmem:[%s6672_s16 + $0x188] sm:$0xff] }
 0x399   :  { %v903_v62 = vpack.c.bf16 %v842_v60, %v838_v54  ;;  %v905_v63 = vpack.c.bf16 %v895_v61, %v891_v55  ;;  %v4805_v54 = vcombine.high %v1330_v49, %v1334_v50  ;;  %v1337_v55 = vld [vmem:[%s6672_s16 + $0x180] sm:$0xff]  ;;  %v4823_v60 = vcombine.low %v1330_v49, %v1334_v50  ;;  %v1370_v42 = vld [vmem:[%s6672_s16 + $0x288] sm:$0xff] }
 0x39a   :  { %6787 = vst [vmem:[#allocation7_spill] sm:$0xff] %v4799_v52  ;;  %6788 = vst [vmem:[#allocation8_spill] sm:$0xff] %v4803_v53  ;;  %v4827_v61 = vcombine.high %v1337_v55, %v1341_v56  ;;  %v4845_v4 = vcombine.low %v1337_v55, %v1341_v56  ;;  %v1373_v41 = vld [vmem:[%s6672_s16 + $0x2a0] sm:$0xff] }
 0x39b   :  { %953 = vmatprep.subr.bf16.mxu0 %v903_v62  ;;  %1006 = vmatprep.subr.bf16.mxu1 %v905_v63  ;;  %6789 = vst [vmem:[#allocation9_spill] sm:$0xff] %v4805_v54  ;;  %6791 = vst [vmem:[#allocation11_spill] sm:$0xff] %v4823_v60  ;;  %v1345_v63 = vld [vmem:[%s6672_s16 + $0x1c0] sm:$0xff]  ;;  %v4927_v49 = vcombine.low %v1369_v28, %v1373_v41 }
 0x39c   :  { %954 = vmatpush1.bf16.msra.mxu0 %v902_v58  ;;  %1007 = vmatpush1.bf16.msra.mxu1 %v904_v59  ;;  %v1342_v58 = vld [vmem:[%s6672_s16 + $0x1a8] sm:$0xff]  ;;  %v4821_v59 = vcombine.low %v1329_v47, %v1333_v48  ;;  %6792 = vst [vmem:[#allocation12_spill] sm:$0xff] %v4827_v61  ;;  %6794 = vst [vmem:[#allocation14_spill] sm:$0xff] %v4845_v4  ;;  %v4922_v47 = vcombine.high %v1369_v28, %v1373_v41  ;;  %v1377_v56 = vld [vmem:[%s6672_s16 + $0x2c0] sm:$0xff] }
 0x39d   :  { %1143 = vmatprep.subr.bf16.mxu0 %v4239_v0  ;;  %1196 = vmatprep.subr.bf16.mxu1 %v4243_v1  ;;  %v4829_v62 = vcombine.high %v1338_v57, %v1342_v58  ;;  %v1349_v0 = vld [vmem:[%s6672_s16 + $0x1e0] sm:$0xff]  ;;  %v1346_v1 = vld [vmem:[%s6672_s16 + $0x1c8] sm:$0xff]  ;;  %v4847_v5 = vcombine.low %v1338_v57, %v1342_v58  ;;  %6809 = vst [vmem:[#allocation29_spill] sm:$0xff] %v4927_v49 }
 0x39e   :  { %6790 = vst [vmem:[#allocation10_spill] sm:$0xff] %v4821_v59  ;;  %v4851_v6 = vcombine.high %v1345_v63, %v1349_v0  ;;  %v4869_v14 = vcombine.low %v1345_v63, %v1349_v0  ;;  %6808 = vst [vmem:[#allocation28_spill] sm:$0xff] %v4922_v47  ;;  %v1374_v48 = vld [vmem:[%s6672_s16 + $0x2a8] sm:$0xff]  ;;  %v1381_v57 = vld [vmem:[%s6672_s16 + $0x2e0] sm:$0xff] }
 0x39f   :  { %3886 = vmatmul.mubr.msk.bf16.vlgmr.msra.gmra.mrb[20].mxu0 %vm111_vm0, %v4236_v3  ;;  %3888 = vmatmul.mubr.msk.bf16.vlgmr.msra.gmra.mrb[16].mxu1 %vm111_vm0, %v4236_v3  ;;  %6793 = vst [vmem:[#allocation13_spill] sm:$0xff] %v4829_v62  ;;  %v1350_v3 = vld [vmem:[%s6672_s16 + $0x1e8] sm:$0xff]  ;;  %6795 = vst [vmem:[#allocation15_spill] sm:$0xff] %v4847_v5  ;;  %v4929_v50 = vcombine.low %v1370_v42, %v1374_v48  ;;  %v4931_v55 = vcombine.high %v1370_v42, %v1374_v48  ;;  %v1393_v41 = vld [vmem:[%s6672_s16 + $0x340] sm:$0xff] }
 0x3a0   :  { %1144 = vmatpush1.bf16.msra.mxu0 %v4237_v8  ;;  %993 = vmatprep.mubr.bf16.mxu0 %v6680_v2  ;;  %6796 = vst [vmem:[#allocation16_spill] sm:$0xff] %v4851_v6  ;;  %v4853_v7 = vcombine.high %v1346_v1, %v1350_v3  ;;  %v1353_v8 = vld [vmem:[%s6672_s16 + $0x200] sm:$0xff]  ;;  %6798 = vst [vmem:[#allocation18_spill] sm:$0xff] %v4869_v14  ;;  %v4871_v15 = vcombine.low %v1346_v1, %v1350_v3  ;;  %v1378_v58 = vld [vmem:[%s6672_s16 + $0x2c8] sm:$0xff] }
 0x3a1   :  { %1046 = vmatprep.mubr.bf16.mxu1 %v6680_v2  ;;  %1197 = vmatpush1.bf16.msra.mxu1 %v4241_v9  ;;  %v1357_v9 = vld [vmem:[%s6672_s16 + $0x220] sm:$0xff]  ;;  %6810 = vst [vmem:[#allocation30_spill] sm:$0xff] %v4929_v50  ;;  %6811 = vst [vmem:[#allocation31_spill] sm:$0xff] %v4931_v55  ;;  %v4946_v63 = vcombine.high %v1377_v56, %v1381_v57  ;;  %v1382_v0 = vld [vmem:[%s6672_s16 + $0x2e8] sm:$0xff]  ;;  %v4951_v1 = vcombine.low %v1377_v56, %v1381_v57 }
 0x3a2   :  { %2057 = vmatprep.subr.bf16.mxu0 %v4662_v10  ;;  %2110 = vmatprep.subr.bf16.mxu1 %v4664_v11  ;;  %6797 = vst [vmem:[#allocation17_spill] sm:$0xff] %v4853_v7  ;;  %6799 = vst [vmem:[#allocation19_spill] sm:$0xff] %v4871_v15  ;;  %v4875_v16 = vcombine.high %v1353_v8, %v1357_v9  ;;  %v4881_v22 = vcombine.low %v1353_v8, %v1357_v9  ;;  %v1385_v9 = vld [vmem:[%s6672_s16 + $0x300] sm:$0xff]  ;;  %v1394_v48 = vld [vmem:[%s6672_s16 + $0x348] sm:$0xff] }
 0x3a3   :  { %6812 = vst [vmem:[#allocation32_spill] sm:$0xff] %v4946_v63  ;;  %6813 = vst [vmem:[#allocation33_spill] sm:$0xff] %v4951_v1  ;;  %v4953_v3 = vcombine.low %v1378_v58, %v1382_v0  ;;  %v4955_v8 = vcombine.high %v1378_v58, %v1382_v0  ;;  %v1397_v42 = vld [vmem:[%s6672_s16 + $0x360] sm:$0xff]  ;;  %v1398_v57 = vld [vmem:[%s6672_s16 + $0x368] sm:$0xff] }
 0x3a4   :  { %6800 = vst [vmem:[#allocation20_spill] sm:$0xff] %v4875_v16  ;;  %6802 = vst [vmem:[#allocation22_spill] sm:$0xff] %v4881_v22  ;;  %v4994_v56 = vcombine.high %v1393_v41, %v1397_v42  ;;  %v4999_v58 = vcombine.low %v1393_v41, %v1397_v42  ;;  %v5001_v0 = vcombine.low %v1394_v48, %v1398_v57  ;;  %v1406_v42 = vld [vmem:[%s6672_s16 + $0x3a8] sm:$0xff] }
 0x3a5   :  { %6814 = vst [vmem:[#allocation34_spill] sm:$0xff] %v4953_v3  ;;  %6815 = vst [vmem:[#allocation35_spill] sm:$0xff] %v4955_v8 }
 0x3a6   :  { %6820 = vst [vmem:[#allocation40_spill] sm:$0xff] %v4994_v56  ;;  %6821 = vst [vmem:[#allocation41_spill] sm:$0xff] %v4999_v58 }
 0x3a7   :  { %3887 = vmatmul.mubr.msk.bf16.gmra.mrb[24].mxu0 %vm111_vm0, %v4240_v12  ;;  %3889 = vmatmul.mubr.msk.bf16.gmra.mrb[20].mxu1 %vm111_vm0, %v4240_v12  ;;  %v1354_v12 = vld [vmem:[%s6672_s16 + $0x208] sm:$0xff]  ;;  %6822 = vst [vmem:[#allocation42_spill] sm:$0xff] %v5001_v0 }
 0x3a8   :  { %1175 = vmatprep.mubr.bf16.mxu0 %v6680_v2  ;;  %1228 = vmatprep.mubr.bf16.mxu1 %v6680_v2 }
 0x3af   :  { %3900 = vmatmul.mubr.msk.bf16.vlgmr.msra.gmra.mrb[28].mxu0 %vm1136_vm4, %v4244_v13  ;;  %3902 = vmatmul.mubr.msk.bf16.vlgmr.msra.gmra.mrb[24].mxu1 %vm1136_vm4, %v4244_v13  ;;  %v1358_v13 = vld [vmem:[%s6672_s16 + $0x228] sm:$0xff] }
 0x3b0   :  { %1185 = vmatprep.mubr.bf16.mxu0 %v6680_v2  ;;  %1238 = vmatprep.mubr.bf16.mxu1 %v6680_v2  ;;  %v4877_v17 = vcombine.high %v1354_v12, %v1358_v13  ;;  %v4883_v24 = vcombine.low %v1354_v12, %v1358_v13  ;;  %v1389_v12 = vld [vmem:[%s6672_s16 + $0x320] sm:$0xff]  ;;  %v1386_v13 = vld [vmem:[%s6672_s16 + $0x308] sm:$0xff] }
 0x3b1   :  { %2058 = vmatpush1.bf16.msra.mxu0 %v4694_v18  ;;  %2111 = vmatpush1.bf16.msra.mxu1 %v4696_v19  ;;  %v4970_v26 = vcombine.high %v1385_v9, %v1389_v12  ;;  %v4979_v28 = vcombine.high %v1386_v13, %v1390_v29 }
 0x3b2   :  { %2059 = vmatprep.subr.bf16.mxu0 %v4698_v20  ;;  %2112 = vmatprep.subr.bf16.mxu1 %v4700_v21  ;;  %6801 = vst [vmem:[#allocation21_spill] sm:$0xff] %v4877_v17  ;;  %6803 = vst [vmem:[#allocation23_spill] sm:$0xff] %v4883_v24 }
 0x3b3   :  { %6816 = vst [vmem:[#allocation36_spill] sm:$0xff] %v4970_v26  ;;  %6819 = vst [vmem:[#allocation39_spill] sm:$0xff] %v4979_v28 }
 0x3b5   :  { %2060 = vmatpush1.bf16.msra.mxu0 %v4720_v30  ;;  %2113 = vmatpush1.bf16.msra.mxu1 %v4722_v31 }
 0x3b6   :  { %2061 = vmatprep.subr.bf16.mxu0 %v4729_v33  ;;  %2114 = vmatprep.subr.bf16.mxu1 %v4731_v23 }
 0x3b7   :  { %3901 = vmatmul.mubr.msk.bf16.gmra.mrb[32].mxu0 %vm1136_vm4, %v4245_v32  ;;  %3903 = vmatmul.mubr.msk.bf16.gmra.mrb[28].mxu1 %vm1136_vm4, %v4245_v32  ;;  %v1362_v32 = vld [vmem:[%s6672_s16 + $0x248] sm:$0xff] }
 0x3b8   :  { %v4905_v36 = vcombine.low %v1362_v32, %v1366_v35  ;;  %v4907_v40 = vcombine.high %v1362_v32, %v1366_v35  ;;  %v4975_v32 = vcombine.low %v1385_v9, %v1389_v12  ;;  %v4977_v35 = vcombine.low %v1386_v13, %v1390_v29  ;;  %v1401_v12 = vld [vmem:[%s6672_s16 + $0x380] sm:$0xff]  ;;  %v1402_v29 = vld [vmem:[%s6672_s16 + $0x388] sm:$0xff] }
 0x3b9   :  { %2062 = vmatpush1.bf16.msra.mxu0 %v4747_v37  ;;  %2115 = vmatpush1.bf16.msra.mxu1 %v4749_v27  ;;  %v5003_v9 = vcombine.high %v1394_v48, %v1398_v57  ;;  %v1405_v13 = vld [vmem:[%s6672_s16 + $0x3a0] sm:$0xff]  ;;  %v5025_v57 = vcombine.low %v1402_v29, %v1406_v42  ;;  %v5027_v2 = vcombine.high %v1402_v29, %v1406_v42  ;;  %v1414_v29 = vld [vmem:[%s6672_s16 + $0x3e8] sm:$0xff] }
 0x3ba   :  { %2063 = vmatprep.subr.bf16.mxu0 %v4753_v38  ;;  %2116 = vmatprep.subr.bf16.mxu1 %v4755_v39  ;;  %6806 = vst [vmem:[#allocation26_spill] sm:$0xff] %v4905_v36  ;;  %6807 = vst [vmem:[#allocation27_spill] sm:$0xff] %v4907_v40  ;;  %v5018_v41 = vcombine.high %v1401_v12, %v1405_v13  ;;  %v5023_v48 = vcombine.low %v1401_v12, %v1405_v13  ;;  %v1410_v12 = vld [vmem:[%s6672_s16 + $0x3c8] sm:$0xff] }
 0x3bb   :  { %6817 = vst [vmem:[#allocation37_spill] sm:$0xff] %v4975_v32  ;;  %6818 = vst [vmem:[#allocation38_spill] sm:$0xff] %v4977_v35 }
 0x3bc   :  { %6823 = vst [vmem:[#allocation43_spill] sm:$0xff] %v5003_v9  ;;  %6824 = vst [vmem:[#allocation44_spill] sm:$0xff] %v5018_v41 }
 0x3bd   :  { %2064 = vmatpush1.bf16.msra.mxu0 %v4773_v43  ;;  %2117 = vmatpush1.bf16.msra.mxu1 %v4775_v44  ;;  %6825 = vst [vmem:[#allocation45_spill] sm:$0xff] %v5023_v48  ;;  %6826 = vst [vmem:[#allocation46_spill] sm:$0xff] %v5025_v57 }
 0x3be   :  { %2065 = vmatprep.subr.bf16.mxu0 %v4779_v45  ;;  %2118 = vmatprep.subr.bf16.mxu1 %v4781_v46  ;;  %6827 = vst [vmem:[#allocation47_spill] sm:$0xff] %v5027_v2 }
 0x3c1   :  { %2066 = vmatpush1.bf16.msra.mxu0 %v4797_v51  ;;  %2119 = vmatpush1.bf16.msra.mxu1 %v4799_v52 }
 0x3c2   :  { %2067 = vmatprep.subr.bf16.mxu0 %v4803_v53  ;;  %2120 = vmatprep.subr.bf16.mxu1 %v4805_v54 }
 0x3c5   :  { %2068 = vmatpush1.bf16.msra.mxu0 %v4821_v59  ;;  %2121 = vmatpush1.bf16.msra.mxu1 %v4823_v60 }
 0x3c6   :  { %2069 = vmatprep.subr.bf16.mxu0 %v4827_v61  ;;  %2122 = vmatprep.subr.bf16.mxu1 %v4829_v62 }
 0x3c9   :  { %2070 = vmatpush1.bf16.msra.mxu0 %v4845_v4  ;;  %2123 = vmatpush1.bf16.msra.mxu1 %v4847_v5 }
 0x3ca   :  { %2071 = vmatprep.subr.bf16.mxu0 %v4851_v6  ;;  %2124 = vmatprep.subr.bf16.mxu1 %v4853_v7 }
 0x3cd   :  { %2072 = vmatpush1.bf16.msra.mxu0 %v4869_v14  ;;  %2125 = vmatpush1.bf16.msra.mxu1 %v4871_v15 }
 0x3ce   :  { %2073 = vmatprep.subr.bf16.mxu0 %v4875_v16  ;;  %2126 = vmatprep.subr.bf16.mxu1 %v4877_v17  ;;  %v5100_v17 = vld [vmem:[%s6672_s16 + $0x90] sm:$0xff] }
 0x3cf   :  { %v5105_v16 = vld [vmem:[%s6672_s16 + $0xb0] sm:$0xff] }
 0x3d1   :  { %2074 = vmatpush1.bf16.msra.mxu0 %v4881_v22  ;;  %2127 = vmatpush1.bf16.msra.mxu1 %v4883_v24 }
 0x3d2   :  { %2075 = vmatprep.subr.bf16.mxu0 %v4898_v34  ;;  %2128 = vmatprep.subr.bf16.mxu1 %v4907_v40 }
 0x3d5   :  { %2076 = vmatpush1.bf16.msra.mxu0 %v4903_v25  ;;  %2129 = vmatpush1.bf16.msra.mxu1 %v4905_v36 }
 0x3d6   :  { %2077 = vmatprep.subr.bf16.mxu0 %v4922_v47  ;;  %2130 = vmatprep.subr.bf16.mxu1 %v4931_v55  ;;  %v1300_v55 = vld [vmem:[%s6672_s16 + $0x58] sm:$0xff] }
 0x3d7   :  { %v1304_v47 = vld [vmem:[%s6672_s16 + $0x78] sm:$0xff] }
 0x3d8   :  { %v5121_v5 = vcombine.low %v1300_v55, %v1304_v47 }
 0x3d9   :  { %2078 = vmatpush1.bf16.msra.mxu0 %v4927_v49  ;;  %2131 = vmatpush1.bf16.msra.mxu1 %v4929_v50 }
 0x3da   :  { %2079 = vmatprep.subr.bf16.mxu0 %v4946_v63  ;;  %2132 = vmatprep.subr.bf16.mxu1 %v4955_v8 }
 0x3dd   :  { %2080 = vmatpush1.bf16.msra.mxu0 %v4951_v1  ;;  %2133 = vmatpush1.bf16.msra.mxu1 %v4953_v3 }
 0x3de   :  { %2081 = vmatprep.subr.bf16.mxu0 %v4970_v26  ;;  %2134 = vmatprep.subr.bf16.mxu1 %v4979_v28 }
 0x3e1   :  { %2082 = vmatpush1.bf16.msra.mxu0 %v4975_v32  ;;  %2135 = vmatpush1.bf16.msra.mxu1 %v4977_v35 }
 0x3e2   :  { %2083 = vmatprep.subr.bf16.mxu0 %v4994_v56  ;;  %2136 = vmatprep.subr.bf16.mxu1 %v5003_v9  ;;  %v923_v9 = vpop.permute.xlu1 %922 }
 0x3e5   :  { %2084 = vmatpush1.bf16.msra.mxu0 %v4999_v58  ;;  %2137 = vmatpush1.bf16.msra.mxu1 %v5001_v0  ;;  %v1409_v0 = vld [vmem:[%s6672_s16 + $0x3c0] sm:$0xff] }
 0x3e6   :  { %2085 = vmatprep.subr.bf16.mxu0 %v5018_v41  ;;  %2138 = vmatprep.subr.bf16.mxu1 %v5027_v2  ;;  %v1413_v58 = vld [vmem:[%s6672_s16 + $0x3e0] sm:$0xff]  ;;  %v5051_v2 = vcombine.high %v1410_v12, %v1414_v29  ;;  %v1295_v41 = vld [vmem:[%s6672_s16 + $0x30] sm:$0xff] }
 0x3e7   :  { %v5042_v13 = vcombine.high %v1409_v0, %v1413_v58  ;;  %v5047_v42 = vcombine.low %v1409_v0, %v1413_v58  ;;  %v1292_v58 = vld [vmem:[%s6672_s16 + $0x18] sm:$0xff] }
 0x3e8   :  { %6831 = vst [vmem:[#allocation51_spill] sm:$0xff] %v5051_v2 }
 0x3e9   :  { %2086 = vmatpush1.bf16.msra.mxu0 %v5023_v48  ;;  %2139 = vmatpush1.bf16.msra.mxu1 %v5025_v57  ;;  %6828 = vst [vmem:[#allocation48_spill] sm:$0xff] %v5042_v13  ;;  %6829 = vst [vmem:[#allocation49_spill] sm:$0xff] %v5047_v42  ;;  %v5049_v48 = vcombine.low %v1410_v12, %v1414_v29  ;;  %v1291_v57 = vld [vmem:[%s6672_s16 + $0x10] sm:$0xff]  ;;  %v1296_v12 = vld [vmem:[%s6672_s16 + $0x38] sm:$0xff] }
 0x3ea   :  { %2087 = vmatprep.subr.bf16.mxu0 %v5042_v13  ;;  %2140 = vmatprep.subr.bf16.mxu1 %v5051_v2  ;;  %v5066_v0 = vcombine.high %v1291_v57, %v1295_v41  ;;  %v5071_v29 = vcombine.low %v1291_v57, %v1295_v41  ;;  %v5075_v2 = vcombine.high %v1292_v58, %v1296_v12  ;;  %v918_v13 = vpop.permute.xlu0 %917 }
 0x3eb   :  { %6830 = vst [vmem:[#allocation50_spill] sm:$0xff] %v5049_v48 }
 0x3ec   :  { %6832 = vst [vmem:[#allocation52_spill] sm:$0xff] %v5066_v0  ;;  %6833 = vst [vmem:[#allocation53_spill] sm:$0xff] %v5075_v2 }
 0x3ed   :  { %2088 = vmatpush1.bf16.msra.mxu0 %v5047_v42  ;;  %2141 = vmatpush1.bf16.msra.mxu1 %v5049_v48  ;;  %v5073_v42 = vcombine.low %v1292_v58, %v1296_v12  ;;  %v1299_v58 = vld [vmem:[%s6672_s16 + $0x50] sm:$0xff] }
 0x3ee   :  { %2163 = vmatprep.subr.bf16.mxu0 %v5066_v0  ;;  %2216 = vmatprep.subr.bf16.mxu1 %v5075_v2  ;;  %v5079_v56 = vpop.permute.xlu0 %1088  ;;  %v1303_v12 = vld [vmem:[%s6672_s16 + $0x70] sm:$0xff]  ;;  %v5087_v2 = vpop.permute.xlu1 %1093 }
 0x3ef   :  { %v5089_v49 = vcombine.high %v1299_v58, %v1303_v12  ;;  %v5119_v6 = vcombine.low %v1299_v58, %v1303_v12 }
 0x3f2   :  { %v928_v0 = vpop.permute.xlu0 %927 }
 0x472   :  { %v985_v48 = vpop.f32.mrb[20].mxu0  ;;  %v1038_v35 = vpop.f32.mrb[16].mxu1 }
 0x473   :  { %v987_v32 = vpop.f32.mrb[21].mxu0  ;;  %v1040_v28 = vpop.f32.mrb[17].mxu1  ;;  %v986_v36 = vadd.f32 %v985_v48, %v918_v13  ;;  %v1039_v25 = vadd.f32 %v1038_v35, %v918_v13 }
 0x474   :  { %v989_v26 = vpop.f32.mrb[22].mxu0  ;;  %v1042_v3 = vpop.f32.mrb[18].mxu1  ;;  %v988_v40 = vadd.f32 %v987_v32, %v918_v13  ;;  %v1041_v34 = vadd.f32 %v1040_v28, %v918_v13 }
 0x475   :  { %v991_v41 = vpop.f32.mrb[23].mxu0  ;;  %v1044_v57 = vpop.f32.mrb[19].mxu1  ;;  %v5107_v15 = vadd.f32 %v989_v26, %v923_v9  ;;  %v5109_v14 = vadd.f32 %v1042_v3, %v923_v9  ;;  %v5127_v3 = vcombine.high %v1300_v55, %v1304_v47 }
 0x476   :  { %v5111_v48 = vadd.f32 %v991_v41, %v923_v9  ;;  %v5113_v32 = vadd.f32 %v1044_v57, %v923_v9  ;;  %v5131_v9 = vcombine.high %v5100_v17, %v5105_v16  ;;  %v1057_v41 = vmax.f32 %v986_v36, 0.0 }
 0x477   :  { %v1059_v57 = vmax.f32 %v1039_v25, 0.0  ;;  %v1060_v62 = vmax.f32 %v1041_v34, 0.0  ;;  %v1061_v58 = vmax.f32 %v5107_v15, 0.0  ;;  %v1063_v12 = vmax.f32 %v5109_v14, 0.0 }
 0x47a   :  { %v995_v1 = vpop.f32.mrb[24].mxu0  ;;  %v1048_v8 = vpop.f32.mrb[20].mxu1 }
 0x47b   :  { %v997_v63 = vpop.f32.mrb[25].mxu0  ;;  %v1050_v50 = vpop.f32.mrb[21].mxu1  ;;  %v5115_v13 = vadd.f32 %v995_v1, %v928_v0  ;;  %v5117_v7 = vadd.f32 %v1048_v8, %v928_v0  ;;  %v1058_v1 = vmax.f32 %v988_v40, 0.0 }
 0x47c   :  { %v999_v24 = vpop.f32.mrb[26].mxu0  ;;  %v1052_v22 = vpop.f32.mrb[22].mxu1  ;;  %v5123_v4 = vadd.f32 %v997_v63, %v928_v0  ;;  %v5125_v26 = vadd.f32 %v1050_v50, %v928_v0  ;;  %v1062_v63 = vmax.f32 %v5111_v48, 0.0  ;;  %v1064_v50 = vmax.f32 %v5113_v32, 0.0 }
 0x47d   :  { %v1001_v35 = vpop.f32.mrb[27].mxu0  ;;  %v1054_v28 = vpop.f32.mrb[23].mxu1 }
 0x47e   :  { %v933_v8 = vpop.permute.xlu1 %932 }
 0x47f   :  { %v5139_v0 = vadd.f32 %v999_v24, %v933_v8  ;;  %v5141_v61 = vadd.f32 %v1052_v22, %v933_v8  ;;  %v5147_v60 = vadd.f32 %v1001_v35, %v933_v8  ;;  %v5149_v47 = vadd.f32 %v1054_v28, %v933_v8 }
 0x481   :  { %v1071_v43 = vmax.f32 %v5141_v61, 0.0 }
 0x482   :  { %v1177_v25 = vpop.f32.mrb[28].mxu0  ;;  %v1230_v36 = vpop.f32.mrb[24].mxu1 }
 0x483   :  { %v1178_v14 = vadd.f32 %v1177_v25, %v5079_v56  ;;  %v1231_v40 = vadd.f32 %v1230_v36, %v5079_v56  ;;  %v1179_v48 = vpop.f32.mrb[29].mxu0  ;;  %v1232_v32 = vpop.f32.mrb[25].mxu1 }
 0x484   :  { %v1180_v24 = vadd.f32 %v1179_v48, %v5079_v56  ;;  %v1233_v22 = vadd.f32 %v1232_v32, %v5079_v56  ;;  %v1181_v55 = vpop.f32.mrb[30].mxu0  ;;  %v1234_v59 = vpop.f32.mrb[26].mxu1 }
 0x485   :  { %v1249_v54 = vmax.f32 %v1178_v14, 0.0  ;;  %v1251_v34 = vmax.f32 %v1231_v40, 0.0  ;;  %v1182_v15 = vadd.f32 %v1181_v55, %v5087_v2  ;;  %v1235_v25 = vadd.f32 %v1234_v59, %v5087_v2  ;;  %v1183_v53 = vpop.f32.mrb[31].mxu0  ;;  %v1236_v36 = vpop.f32.mrb[27].mxu1 }
 0x486   :  { %v1250_v52 = vmax.f32 %v1180_v24, 0.0  ;;  %v1252_v51 = vmax.f32 %v1233_v22, 0.0  ;;  %v1184_v35 = vadd.f32 %v1183_v53, %v5087_v2  ;;  %v1237_v28 = vadd.f32 %v1236_v36, %v5087_v2  ;;  %v1104_v44 = vpop.permute.xlu1 %1103  ;;  %v1099_v55 = vpop.permute.xlu0 %1098 }
 0x487   :  { %v1265_v8 = vadd.f32 %v1249_v54, %v1057_v41  ;;  %v1267_v48 = vadd.f32 %v1251_v34, %v1059_v57  ;;  %v1253_v46 = vmax.f32 %v1182_v15, 0.0  ;;  %v1255_v56 = vmax.f32 %v1235_v25, 0.0 }
 0x488   :  { %v1266_v32 = vadd.f32 %v1250_v52, %v1058_v1  ;;  %v1268_v45 = vadd.f32 %v1252_v51, %v1060_v62  ;;  %v1254_v14 = vmax.f32 %v1184_v35, 0.0  ;;  %v1256_v40 = vmax.f32 %v1237_v28, 0.0 }
 0x489   :  { %v1069_v59 = vmax.f32 %v5139_v0, 0.0  ;;  %v1269_v24 = vadd.f32 %v1253_v46, %v1061_v58  ;;  %v1271_v22 = vadd.f32 %v1255_v56, %v1063_v12  ;;  %v1070_v53 = vmax.f32 %v5147_v60, 0.0 }
 0x48a   :  { %v1072_v2 = vmax.f32 %v5149_v47, 0.0  ;;  %v1270_v54 = vadd.f32 %v1254_v14, %v1062_v63  ;;  %v1272_v41 = vadd.f32 %v1256_v40, %v1064_v50  ;;  %v1187_v57 = vpop.f32.mrb[32].mxu0  ;;  %v1240_v34 = vpop.f32.mrb[28].mxu1  ;;  %v6834_v40 = vmax.f32 %v5115_v13, 0.0 }
 0x48b   :  { %v5161_v52 = vpack.c.bf16 %v1269_v24, %v1265_v8  ;;  %v5163_v51 = vpack.c.bf16 %v1271_v22, %v1267_v48  ;;  %v1188_v62 = vadd.f32 %v1187_v57, %v1099_v55  ;;  %v1241_v1 = vadd.f32 %v1240_v34, %v1099_v55  ;;  %v1189_v15 = vpop.f32.mrb[33].mxu0  ;;  %v1242_v0 = vpop.f32.mrb[29].mxu1 }
 0x48c   :  { %v5165_v25 = vpack.c.bf16 %v1270_v54, %v1266_v32  ;;  %v5167_v46 = vpack.c.bf16 %v1272_v41, %v1268_v45  ;;  %v1190_v61 = vadd.f32 %v1189_v15, %v1099_v55  ;;  %v1243_v60 = vadd.f32 %v1242_v0, %v1099_v55  ;;  %v1191_v58 = vpop.f32.mrb[34].mxu0  ;;  %v1244_v12 = vpop.f32.mrb[30].mxu1  ;;  %v1308_v45 = vld [vmem:[%s6672_s16 + $0x98] sm:$0xff] }
 0x48d   :  { %v1257_v63 = vmax.f32 %v1188_v62, 0.0  ;;  %v1259_v50 = vmax.f32 %v1241_v1, 0.0  ;;  %v1192_v47 = vadd.f32 %v1191_v58, %v1104_v44  ;;  %v1245_v36 = vadd.f32 %v1244_v12, %v1104_v44  ;;  %v1193_v35 = vpop.f32.mrb[35].mxu0  ;;  %v1246_v28 = vpop.f32.mrb[31].mxu1  ;;  %v1312_v32 = vld [vmem:[%s6672_s16 + $0xb8] sm:$0xff] }
 0x48e   :  { %v1258_v8 = vmax.f32 %v1190_v61, 0.0  ;;  %v1260_v48 = vmax.f32 %v1243_v60, 0.0  ;;  %v1194_v56 = vadd.f32 %v1193_v35, %v1104_v44  ;;  %v1247_v14 = vadd.f32 %v1246_v28, %v1104_v44  ;;  %2089 = vmatprep.mubr.bf16.mxu0 %v5165_v25  ;;  %2142 = vmatprep.mubr.bf16.mxu1 %v5165_v25  ;;  %v1324_v35 = vld [vmem:[%s6672_s16 + $0x118] sm:$0xff] }
 0x48f   :  { %v1273_v55 = vadd.f32 %v1257_v63, %v6834_v40  ;;  %v6835_v24 = vmax.f32 %v5117_v7, 0.0  ;;  %v1261_v54 = vmax.f32 %v1192_v47, 0.0  ;;  %v1263_v44 = vmax.f32 %v1245_v36, 0.0  ;;  %2090 = vmatmul.mubr.bf16.vlgmr.msra.gmra.mrb[36].mxu0 %v5161_v52  ;;  %2143 = vmatmul.mubr.bf16.vlgmr.msra.gmra.mrb[32].mxu1 %v5161_v52  ;;  %v1327_v36 = vld [vmem:[%s6672_s16 + $0x130] sm:$0xff]  ;;  %v1328_v28 = vld [vmem:[%s6672_s16 + $0x138] sm:$0xff] }
 0x490   :  { %v6836_v41 = vmax.f32 %v5123_v4, 0.0  ;;  %v6837_v34 = vmax.f32 %v5125_v26, 0.0  ;;  %v1262_v1 = vmax.f32 %v1194_v56, 0.0  ;;  %v1264_v15 = vmax.f32 %v1247_v14, 0.0  ;;  %2164 = vmatpush1.bf16.msra.mxu0 %v5071_v29  ;;  %2217 = vmatpush1.bf16.msra.mxu1 %v5073_v42  ;;  %v1315_v26 = vld [vmem:[%s6672_s16 + $0xd0] sm:$0xff]  ;;  %v1336_v40 = vld [vmem:[%s6672_s16 + $0x178] sm:$0xff] }
 0x491   :  { %v1275_v22 = vadd.f32 %v1259_v50, %v6835_v24  ;;  %v1277_v7 = vadd.f32 %v1261_v54, %v1069_v59  ;;  %v1279_v13 = vadd.f32 %v1263_v44, %v1071_v43  ;;  %2165 = vmatprep.subr.bf16.mxu0 %v5089_v49  ;;  %2218 = vmatprep.subr.bf16.mxu1 %v5127_v3  ;;  %v1319_v43 = vld [vmem:[%s6672_s16 + $0xf0] sm:$0xff] }
 0x492   :  { %v1274_v57 = vadd.f32 %v1258_v8, %v6836_v41  ;;  %v1276_v62 = vadd.f32 %v1260_v48, %v6837_v34  ;;  %v5191_v0 = vcombine.high %v1308_v45, %v1312_v32  ;;  %v1278_v61 = vadd.f32 %v1262_v1, %v1070_v53  ;;  %v1316_v53 = vld [vmem:[%s6672_s16 + $0xd8] sm:$0xff]  ;;  %v1339_v44 = vld [vmem:[%s6672_s16 + $0x190] sm:$0xff] }
 0x493   :  { %v1280_v4 = vadd.f32 %v1264_v15, %v1072_v2  ;;  %v5196_v60 = vpack.c.bf16 %v1277_v7, %v1273_v55  ;;  %v5198_v58 = vpack.c.bf16 %v1279_v13, %v1275_v22  ;;  %v5202_v59 = vcombine.low %v5100_v17, %v5105_v16  ;;  %v1320_v2 = vld [vmem:[%s6672_s16 + $0xf8] sm:$0xff]  ;;  %v1323_v17 = vld [vmem:[%s6672_s16 + $0x110] sm:$0xff] }
 0x494   :  { %v5213_v12 = vpack.c.bf16 %v1278_v61, %v1274_v57  ;;  %2166 = vmatpush1.bf16.msra.mxu0 %v5119_v6  ;;  %2219 = vmatpush1.bf16.msra.mxu1 %v5121_v5  ;;  %v5219_v16 = vcombine.low %v1308_v45, %v1312_v32  ;;  %v5228_v50 = vcombine.high %v1315_v26, %v1319_v43  ;;  %v1331_v45 = vld [vmem:[%s6672_s16 + $0x150] sm:$0xff]  ;;  %v1340_v57 = vld [vmem:[%s6672_s16 + $0x198] sm:$0xff] }
 0x495   :  { %v5215_v63 = vpack.c.bf16 %v1280_v4, %v1276_v62  ;;  %2167 = vmatprep.subr.bf16.mxu0 %v5131_v9  ;;  %2220 = vmatprep.subr.bf16.mxu1 %v5191_v0  ;;  %v5230_v47 = vcombine.high %v1316_v53, %v1320_v2  ;;  %v5245_v8 = vcombine.low %v1315_v26, %v1319_v43  ;;  %v1335_v32 = vld [vmem:[%s6672_s16 + $0x170] sm:$0xff]  ;;  %v1344_v34 = vld [vmem:[%s6672_s16 + $0x1b8] sm:$0xff] }
 0x496   :  { %2099 = vmatprep.mubr.bf16.mxu0 %v5213_v12  ;;  %2152 = vmatprep.mubr.bf16.mxu1 %v5213_v12  ;;  %v5247_v48 = vcombine.low %v1316_v53, %v1320_v2  ;;  %v5251_v56 = vcombine.high %v1323_v17, %v1327_v36  ;;  %v5253_v14 = vcombine.high %v1324_v35, %v1328_v28  ;;  %v1343_v41 = vld [vmem:[%s6672_s16 + $0x1b0] sm:$0xff]  ;;  %v1348_v4 = vld [vmem:[%s6672_s16 + $0x1d8] sm:$0xff] }
 0x497   :  { %2100 = vmatmul.mubr.bf16.gmra.mrb[40].mxu0 %v5196_v60  ;;  %2153 = vmatmul.mubr.bf16.gmra.mrb[36].mxu1 %v5196_v60  ;;  %v5271_v55 = vcombine.low %v1323_v17, %v1327_v36  ;;  %v5273_v24 = vcombine.low %v1324_v35, %v1328_v28  ;;  %v5277_v22 = vcombine.high %v1331_v45, %v1335_v32  ;;  %v1347_v13 = vld [vmem:[%s6672_s16 + $0x1d0] sm:$0xff]  ;;  %v1352_v26 = vld [vmem:[%s6672_s16 + $0x1f8] sm:$0xff] }
 0x498   :  { %2168 = vmatpush1.bf16.msra.mxu0 %v5202_v59  ;;  %2221 = vmatpush1.bf16.msra.mxu1 %v5219_v16  ;;  %v5295_v62 = vcombine.low %v1331_v45, %v1335_v32  ;;  %v5301_v15 = vcombine.high %v1339_v44, %v1343_v41  ;;  %v5303_v7 = vcombine.high %v1340_v57, %v1344_v34  ;;  %v1351_v61 = vld [vmem:[%s6672_s16 + $0x1f0] sm:$0xff]  ;;  %v1356_v28 = vld [vmem:[%s6672_s16 + $0x218] sm:$0xff] }
 0x499   :  { %2195 = vmatprep.mubr.bf16.mxu0 %v5165_v25  ;;  %2248 = vmatprep.mubr.bf16.mxu1 %v5165_v25  ;;  %v1332_v25 = vld [vmem:[%s6672_s16 + $0x158] sm:$0xff]  ;;  %v5319_v43 = vcombine.low %v1339_v44, %v1343_v41  ;;  %v5321_v53 = vcombine.low %v1340_v57, %v1344_v34  ;;  %v5325_v2 = vcombine.high %v1347_v13, %v1351_v61  ;;  %v1355_v36 = vld [vmem:[%s6672_s16 + $0x210] sm:$0xff] }
 0x49a   :  { %2169 = vmatprep.subr.bf16.mxu0 %v5228_v50  ;;  %2222 = vmatprep.subr.bf16.mxu1 %v5230_v47  ;;  %v5279_v54 = vcombine.high %v1332_v25, %v1336_v40  ;;  %v5297_v1 = vcombine.low %v1332_v25, %v1336_v40  ;;  %v5327_v17 = vcombine.high %v1348_v4, %v1352_v26  ;;  %v1359_v35 = vld [vmem:[%s6672_s16 + $0x230] sm:$0xff]  ;;  %v1360_v45 = vld [vmem:[%s6672_s16 + $0x238] sm:$0xff] }
 0x49b   :  { %6838 = vst [vmem:[#allocation54_spill] sm:$0xff] %v5325_v2  ;;  %v5343_v32 = vcombine.low %v1347_v13, %v1351_v61  ;;  %v5345_v25 = vcombine.low %v1348_v4, %v1352_v26  ;;  %v5349_v40 = vcombine.high %v1355_v36, %v1359_v35  ;;  %v5351_v44 = vcombine.high %v1356_v28, %v1360_v45  ;;  %v1363_v41 = vld [vmem:[%s6672_s16 + $0x250] sm:$0xff]  ;;  %v1364_v34 = vld [vmem:[%s6672_s16 + $0x258] sm:$0xff] }
 0x49c   :  { %2170 = vmatpush1.bf16.msra.mxu0 %v5245_v8  ;;  %2223 = vmatpush1.bf16.msra.mxu1 %v5247_v48  ;;  %6839 = vst [vmem:[#allocation55_spill] sm:$0xff] %v5327_v17  ;;  %v1367_v57 = vld [vmem:[%s6672_s16 + $0x270] sm:$0xff]  ;;  %v1368_v13 = vld [vmem:[%s6672_s16 + $0x278] sm:$0xff]  ;;  %v5367_v61 = vcombine.low %v1355_v36, %v1359_v35  ;;  %v5369_v4 = vcombine.low %v1356_v28, %v1360_v45 }
 0x49d   :  { %2171 = vmatprep.subr.bf16.mxu0 %v5251_v56  ;;  %2224 = vmatprep.subr.bf16.mxu1 %v5253_v14  ;;  %6840 = vst [vmem:[#allocation56_spill] sm:$0xff] %v5343_v32  ;;  %6841 = vst [vmem:[#allocation57_spill] sm:$0xff] %v5345_v25  ;;  %v5373_v26 = vcombine.high %v1363_v41, %v1367_v57  ;;  %v1372_v36 = vld [vmem:[%s6672_s16 + $0x298] sm:$0xff]  ;;  %v5391_v28 = vcombine.low %v1363_v41, %v1367_v57 }
 0x49e   :  { %6842 = vst [vmem:[#allocation58_spill] sm:$0xff] %v5349_v40  ;;  %6843 = vst [vmem:[#allocation59_spill] sm:$0xff] %v5351_v44  ;;  %v1376_v35 = vld [vmem:[%s6672_s16 + $0x2b8] sm:$0xff]  ;;  %v5393_v45 = vcombine.low %v1364_v34, %v1368_v13 }
 0x49f   :  { %6844 = vst [vmem:[#allocation60_spill] sm:$0xff] %v5367_v61  ;;  %6845 = vst [vmem:[#allocation61_spill] sm:$0xff] %v5369_v4  ;;  %v1380_v41 = vld [vmem:[%s6672_s16 + $0x2d8] sm:$0xff] }
 0x4a0   :  { %2172 = vmatpush1.bf16.msra.mxu0 %v5271_v55  ;;  %2225 = vmatpush1.bf16.msra.mxu1 %v5273_v24  ;;  %6846 = vst [vmem:[#allocation62_spill] sm:$0xff] %v5373_v26  ;;  %6848 = vst [vmem:[#allocation64_spill] sm:$0xff] %v5391_v28  ;;  %v1384_v57 = vld [vmem:[%s6672_s16 + $0x2f8] sm:$0xff] }
 0x4a1   :  { %2173 = vmatprep.subr.bf16.mxu0 %v5277_v22  ;;  %2226 = vmatprep.subr.bf16.mxu1 %v5279_v54  ;;  %6849 = vst [vmem:[#allocation65_spill] sm:$0xff] %v5393_v45 }
 0x4a4   :  { %2174 = vmatpush1.bf16.msra.mxu0 %v5295_v62  ;;  %2227 = vmatpush1.bf16.msra.mxu1 %v5297_v1 }
 0x4a5   :  { %2175 = vmatprep.subr.bf16.mxu0 %v5301_v15  ;;  %2228 = vmatprep.subr.bf16.mxu1 %v5303_v7 }
 0x4a8   :  { %2176 = vmatpush1.bf16.msra.mxu0 %v5319_v43  ;;  %2229 = vmatpush1.bf16.msra.mxu1 %v5321_v53 }
 0x4a9   :  { %2177 = vmatprep.subr.bf16.mxu0 %v5325_v2  ;;  %2230 = vmatprep.subr.bf16.mxu1 %v5327_v17  ;;  %v5375_v17 = vcombine.high %v1364_v34, %v1368_v13  ;;  %v1371_v2 = vld [vmem:[%s6672_s16 + $0x290] sm:$0xff]  ;;  %v5417_v13 = vcombine.low %v1372_v36, %v1376_v35 }
 0x4ab   :  { %6847 = vst [vmem:[#allocation63_spill] sm:$0xff] %v5375_v17  ;;  %6853 = vst [vmem:[#allocation69_spill] sm:$0xff] %v5417_v13 }
 0x4ac   :  { %2178 = vmatpush1.bf16.msra.mxu0 %v5343_v32  ;;  %2231 = vmatpush1.bf16.msra.mxu1 %v5345_v25  ;;  %v1375_v25 = vld [vmem:[%s6672_s16 + $0x2b0] sm:$0xff] }
 0x4ad   :  { %2179 = vmatprep.subr.bf16.mxu0 %v5349_v40  ;;  %2232 = vmatprep.subr.bf16.mxu1 %v5351_v44  ;;  %v5397_v44 = vcombine.high %v1371_v2, %v1375_v25  ;;  %v5399_v40 = vcombine.high %v1372_v36, %v1376_v35  ;;  %v1379_v32 = vld [vmem:[%s6672_s16 + $0x2d0] sm:$0xff]  ;;  %v5415_v34 = vcombine.low %v1371_v2, %v1375_v25  ;;  %v1388_v2 = vld [vmem:[%s6672_s16 + $0x318] sm:$0xff] }
 0x4ae   :  { %v1392_v25 = vld [vmem:[%s6672_s16 + $0x338] sm:$0xff]  ;;  %v5441_v35 = vcombine.low %v1380_v41, %v1384_v57 }
 0x4af   :  { %6850 = vst [vmem:[#allocation66_spill] sm:$0xff] %v5397_v44  ;;  %6851 = vst [vmem:[#allocation67_spill] sm:$0xff] %v5399_v40 }
 0x4b0   :  { %2180 = vmatpush1.bf16.msra.mxu0 %v5367_v61  ;;  %2233 = vmatpush1.bf16.msra.mxu1 %v5369_v4  ;;  %v1383_v4 = vld [vmem:[%s6672_s16 + $0x2f0] sm:$0xff]  ;;  %6852 = vst [vmem:[#allocation68_spill] sm:$0xff] %v5415_v34  ;;  %6857 = vst [vmem:[#allocation73_spill] sm:$0xff] %v5441_v35 }
 0x4b1   :  { %2181 = vmatprep.subr.bf16.mxu0 %v5373_v26  ;;  %2234 = vmatprep.subr.bf16.mxu1 %v5375_v17  ;;  %v5421_v17 = vcombine.high %v1379_v32, %v1383_v4  ;;  %v5423_v26 = vcombine.high %v1380_v41, %v1384_v57  ;;  %v1387_v61 = vld [vmem:[%s6672_s16 + $0x310] sm:$0xff]  ;;  %v5439_v36 = vcombine.low %v1379_v32, %v1383_v4  ;;  %v1396_v32 = vld [vmem:[%s6672_s16 + $0x358] sm:$0xff] }
 0x4b2   :  { %v1400_v4 = vld [vmem:[%s6672_s16 + $0x378] sm:$0xff]  ;;  %v5465_v57 = vcombine.low %v1388_v2, %v1392_v25 }
 0x4b3   :  { %6854 = vst [vmem:[#allocation70_spill] sm:$0xff] %v5421_v17  ;;  %6855 = vst [vmem:[#allocation71_spill] sm:$0xff] %v5423_v26 }
 0x4b4   :  { %2182 = vmatpush1.bf16.msra.mxu0 %v5391_v28  ;;  %2235 = vmatpush1.bf16.msra.mxu1 %v5393_v45  ;;  %v1391_v45 = vld [vmem:[%s6672_s16 + $0x330] sm:$0xff]  ;;  %6856 = vst [vmem:[#allocation72_spill] sm:$0xff] %v5439_v36  ;;  %6861 = vst [vmem:[#allocation77_spill] sm:$0xff] %v5465_v57 }
 0x4b5   :  { %2183 = vmatprep.subr.bf16.mxu0 %v5397_v44  ;;  %2236 = vmatprep.subr.bf16.mxu1 %v5399_v40  ;;  %v5445_v40 = vcombine.high %v1387_v61, %v1391_v45  ;;  %v5447_v44 = vcombine.high %v1388_v2, %v1392_v25  ;;  %v1395_v28 = vld [vmem:[%s6672_s16 + $0x350] sm:$0xff]  ;;  %v5463_v41 = vcombine.low %v1387_v61, %v1391_v45  ;;  %v1404_v61 = vld [vmem:[%s6672_s16 + $0x398] sm:$0xff] }
 0x4b6   :  { %v1408_v45 = vld [vmem:[%s6672_s16 + $0x3b8] sm:$0xff]  ;;  %v5489_v25 = vcombine.low %v1396_v32, %v1400_v4 }
 0x4b7   :  { %6858 = vst [vmem:[#allocation74_spill] sm:$0xff] %v5445_v40  ;;  %6859 = vst [vmem:[#allocation75_spill] sm:$0xff] %v5447_v44 }
 0x4b8   :  { %2184 = vmatpush1.bf16.msra.mxu0 %v5415_v34  ;;  %2237 = vmatpush1.bf16.msra.mxu1 %v5417_v13  ;;  %v1399_v13 = vld [vmem:[%s6672_s16 + $0x370] sm:$0xff]  ;;  %6860 = vst [vmem:[#allocation76_spill] sm:$0xff] %v5463_v41 }
 0x4b9   :  { %2185 = vmatprep.subr.bf16.mxu0 %v5421_v17  ;;  %2238 = vmatprep.subr.bf16.mxu1 %v5423_v26  ;;  %v5469_v26 = vcombine.high %v1395_v28, %v1399_v13  ;;  %v5471_v17 = vcombine.high %v1396_v32, %v1400_v4  ;;  %v1403_v34 = vld [vmem:[%s6672_s16 + $0x390] sm:$0xff]  ;;  %v5487_v2 = vcombine.low %v1395_v28, %v1399_v13  ;;  %v1412_v28 = vld [vmem:[%s6672_s16 + $0x3d8] sm:$0xff] }
 0x4ba   :  { %v1416_v13 = vld [vmem:[%s6672_s16 + $0x3f8] sm:$0xff]  ;;  %v5513_v4 = vcombine.low %v1404_v61, %v1408_v45 }
 0x4bb   :  { %6862 = vst [vmem:[#allocation78_spill] sm:$0xff] %v5469_v26  ;;  %6863 = vst [vmem:[#allocation79_spill] sm:$0xff] %v5471_v17 }
 0x4bc   :  { %2186 = vmatpush1.bf16.msra.mxu0 %v5439_v36  ;;  %2239 = vmatpush1.bf16.msra.mxu1 %v5441_v35  ;;  %v1407_v35 = vld [vmem:[%s6672_s16 + $0x3b0] sm:$0xff]  ;;  %6864 = vst [vmem:[#allocation80_spill] sm:$0xff] %v5487_v2 }
 0x4bd   :  { %2187 = vmatprep.subr.bf16.mxu0 %v5445_v40  ;;  %2240 = vmatprep.subr.bf16.mxu1 %v5447_v44  ;;  %v5493_v44 = vcombine.high %v1403_v34, %v1407_v35  ;;  %v5495_v40 = vcombine.high %v1404_v61, %v1408_v45  ;;  %v1411_v36 = vld [vmem:[%s6672_s16 + $0x3d0] sm:$0xff]  ;;  %v5511_v32 = vcombine.low %v1403_v34, %v1407_v35  ;;  %v6882_v34 = vld [vmem:[#allocation19_spill] sm:$0xff]  ;;  %v6884_v35 = vld [vmem:[#allocation21_spill] sm:$0xff] }
 0x4be   :  { %v6886_v61 = vld [vmem:[#allocation23_spill] sm:$0xff]  ;;  %v6887_v45 = vld [vmem:[#allocation24_spill] sm:$0xff] }
 0x4c0   :  { %2188 = vmatpush1.bf16.msra.mxu0 %v5463_v41  ;;  %2241 = vmatpush1.bf16.msra.mxu1 %v5465_v57  ;;  %v1415_v57 = vld [vmem:[%s6672_s16 + $0x3f0] sm:$0xff] }
 0x4c1   :  { %2189 = vmatprep.subr.bf16.mxu0 %v5469_v26  ;;  %2242 = vmatprep.subr.bf16.mxu1 %v5471_v17  ;;  %v5517_v17 = vcombine.high %v1411_v36, %v1415_v57  ;;  %v5519_v26 = vcombine.high %v1412_v28, %v1416_v13  ;;  %v5523_v41 = vcombine.low %v1411_v36, %v1415_v57  ;;  %v6883_v36 = vld [vmem:[#allocation20_spill] sm:$0xff]  ;;  %v6885_v57 = vld [vmem:[#allocation22_spill] sm:$0xff] }
 0x4c4   :  { %2190 = vmatpush1.bf16.msra.mxu0 %v5487_v2  ;;  %2243 = vmatpush1.bf16.msra.mxu1 %v5489_v25  ;;  %v5525_v2 = vcombine.low %v1412_v28, %v1416_v13  ;;  %v6888_v28 = vld [vmem:[#allocation27_spill] sm:$0xff]  ;;  %v6889_v13 = vld [vmem:[#allocation25_spill] sm:$0xff] }
 0x4c5   :  { %2191 = vmatprep.subr.bf16.mxu0 %v5493_v44  ;;  %2244 = vmatprep.subr.bf16.mxu1 %v5495_v40 }
 0x4c8   :  { %2192 = vmatpush1.bf16.msra.mxu0 %v5511_v32  ;;  %2245 = vmatpush1.bf16.msra.mxu1 %v5513_v4 }
 0x4c9   :  { %2193 = vmatprep.subr.bf16.mxu0 %v5517_v17  ;;  %2246 = vmatprep.subr.bf16.mxu1 %v5519_v26 }
 0x4cc   :  { %2194 = vmatpush1.bf16.msra.mxu0 %v5523_v41  ;;  %2247 = vmatpush1.bf16.msra.mxu1 %v5525_v2 }
 0x4cd   :  { %2285 = vmatprep.subr.bf16.mxu0 %v4662_v10  ;;  %2338 = vmatprep.subr.bf16.mxu1 %v4664_v11  ;;  %v6865_v10 = vld [vmem:[#allocation2_spill] sm:$0xff]  ;;  %v6866_v11 = vld [vmem:[#allocation3_spill] sm:$0xff] }
 0x4cf   :  { %2196 = vmatmul.mubr.bf16.vlgmr.msra.gmra.mrb[44].mxu0 %v5161_v52  ;;  %2249 = vmatmul.mubr.bf16.vlgmr.msra.gmra.mrb[40].mxu1 %v5161_v52  ;;  %v6879_v52 = vld [vmem:[#allocation16_spill] sm:$0xff] }
 0x4d0   :  { %2205 = vmatprep.mubr.bf16.mxu0 %v5213_v12  ;;  %2258 = vmatprep.mubr.bf16.mxu1 %v5213_v12  ;;  %v6881_v12 = vld [vmem:[#allocation18_spill] sm:$0xff] }
 0x4d1   :  { %2286 = vmatpush1.bf16.msra.mxu0 %v4694_v18  ;;  %2339 = vmatpush1.bf16.msra.mxu1 %v4696_v19  ;;  %v6867_v18 = vld [vmem:[#allocation4_spill] sm:$0xff]  ;;  %v6868_v19 = vld [vmem:[#allocation5_spill] sm:$0xff] }
 0x4d2   :  { %2287 = vmatprep.subr.bf16.mxu0 %v4698_v20  ;;  %2340 = vmatprep.subr.bf16.mxu1 %v4700_v21  ;;  %v6869_v20 = vld [vmem:[#allocation6_spill] sm:$0xff]  ;;  %v6870_v21 = vld [vmem:[#allocation7_spill] sm:$0xff] }
 0x4d5   :  { %2288 = vmatpush1.bf16.msra.mxu0 %v4720_v30  ;;  %2341 = vmatpush1.bf16.msra.mxu1 %v4722_v31  ;;  %v6871_v30 = vld [vmem:[#allocation8_spill] sm:$0xff]  ;;  %v6872_v31 = vld [vmem:[#allocation9_spill] sm:$0xff] }
 0x4d6   :  { %2289 = vmatprep.subr.bf16.mxu0 %v4729_v33  ;;  %2342 = vmatprep.subr.bf16.mxu1 %v4731_v23  ;;  %v6873_v33 = vld [vmem:[#allocation10_spill] sm:$0xff]  ;;  %v6874_v23 = vld [vmem:[#allocation11_spill] sm:$0xff] }
 0x4d7   :  { %2206 = vmatmul.mubr.bf16.gmra.mrb[48].mxu0 %v5196_v60  ;;  %2259 = vmatmul.mubr.bf16.gmra.mrb[44].mxu1 %v5196_v60  ;;  %v6880_v60 = vld [vmem:[#allocation17_spill] sm:$0xff] }
 0x4d8   :  { %2317 = vmatprep.mubr.bf16.mxu0 %v5167_v46  ;;  %2370 = vmatprep.mubr.bf16.mxu1 %v5167_v46 }
 0x4d9   :  { %2290 = vmatpush1.bf16.msra.mxu0 %v4747_v37  ;;  %2343 = vmatpush1.bf16.msra.mxu1 %v4749_v27  ;;  %v6875_v37 = vld [vmem:[#allocation12_spill] sm:$0xff]  ;;  %v6876_v27 = vld [vmem:[#allocation13_spill] sm:$0xff] }
 0x4da   :  { %2291 = vmatprep.subr.bf16.mxu0 %v4753_v38  ;;  %2344 = vmatprep.subr.bf16.mxu1 %v4755_v39  ;;  %v6877_v38 = vld [vmem:[#allocation14_spill] sm:$0xff]  ;;  %v6878_v39 = vld [vmem:[#allocation15_spill] sm:$0xff] }
 0x4dd   :  { %2292 = vmatpush1.bf16.msra.mxu0 %v6865_v10  ;;  %2345 = vmatpush1.bf16.msra.mxu1 %v6866_v11  ;;  %v6890_v10 = vld [vmem:[#allocation26_spill] sm:$0xff]  ;;  %v6891_v11 = vld [vmem:[#allocation28_spill] sm:$0xff] }
 0x4de   :  { %2293 = vmatprep.subr.bf16.mxu0 %v6867_v18  ;;  %2346 = vmatprep.subr.bf16.mxu1 %v6868_v19  ;;  %v6892_v18 = vld [vmem:[#allocation31_spill] sm:$0xff]  ;;  %v6893_v19 = vld [vmem:[#allocation29_spill] sm:$0xff] }
 0x4e1   :  { %2294 = vmatpush1.bf16.msra.mxu0 %v6869_v20  ;;  %2347 = vmatpush1.bf16.msra.mxu1 %v6870_v21  ;;  %v6894_v20 = vld [vmem:[#allocation30_spill] sm:$0xff]  ;;  %v6895_v21 = vld [vmem:[#allocation32_spill] sm:$0xff] }
 0x4e2   :  { %2295 = vmatprep.subr.bf16.mxu0 %v6871_v30  ;;  %2348 = vmatprep.subr.bf16.mxu1 %v6872_v31  ;;  %v6896_v30 = vld [vmem:[#allocation35_spill] sm:$0xff]  ;;  %v6897_v31 = vld [vmem:[#allocation33_spill] sm:$0xff] }
 0x4e5   :  { %2296 = vmatpush1.bf16.msra.mxu0 %v6873_v33  ;;  %2349 = vmatpush1.bf16.msra.mxu1 %v6874_v23  ;;  %v6898_v33 = vld [vmem:[#allocation34_spill] sm:$0xff]  ;;  %v6899_v23 = vld [vmem:[#allocation36_spill] sm:$0xff] }
 0x4e6   :  { %2297 = vmatprep.subr.bf16.mxu0 %v6875_v37  ;;  %2350 = vmatprep.subr.bf16.mxu1 %v6876_v27  ;;  %v6900_v37 = vld [vmem:[#allocation39_spill] sm:$0xff]  ;;  %v6901_v27 = vld [vmem:[#allocation37_spill] sm:$0xff] }
 0x4e9   :  { %2298 = vmatpush1.bf16.msra.mxu0 %v6877_v38  ;;  %2351 = vmatpush1.bf16.msra.mxu1 %v6878_v39  ;;  %v6902_v38 = vld [vmem:[#allocation38_spill] sm:$0xff]  ;;  %v6903_v39 = vld [vmem:[#allocation40_spill] sm:$0xff] }
 0x4ea   :  { %2299 = vmatprep.subr.bf16.mxu0 %v6879_v52  ;;  %2352 = vmatprep.subr.bf16.mxu1 %v6880_v60  ;;  %v6904_v52 = vld [vmem:[#allocation43_spill] sm:$0xff]  ;;  %v6905_v60 = vld [vmem:[#allocation41_spill] sm:$0xff] }
 0x4ed   :  { %2300 = vmatpush1.bf16.msra.mxu0 %v6881_v12  ;;  %2353 = vmatpush1.bf16.msra.mxu1 %v6882_v34  ;;  %v6906_v12 = vld [vmem:[#allocation42_spill] sm:$0xff]  ;;  %v6907_v34 = vld [vmem:[#allocation44_spill] sm:$0xff] }
 0x4ee   :  { %2301 = vmatprep.subr.bf16.mxu0 %v6883_v36  ;;  %2354 = vmatprep.subr.bf16.mxu1 %v6884_v35  ;;  %v6908_v36 = vld [vmem:[#allocation47_spill] sm:$0xff]  ;;  %v6909_v35 = vld [vmem:[#allocation45_spill] sm:$0xff] }
 0x4f1   :  { %2302 = vmatpush1.bf16.msra.mxu0 %v6885_v57  ;;  %2355 = vmatpush1.bf16.msra.mxu1 %v6886_v61  ;;  %v6910_v57 = vld [vmem:[#allocation46_spill] sm:$0xff]  ;;  %v6911_v61 = vld [vmem:[#allocation48_spill] sm:$0xff] }
 0x4f2   :  { %2303 = vmatprep.subr.bf16.mxu0 %v6887_v45  ;;  %2356 = vmatprep.subr.bf16.mxu1 %v6888_v28  ;;  %v6912_v45 = vld [vmem:[#allocation51_spill] sm:$0xff]  ;;  %v6913_v28 = vld [vmem:[#allocation49_spill] sm:$0xff] }
 0x4f5   :  { %2304 = vmatpush1.bf16.msra.mxu0 %v6889_v13  ;;  %2357 = vmatpush1.bf16.msra.mxu1 %v6890_v10  ;;  %v6914_v13 = vld [vmem:[#allocation50_spill] sm:$0xff]  ;;  %v6915_v10 = vld [vmem:[#allocation52_spill] sm:$0xff] }
 0x4f6   :  { %2305 = vmatprep.subr.bf16.mxu0 %v6891_v11  ;;  %2358 = vmatprep.subr.bf16.mxu1 %v6892_v18  ;;  %v6916_v11 = vld [vmem:[#allocation53_spill] sm:$0xff] }
 0x4f9   :  { %2306 = vmatpush1.bf16.msra.mxu0 %v6893_v19  ;;  %2359 = vmatpush1.bf16.msra.mxu1 %v6894_v20 }
 0x4fa   :  { %2307 = vmatprep.subr.bf16.mxu0 %v6895_v21  ;;  %2360 = vmatprep.subr.bf16.mxu1 %v6896_v30 }
 0x4fd   :  { %2308 = vmatpush1.bf16.msra.mxu0 %v6897_v31  ;;  %2361 = vmatpush1.bf16.msra.mxu1 %v6898_v33 }
 0x4fe   :  { %2309 = vmatprep.subr.bf16.mxu0 %v6899_v23  ;;  %2362 = vmatprep.subr.bf16.mxu1 %v6900_v37 }
 0x501   :  { %2310 = vmatpush1.bf16.msra.mxu0 %v6901_v27  ;;  %2363 = vmatpush1.bf16.msra.mxu1 %v6902_v38 }
 0x502   :  { %2311 = vmatprep.subr.bf16.mxu0 %v6903_v39  ;;  %2364 = vmatprep.subr.bf16.mxu1 %v6904_v52 }
 0x505   :  { %2312 = vmatpush1.bf16.msra.mxu0 %v6905_v60  ;;  %2365 = vmatpush1.bf16.msra.mxu1 %v6906_v12  ;;  %v5686_v60 = vld [vmem:[%s6673_s11] sm:$0xff]   ;;  %v5697_v12 = vld [vmem:[%s6673_s11 + $0x8] sm:$0xff]  }
 0x506   :  { %2313 = vmatprep.subr.bf16.mxu0 %v6907_v34  ;;  %2366 = vmatprep.subr.bf16.mxu1 %v6908_v36 }
 0x509   :  { %2314 = vmatpush1.bf16.msra.mxu0 %v6909_v35  ;;  %2367 = vmatpush1.bf16.msra.mxu1 %v6910_v57 }
 0x50a   :  { %2315 = vmatprep.subr.bf16.mxu0 %v6911_v61  ;;  %2368 = vmatprep.subr.bf16.mxu1 %v6912_v45 }
 0x50d   :  { %2316 = vmatpush1.bf16.msra.mxu0 %v6913_v28  ;;  %2369 = vmatpush1.bf16.msra.mxu1 %v6914_v13 }
 0x50e   :  { %2391 = vmatprep.subr.bf16.mxu0 %v6915_v10  ;;  %2444 = vmatprep.subr.bf16.mxu1 %v6916_v11 }
 0x510   :  { %2318 = vmatmul.mubr.bf16.vlgmr.msra.gmra.mrb[52].mxu0 %v5163_v51  ;;  %2371 = vmatmul.mubr.bf16.vlgmr.msra.gmra.mrb[48].mxu1 %v5163_v51 }
 0x511   :  { %2327 = vmatprep.mubr.bf16.mxu0 %v5215_v63  ;;  %2380 = vmatprep.mubr.bf16.mxu1 %v5215_v63 }
 0x512   :  { %2392 = vmatpush1.bf16.msra.mxu0 %v5071_v29  ;;  %2445 = vmatpush1.bf16.msra.mxu1 %v5073_v42  ;;  %v6920_v42 = vld [vmem:[#allocation57_spill] sm:$0xff]  ;;  %v6921_v29 = vld [vmem:[#allocation58_spill] sm:$0xff] }
 0x513   :  { %2393 = vmatprep.subr.bf16.mxu0 %v5089_v49  ;;  %2446 = vmatprep.subr.bf16.mxu1 %v5127_v3  ;;  %v6919_v49 = vld [vmem:[#allocation56_spill] sm:$0xff]  ;;  %v6922_v3 = vld [vmem:[#allocation59_spill] sm:$0xff] }
 0x516   :  { %2394 = vmatpush1.bf16.msra.mxu0 %v5119_v6  ;;  %2447 = vmatpush1.bf16.msra.mxu1 %v5121_v5  ;;  %v6917_v5 = vld [vmem:[#allocation54_spill] sm:$0xff]  ;;  %v6918_v6 = vld [vmem:[#allocation55_spill] sm:$0xff] }
 0x517   :  { %2395 = vmatprep.subr.bf16.mxu0 %v5131_v9  ;;  %2448 = vmatprep.subr.bf16.mxu1 %v5191_v0  ;;  %v6923_v9 = vld [vmem:[#allocation60_spill] sm:$0xff]  ;;  %v6925_v0 = vld [vmem:[#allocation62_spill] sm:$0xff] }
 0x518   :  { %2328 = vmatmul.mubr.bf16.gmra.mrb[56].mxu0 %v5198_v58  ;;  %2381 = vmatmul.mubr.bf16.gmra.mrb[52].mxu1 %v5198_v58 }
 0x519   :  { %2423 = vmatprep.mubr.bf16.mxu0 %v5167_v46  ;;  %2476 = vmatprep.mubr.bf16.mxu1 %v5167_v46  ;;  %v6924_v46 = vld [vmem:[#allocation61_spill] sm:$0xff] }
 0x51a   :  { %2396 = vmatpush1.bf16.msra.mxu0 %v5202_v59  ;;  %2449 = vmatpush1.bf16.msra.mxu1 %v5219_v16  ;;  %v6926_v59 = vld [vmem:[#allocation63_spill] sm:$0xff]  ;;  %v6927_v16 = vld [vmem:[#allocation64_spill] sm:$0xff] }
 0x51b   :  { %2397 = vmatprep.subr.bf16.mxu0 %v5228_v50  ;;  %2450 = vmatprep.subr.bf16.mxu1 %v5230_v47  ;;  %v6928_v50 = vld [vmem:[#allocation65_spill] sm:$0xff]  ;;  %v6929_v47 = vld [vmem:[#allocation66_spill] sm:$0xff] }
 0x51e   :  { %2398 = vmatpush1.bf16.msra.mxu0 %v5245_v8  ;;  %2451 = vmatpush1.bf16.msra.mxu1 %v5247_v48  ;;  %v6930_v8 = vld [vmem:[#allocation67_spill] sm:$0xff]  ;;  %v6931_v48 = vld [vmem:[#allocation68_spill] sm:$0xff] }
 0x51f   :  { %2399 = vmatprep.subr.bf16.mxu0 %v5251_v56  ;;  %2452 = vmatprep.subr.bf16.mxu1 %v5253_v14  ;;  %v6932_v56 = vld [vmem:[#allocation69_spill] sm:$0xff]  ;;  %v6933_v14 = vld [vmem:[#allocation70_spill] sm:$0xff] }
 0x522   :  { %2400 = vmatpush1.bf16.msra.mxu0 %v5271_v55  ;;  %2453 = vmatpush1.bf16.msra.mxu1 %v5273_v24  ;;  %v6934_v55 = vld [vmem:[#allocation71_spill] sm:$0xff]  ;;  %v6935_v24 = vld [vmem:[#allocation72_spill] sm:$0xff] }
 0x523   :  { %2401 = vmatprep.subr.bf16.mxu0 %v5277_v22  ;;  %2454 = vmatprep.subr.bf16.mxu1 %v5279_v54  ;;  %v6936_v22 = vld [vmem:[#allocation73_spill] sm:$0xff]  ;;  %v6937_v54 = vld [vmem:[#allocation74_spill] sm:$0xff] }
 0x526   :  { %2402 = vmatpush1.bf16.msra.mxu0 %v5295_v62  ;;  %2455 = vmatpush1.bf16.msra.mxu1 %v5297_v1  ;;  %v6938_v62 = vld [vmem:[#allocation75_spill] sm:$0xff]  ;;  %v6939_v1 = vld [vmem:[#allocation76_spill] sm:$0xff] }
 0x527   :  { %2403 = vmatprep.subr.bf16.mxu0 %v5301_v15  ;;  %2456 = vmatprep.subr.bf16.mxu1 %v5303_v7  ;;  %v6940_v15 = vld [vmem:[#allocation77_spill] sm:$0xff]  ;;  %v6941_v7 = vld [vmem:[#allocation78_spill] sm:$0xff] }
 0x52a   :  { %2404 = vmatpush1.bf16.msra.mxu0 %v5319_v43  ;;  %2457 = vmatpush1.bf16.msra.mxu1 %v5321_v53  ;;  %v6942_v43 = vld [vmem:[#allocation79_spill] sm:$0xff]  ;;  %v6943_v53 = vld [vmem:[#allocation80_spill] sm:$0xff] }
 0x52b   :  { %2405 = vmatprep.subr.bf16.mxu0 %v6917_v5  ;;  %2458 = vmatprep.subr.bf16.mxu1 %v6918_v6 }
 0x52e   :  { %2406 = vmatpush1.bf16.msra.mxu0 %v6919_v49  ;;  %2459 = vmatpush1.bf16.msra.mxu1 %v6920_v42 }
 0x52f   :  { %2407 = vmatprep.subr.bf16.mxu0 %v6921_v29  ;;  %2460 = vmatprep.subr.bf16.mxu1 %v6922_v3 }
 0x532   :  { %2408 = vmatpush1.bf16.msra.mxu0 %v6923_v9  ;;  %2461 = vmatpush1.bf16.msra.mxu1 %v6924_v46 }
 0x533   :  { %2409 = vmatprep.subr.bf16.mxu0 %v6925_v0  ;;  %2462 = vmatprep.subr.bf16.mxu1 %v6926_v59 }
 0x536   :  { %2410 = vmatpush1.bf16.msra.mxu0 %v6927_v16  ;;  %2463 = vmatpush1.bf16.msra.mxu1 %v6928_v50 }
 0x537   :  { %2411 = vmatprep.subr.bf16.mxu0 %v6929_v47  ;;  %2464 = vmatprep.subr.bf16.mxu1 %v6930_v8 }
 0x53a   :  { %2412 = vmatpush1.bf16.msra.mxu0 %v6931_v48  ;;  %2465 = vmatpush1.bf16.msra.mxu1 %v6932_v56 }
 0x53b   :  { %2413 = vmatprep.subr.bf16.mxu0 %v6933_v14  ;;  %2466 = vmatprep.subr.bf16.mxu1 %v6934_v55 }
 0x53e   :  { %2414 = vmatpush1.bf16.msra.mxu0 %v6935_v24  ;;  %2467 = vmatpush1.bf16.msra.mxu1 %v6936_v22 }
 0x53f   :  { %2415 = vmatprep.subr.bf16.mxu0 %v6937_v54  ;;  %2468 = vmatprep.subr.bf16.mxu1 %v6938_v62 }
 0x542   :  { %2416 = vmatpush1.bf16.msra.mxu0 %v6939_v1  ;;  %2469 = vmatpush1.bf16.msra.mxu1 %v6940_v15 }
 0x543   :  { %2417 = vmatprep.subr.bf16.mxu0 %v6941_v7  ;;  %2470 = vmatprep.subr.bf16.mxu1 %v6942_v43 }
 0x546   :  { %2418 = vmatpush1.bf16.msra.mxu0 %v6943_v53  ;;  %2471 = vmatpush1.bf16.msra.mxu1 %v5489_v25 }
 0x547   :  { %2419 = vmatprep.subr.bf16.mxu0 %v5493_v44  ;;  %2472 = vmatprep.subr.bf16.mxu1 %v5495_v40  ;;  %v6944_v40 = vmov 0  }
 0x54a   :  { %2420 = vmatpush1.bf16.msra.mxu0 %v5511_v32  ;;  %2473 = vmatpush1.bf16.msra.mxu1 %v5513_v4 }
 0x54b   :  { %2421 = vmatprep.subr.bf16.mxu0 %v5517_v17  ;;  %2474 = vmatprep.subr.bf16.mxu1 %v5519_v26 }
 0x54e   :  { %2422 = vmatpush1.bf16.msra.mxu0 %v5523_v41  ;;  %2475 = vmatpush1.bf16.msra.mxu1 %v5525_v2 }
 0x551   :  { %2424 = vmatmul.mubr.bf16.vlgmr.msra.gmra.mrb[60].mxu0 %v5163_v51  ;;  %2477 = vmatmul.mubr.bf16.vlgmr.msra.gmra.mrb[56].mxu1 %v5163_v51 }
 0x552   :  { %2433 = vmatprep.mubr.bf16.mxu0 %v5215_v63  ;;  %2486 = vmatprep.mubr.bf16.mxu1 %v5215_v63 }
 0x559   :  { %2434 = vmatmul.mubr.bf16.gmra.mrb[64].mxu0 %v5198_v58  ;;  %2487 = vmatmul.mubr.bf16.gmra.mrb[60].mxu1 %v5198_v58 }
 0x55a   :  { %2590 = vmatprep.mubr.bf16.mxu0 %v6944_v40  ;;  %2643 = vmatprep.mubr.bf16.mxu1 %v6944_v40 }
 0x562   :  { %v2091_v17 = vpop.f32.mrb[36].mxu0  ;;  %v2144_v44 = vpop.f32.mrb[32].mxu1 }
 0x563   :  { %v2093_v26 = vpop.f32.mrb[37].mxu0  ;;  %v2146_v41 = vpop.f32.mrb[33].mxu1 }
 0x564   :  { %v2095_v2 = vpop.f32.mrb[38].mxu0  ;;  %v2148_v25 = vpop.f32.mrb[34].mxu1 }
 0x565   :  { %v2269_v32 = vpack.c.bf16 %v2095_v2, %v2091_v17  ;;  %v2271_v51 = vpack.c.bf16 %v2148_v25, %v2144_v44  ;;  %v2097_v4 = vpop.f32.mrb[39].mxu0  ;;  %v2150_v18 = vpop.f32.mrb[35].mxu1 }
 0x566   :  { %v2270_v19 = vpack.c.bf16 %v2097_v4, %v2093_v26  ;;  %v2272_v63 = vpack.c.bf16 %v2150_v18, %v2146_v41 }
 0x568   :  { %2558 = vmatprep.subr.bf16.mxu0 %v2270_v19  ;;  %2611 = vmatprep.subr.bf16.mxu1 %v2272_v63 }
 0x569   :  { %2559 = vmatpush1.bf16.msra.mxu0 %v2269_v32  ;;  %2612 = vmatpush1.bf16.msra.mxu1 %v2271_v51 }
 0x56a   :  { %v2101_v58 = vpop.f32.mrb[40].mxu0  ;;  %v2154_v20 = vpop.f32.mrb[36].mxu1 }
 0x56b   :  { %v2103_v21 = vpop.f32.mrb[41].mxu0  ;;  %v2156_v30 = vpop.f32.mrb[37].mxu1 }
 0x56c   :  { %v2105_v31 = vpop.f32.mrb[42].mxu0  ;;  %v2158_v33 = vpop.f32.mrb[38].mxu1 }
 0x56d   :  { %v2277_v23 = vpack.c.bf16 %v2105_v31, %v2101_v58  ;;  %v2279_v37 = vpack.c.bf16 %v2158_v33, %v2154_v20  ;;  %v2107_v27 = vpop.f32.mrb[43].mxu0  ;;  %v2160_v38 = vpop.f32.mrb[39].mxu1 }
 0x56e   :  { %v2278_v39 = vpack.c.bf16 %v2107_v27, %v2103_v21  ;;  %v2280_v52 = vpack.c.bf16 %v2160_v38, %v2156_v30 }
 0x570   :  { %2560 = vmatprep.subr.bf16.mxu0 %v2278_v39  ;;  %2613 = vmatprep.subr.bf16.mxu1 %v2280_v52 }
 0x571   :  { %2561 = vmatpush1.bf16.msra.mxu0 %v2277_v23  ;;  %2614 = vmatpush1.bf16.msra.mxu1 %v2279_v37 }
 0x574   :  { %4038 = vmatmul.mubr.msk.bf16.vlgmr.msra.gmra.mrb[68].mxu0 %vm111_vm0, %v5686_v60  ;;  %4040 = vmatmul.mubr.msk.bf16.vlgmr.msra.gmra.mrb[64].mxu1 %vm111_vm0, %v5686_v60 }
 0x575   :  { %2600 = vmatprep.mubr.bf16.mxu0 %v6944_v40  ;;  %2653 = vmatprep.mubr.bf16.mxu1 %v6944_v40 }
 0x57c   :  { %4039 = vmatmul.mubr.msk.bf16.gmra.mrb[72].mxu0 %vm111_vm0, %v5697_v12  ;;  %4041 = vmatmul.mubr.msk.bf16.gmra.mrb[68].mxu1 %vm111_vm0, %v5697_v12 }
 0x57d   :  { %2696 = vmatprep.mubr.bf16.mxu0 %v6944_v40  ;;  %2749 = vmatprep.mubr.bf16.mxu1 %v6944_v40 }
 0x5a2   :  { %v2197_v34 = vpop.f32.mrb[44].mxu0  ;;  %v2250_v36 = vpop.f32.mrb[40].mxu1 }
 0x5a3   :  { %v2199_v35 = vpop.f32.mrb[45].mxu0  ;;  %v2252_v57 = vpop.f32.mrb[41].mxu1 }
 0x5a4   :  { %v2201_v61 = vpop.f32.mrb[46].mxu0  ;;  %v2254_v45 = vpop.f32.mrb[42].mxu1 }
 0x5a5   :  { %v2273_v28 = vpack.c.bf16 %v2201_v61, %v2197_v34  ;;  %v2275_v13 = vpack.c.bf16 %v2254_v45, %v2250_v36  ;;  %v2203_v10 = vpop.f32.mrb[47].mxu0  ;;  %v2256_v11 = vpop.f32.mrb[43].mxu1  ;;  %v3046_v36 = vld [vmem:[%s6675_s4] sm:$0xff] }
 0x5a6   :  { %v2274_v5 = vpack.c.bf16 %v2203_v10, %v2199_v35  ;;  %v2276_v6 = vpack.c.bf16 %v2256_v11, %v2252_v57  ;;  %v3047_v35 = vld [vmem:[%s6675_s4 + $0x8] sm:$0xff] }
 0x5a8   :  { %2664 = vmatprep.subr.bf16.mxu0 %v2274_v5  ;;  %2717 = vmatprep.subr.bf16.mxu1 %v2276_v6  ;;  %v4061_v6 = vcombine.high %v3046_v36, %v3046_v36 }
 0x5a9   :  { %2665 = vmatpush1.bf16.msra.mxu0 %v2273_v28  ;;  %2718 = vmatpush1.bf16.msra.mxu1 %v2275_v13 }
 0x5aa   :  { %v2207_v49 = vpop.f32.mrb[48].mxu0  ;;  %v2260_v42 = vpop.f32.mrb[44].mxu1 }
 0x5ab   :  { %v2209_v29 = vpop.f32.mrb[49].mxu0  ;;  %v2262_v3 = vpop.f32.mrb[45].mxu1 }
 0x5ac   :  { %v2211_v9 = vpop.f32.mrb[50].mxu0  ;;  %v2264_v46 = vpop.f32.mrb[46].mxu1 }
 0x5ad   :  { %v2281_v0 = vpack.c.bf16 %v2211_v9, %v2207_v49  ;;  %v2283_v59 = vpack.c.bf16 %v2264_v46, %v2260_v42  ;;  %v2213_v16 = vpop.f32.mrb[51].mxu0  ;;  %v2266_v50 = vpop.f32.mrb[47].mxu1  ;;  %v4063_v49 = vcombine.high %v3047_v35, %v3047_v35  ;;  %v4062_v9 = vcombine.low %v3047_v35, %v3047_v35  ;;  %v3048_v46 = vld [vmem:[%s6675_s4 + $0x10] sm:$0xff] }
 0x5ae   :  { %v2282_v47 = vpack.c.bf16 %v2213_v16, %v2209_v29  ;;  %v2284_v8 = vpack.c.bf16 %v2266_v50, %v2262_v3  ;;  %v4060_v3 = vcombine.low %v3046_v36, %v3046_v36  ;;  %v4065_v50 = vcombine.high %v3048_v46, %v3048_v46 }
 0x5af   :  { %v3147_v16 = vsel %vm537_vm3, %v4062_v9, 0 }
 0x5b0   :  { %2666 = vmatprep.subr.bf16.mxu0 %v2282_v47  ;;  %2719 = vmatprep.subr.bf16.mxu1 %v2284_v8 }
 0x5b1   :  { %2667 = vmatpush1.bf16.msra.mxu0 %v2281_v0  ;;  %2720 = vmatpush1.bf16.msra.mxu1 %v2283_v59  ;;  %v3049_v0 = vld [vmem:[%s6675_s4 + $0x18] sm:$0xff]  ;;  %v3141_v59 = vsel %vm537_vm3, %v4060_v3, 0 }
 0x5b2   :  { %v4067_v47 = vcombine.high %v3049_v0, %v3049_v0  ;;  %v4066_v8 = vcombine.low %v3049_v0, %v3049_v0 }
 0x5b4   :  { %4042 = vmatmul.mubr.msk.bf16.vlgmr.msra.gmra.mrb[76].mxu0 %vm111_vm0, %v5686_v60  ;;  %4044 = vmatmul.mubr.msk.bf16.vlgmr.msra.gmra.mrb[72].mxu1 %vm111_vm0, %v5686_v60 }
 0x5b5   :  { %2706 = vmatprep.mubr.bf16.mxu0 %v6944_v40  ;;  %2759 = vmatprep.mubr.bf16.mxu1 %v6944_v40 }
 0x5bc   :  { %4043 = vmatmul.mubr.msk.bf16.gmra.mrb[80].mxu0 %vm111_vm0, %v5697_v12  ;;  %4045 = vmatmul.mubr.msk.bf16.gmra.mrb[76].mxu1 %vm111_vm0, %v5697_v12 }
 0x5bd   :  { %2802 = vmatprep.mubr.bf16.mxu0 %v6944_v40  ;;  %2855 = vmatprep.mubr.bf16.mxu1 %v6944_v40 }
 0x5e3   :  { %v2319_v48 = vpop.f32.mrb[52].mxu0  ;;  %v2372_v56 = vpop.f32.mrb[48].mxu1 }
 0x5e4   :  { %v2321_v14 = vpop.f32.mrb[53].mxu0  ;;  %v2374_v55 = vpop.f32.mrb[49].mxu1 }
 0x5e5   :  { %v2323_v24 = vpop.f32.mrb[54].mxu0  ;;  %v2376_v22 = vpop.f32.mrb[50].mxu1 }
 0x5e6   :  { %v2497_v54 = vpack.c.bf16 %v2323_v24, %v2319_v48  ;;  %v2499_v62 = vpack.c.bf16 %v2376_v22, %v2372_v56  ;;  %v2325_v1 = vpop.f32.mrb[55].mxu0  ;;  %v2378_v15 = vpop.f32.mrb[51].mxu1  ;;  %v5762_v48 = vld [vmem:[%s6674_s12] sm:$0xff]  }
 0x5e7   :  { %v2498_v7 = vpack.c.bf16 %v2325_v1, %v2321_v14  ;;  %v2500_v43 = vpack.c.bf16 %v2378_v15, %v2374_v55  ;;  %v3050_v56 = vld [vmem:[%s6675_s4 + $0x20] sm:$0xff]  ;;  %v3051_v14 = vld [vmem:[%s6675_s4 + $0x28] sm:$0xff]  ;;  %v3159_v55 = vsel %vm537_vm3, %v4066_v8, 0 }
 0x5e8   :  { %v4069_v24 = vcombine.high %v3050_v56, %v3050_v56  ;;  %v4071_v22 = vcombine.high %v3051_v14, %v3051_v14 }
 0x5e9   :  { %2770 = vmatprep.subr.bf16.mxu0 %v2498_v7  ;;  %2823 = vmatprep.subr.bf16.mxu1 %v2500_v43 }
 0x5ea   :  { %2771 = vmatpush1.bf16.msra.mxu0 %v2497_v54  ;;  %2824 = vmatpush1.bf16.msra.mxu1 %v2499_v62 }
 0x5eb   :  { %v2329_v53 = vpop.f32.mrb[56].mxu0  ;;  %v2382_v17 = vpop.f32.mrb[52].mxu1 }
 0x5ec   :  { %v2331_v44 = vpop.f32.mrb[57].mxu0  ;;  %v2384_v26 = vpop.f32.mrb[53].mxu1 }
 0x5ed   :  { %v2333_v41 = vpop.f32.mrb[58].mxu0  ;;  %v2386_v2 = vpop.f32.mrb[54].mxu1 }
 0x5ee   :  { %v2505_v25 = vpack.c.bf16 %v2333_v41, %v2329_v53  ;;  %v2507_v32 = vpack.c.bf16 %v2386_v2, %v2382_v17  ;;  %v2335_v51 = vpop.f32.mrb[59].mxu0  ;;  %v2388_v4 = vpop.f32.mrb[55].mxu1 }
 0x5ef   :  { %v2506_v18 = vpack.c.bf16 %v2335_v51, %v2331_v44  ;;  %v2508_v19 = vpack.c.bf16 %v2388_v4, %v2384_v26  ;;  %v4257_v44 = vld [vmem:[%s6674_s12 + $0x8] sm:$0xff]   ;;  %v4070_v51 = vcombine.low %v3051_v14, %v3051_v14 }
 0x5f1   :  { %2772 = vmatprep.subr.bf16.mxu0 %v2506_v18  ;;  %2825 = vmatprep.subr.bf16.mxu1 %v2508_v19 }
 0x5f2   :  { %2773 = vmatpush1.bf16.msra.mxu0 %v2505_v25  ;;  %2826 = vmatpush1.bf16.msra.mxu1 %v2507_v32  ;;  %v4068_v32 = vcombine.low %v3050_v56, %v3050_v56 }
 0x5f5   :  { %4046 = vmatmul.mubr.msk.bf16.vlgmr.msra.gmra.mrb[84].mxu0 %vm111_vm0, %v5686_v60  ;;  %4048 = vmatmul.mubr.msk.bf16.vlgmr.msra.gmra.mrb[80].mxu1 %vm111_vm0, %v5686_v60 }
 0x5f6   :  { %2812 = vmatprep.mubr.bf16.mxu0 %v6944_v40  ;;  %2865 = vmatprep.mubr.bf16.mxu1 %v6944_v40 }
 0x5fd   :  { %4047 = vmatmul.mubr.msk.bf16.gmra.mrb[88].mxu0 %vm111_vm0, %v5697_v12  ;;  %4049 = vmatmul.mubr.msk.bf16.gmra.mrb[84].mxu1 %vm111_vm0, %v5697_v12 }
 0x5fe   :  { %2908 = vmatprep.mubr.bf16.mxu0 %v6944_v40  ;;  %2961 = vmatprep.mubr.bf16.mxu1 %v6944_v40 }
 0x624   :  { %v2425_v63 = vpop.f32.mrb[60].mxu0  ;;  %v2478_v58 = vpop.f32.mrb[56].mxu1 }
 0x625   :  { %v2427_v20 = vpop.f32.mrb[61].mxu0  ;;  %v2480_v21 = vpop.f32.mrb[57].mxu1 }
 0x626   :  { %v2429_v30 = vpop.f32.mrb[62].mxu0  ;;  %v2482_v31 = vpop.f32.mrb[58].mxu1 }
 0x627   :  { %v2501_v33 = vpack.c.bf16 %v2429_v30, %v2425_v63  ;;  %v2503_v23 = vpack.c.bf16 %v2482_v31, %v2478_v58  ;;  %v2431_v37 = vpop.f32.mrb[63].mxu0  ;;  %v2484_v27 = vpop.f32.mrb[59].mxu1  ;;  %v3052_v58 = vld [vmem:[%s6675_s4 + $0x30] sm:$0xff]  ;;  %v3171_v30 = vsel %vm537_vm3, %v4070_v51, 0 }
 0x628   :  { %v2502_v38 = vpack.c.bf16 %v2431_v37, %v2427_v20  ;;  %v2504_v39 = vpack.c.bf16 %v2484_v27, %v2480_v21  ;;  %v3053_v20 = vld [vmem:[%s6675_s4 + $0x38] sm:$0xff]  ;;  %v3165_v21 = vsel %vm537_vm3, %v4068_v32, 0  ;;  %v4073_v31 = vcombine.high %v3052_v58, %v3052_v58 }
 0x629   :  { %v4074_v37 = vcombine.low %v3053_v20, %v3053_v20 }
 0x62a   :  { %2876 = vmatprep.subr.bf16.mxu0 %v2502_v38  ;;  %2929 = vmatprep.subr.bf16.mxu1 %v2504_v39 }
 0x62b   :  { %2877 = vmatpush1.bf16.msra.mxu0 %v2501_v33  ;;  %2930 = vmatpush1.bf16.msra.mxu1 %v2503_v23  ;;  %v4075_v33 = vcombine.high %v3053_v20, %v3053_v20  ;;  %v4072_v23 = vcombine.low %v3052_v58, %v3052_v58  ;;  %v3183_v38 = vsel %vm537_vm3, %v4074_v37, 0 }
 0x62c   :  { %v2435_v52 = vpop.f32.mrb[64].mxu0  ;;  %v2488_v34 = vpop.f32.mrb[60].mxu1 }
 0x62d   :  { %v2437_v57 = vpop.f32.mrb[65].mxu0  ;;  %v2490_v61 = vpop.f32.mrb[61].mxu1  ;;  %v3177_v27 = vsel %vm537_vm3, %v4072_v23, 0 }
 0x62e   :  { %v2439_v45 = vpop.f32.mrb[66].mxu0  ;;  %v2492_v28 = vpop.f32.mrb[62].mxu1 }
 0x62f   :  { %v2509_v13 = vpack.c.bf16 %v2439_v45, %v2435_v52  ;;  %v2511_v10 = vpack.c.bf16 %v2492_v28, %v2488_v34  ;;  %v2441_v11 = vpop.f32.mrb[67].mxu0  ;;  %v2494_v5 = vpop.f32.mrb[63].mxu1 }
 0x630   :  { %v2510_v42 = vpack.c.bf16 %v2441_v11, %v2437_v57  ;;  %v2512_v29 = vpack.c.bf16 %v2494_v5, %v2490_v61 }
 0x632   :  { %2878 = vmatprep.subr.bf16.mxu0 %v2510_v42  ;;  %2931 = vmatprep.subr.bf16.mxu1 %v2512_v29 }
 0x633   :  { %2879 = vmatpush1.bf16.msra.mxu0 %v2509_v13  ;;  %2932 = vmatpush1.bf16.msra.mxu1 %v2511_v10 }
 0x634   :  { %4076 = vmatprep.subr.msk.bf16.mxu0 %vm537_vm3, %v4061_v6  ;;  %4079 = vmatprep.subr.msk.bf16.mxu1 %vm537_vm3, %v4063_v49 }
 0x636   :  { %4050 = vmatmul.mubr.msk.bf16.vlgmr.msra.gmra.mrb[92].mxu0 %vm111_vm0, %v5686_v60  ;;  %4052 = vmatmul.mubr.msk.bf16.vlgmr.msra.gmra.mrb[88].mxu1 %vm111_vm0, %v5686_v60  ;;  %v4064_v60 = vcombine.low %v3048_v46, %v3048_v46 }
 0x637   :  { %3189 = vmatpush1.bf16.msra.mxu0 %v3141_v59  ;;  %3242 = vmatpush1.bf16.msra.mxu1 %v3147_v16 }
 0x638   :  { %2918 = vmatprep.mubr.bf16.mxu0 %v6944_v40  ;;  %2971 = vmatprep.mubr.bf16.mxu1 %v6944_v40 }
 0x639   :  { %4082 = vmatprep.subr.msk.bf16.mxu0 %vm537_vm3, %v4065_v50  ;;  %4085 = vmatprep.subr.msk.bf16.mxu1 %vm537_vm3, %v4067_v47 }
 0x63e   :  { %4051 = vmatmul.mubr.msk.bf16.gmra.mrb[96].mxu0 %vm111_vm0, %v5697_v12  ;;  %4053 = vmatmul.mubr.msk.bf16.gmra.mrb[92].mxu1 %vm111_vm0, %v5697_v12  ;;  %v3153_v12 = vsel %vm537_vm3, %v4064_v60, 0 }
 0x63f   :  { %3220 = vmatprep.mubr.bf16.mxu0 %v6944_v40  ;;  %3273 = vmatprep.mubr.bf16.mxu1 %v6944_v40 }
 0x646   :  { %4077 = vmatmul.mubr.msk.bf16.vlgmr.msra.gmra.mrb[100].mxu0 %vm3133_vm5, %v5762_v48  ;;  %4080 = vmatmul.mubr.msk.bf16.vlgmr.msra.gmra.mrb[96].mxu1 %vm3133_vm5, %v5762_v48 }
 0x647   :  { %v5776_v54 = vpop.f32.mrb[68].mxu0  ;;  %v5778_v62 = vpop.f32.mrb[64].mxu1  ;;  %3295 = vmatpush1.bf16.msra.mxu0 %v3153_v12  ;;  %3348 = vmatpush1.bf16.msra.mxu1 %v3159_v55 }
 0x648   :  { %v5780_v1 = vpop.f32.mrb[69].mxu0  ;;  %v5782_v15 = vpop.f32.mrb[65].mxu1  ;;  %3230 = vmatprep.mubr.bf16.mxu0 %v6944_v40  ;;  %3283 = vmatprep.mubr.bf16.mxu1 %v6944_v40 }
 0x649   :  { %v5786_v7 = vpop.f32.mrb[70].mxu0  ;;  %v5788_v43 = vpop.f32.mrb[66].mxu1  ;;  %4088 = vmatprep.subr.msk.bf16.mxu0 %vm537_vm3, %v4069_v24  ;;  %4091 = vmatprep.subr.msk.bf16.mxu1 %vm537_vm3, %v4071_v22 }
 0x64a   :  { %v5792_v53 = vpop.f32.mrb[71].mxu0  ;;  %v5794_v17 = vpop.f32.mrb[67].mxu1 }
 0x64b   :  { %v5923_v55 = vpop.permute.xlu1 %2529  ;;  %v5925_v24 = vpop.permute.xlu0 %2524 }
 0x64c   :  { %6945 = vst [vmem:[#allocation2_spill] sm:$0xff] %v5923_v55  ;;  %6946 = vst [vmem:[#allocation3_spill] sm:$0xff] %v5925_v24  ;;  %v5933_v32 = vadd.f32 %v5776_v54, %v5925_v24  ;;  %v5937_v51 = vadd.f32 %v5778_v62, %v5925_v24  ;;  %v5941_v58 = vadd.f32 %v5780_v1, %v5925_v24 }
 0x64d   :  { %v5945_v20 = vadd.f32 %v5782_v15, %v5925_v24  ;;  %v5953_v54 = vadd.f32 %v5786_v7, %v5923_v55  ;;  %v5957_v62 = vadd.f32 %v5788_v43, %v5923_v55  ;;  %v5961_v1 = vadd.f32 %v5792_v53, %v5923_v55 }
 0x64e   :  { %4078 = vmatmul.mubr.msk.bf16.gmra.mrb[104].mxu0 %vm3133_vm5, %v4257_v44  ;;  %4081 = vmatmul.mubr.msk.bf16.gmra.mrb[100].mxu1 %vm3133_vm5, %v4257_v44  ;;  %v5965_v15 = vadd.f32 %v5794_v17, %v5923_v55 }
 0x64f   :  { %v5801_v26 = vpop.f32.mrb[72].mxu0  ;;  %v5803_v41 = vpop.f32.mrb[68].mxu1  ;;  %3326 = vmatprep.mubr.bf16.mxu0 %v6944_v40  ;;  %3379 = vmatprep.mubr.bf16.mxu1 %v6944_v40 }
 0x650   :  { %v5807_v2 = vpop.f32.mrb[73].mxu0  ;;  %v5809_v25 = vpop.f32.mrb[69].mxu1 }
 0x651   :  { %v5811_v4 = vpop.f32.mrb[74].mxu0  ;;  %v5813_v18 = vpop.f32.mrb[70].mxu1 }
 0x652   :  { %v5815_v19 = vpop.f32.mrb[75].mxu0  ;;  %v5817_v63 = vpop.f32.mrb[71].mxu1 }
 0x653   :  { %v5927_v22 = vpop.permute.xlu1 %2539 }
 0x656   :  { %4083 = vmatmul.mubr.msk.bf16.vlgmr.msra.gmra.mrb[108].mxu0 %vm3133_vm5, %v5762_v48  ;;  %4086 = vmatmul.mubr.msk.bf16.vlgmr.msra.gmra.mrb[104].mxu1 %vm3133_vm5, %v5762_v48 }
 0x657   :  { %3401 = vmatpush1.bf16.msra.mxu0 %v3165_v21  ;;  %3454 = vmatpush1.bf16.msra.mxu1 %v3171_v30 }
 0x658   :  { %3336 = vmatprep.mubr.bf16.mxu0 %v6944_v40  ;;  %3389 = vmatprep.mubr.bf16.mxu1 %v6944_v40 }
 0x659   :  { %4094 = vmatprep.subr.msk.bf16.mxu0 %vm537_vm3, %v4073_v31  ;;  %4097 = vmatprep.subr.msk.bf16.mxu1 %vm537_vm3, %v4075_v33 }
 0x65e   :  { %4084 = vmatmul.mubr.msk.bf16.gmra.mrb[112].mxu0 %vm3133_vm5, %v4257_v44  ;;  %4087 = vmatmul.mubr.msk.bf16.gmra.mrb[108].mxu1 %vm3133_vm5, %v4257_v44 }
 0x65f   :  { %3432 = vmatprep.mubr.bf16.mxu0 %v6944_v40  ;;  %3485 = vmatprep.mubr.bf16.mxu1 %v6944_v40 }
 0x666   :  { %4089 = vmatmul.mubr.msk.bf16.vlgmr.msra.gmra.mrb[116].mxu0 %vm3133_vm5, %v5762_v48  ;;  %4092 = vmatmul.mubr.msk.bf16.vlgmr.msra.gmra.mrb[112].mxu1 %vm3133_vm5, %v5762_v48 }
 0x667   :  { %3507 = vmatpush1.bf16.msra.mxu0 %v3177_v27  ;;  %3560 = vmatpush1.bf16.msra.mxu1 %v3183_v38 }
 0x668   :  { %3442 = vmatprep.mubr.bf16.mxu0 %v6944_v40  ;;  %3495 = vmatprep.mubr.bf16.mxu1 %v6944_v40 }
 0x66e   :  { %4090 = vmatmul.mubr.msk.bf16.gmra.mrb[120].mxu0 %vm3133_vm5, %v4257_v44  ;;  %4093 = vmatmul.mubr.msk.bf16.gmra.mrb[116].mxu1 %vm3133_vm5, %v4257_v44 }
 0x66f   :  { %3538 = vmatprep.mubr.bf16.mxu0 %v6944_v40  ;;  %3591 = vmatprep.mubr.bf16.mxu1 %v6944_v40 }
 0x676   :  { %4095 = vmatmul.mubr.msk.bf16.vlgmr.msra.gmra.mrb[124].mxu0 %vm3133_vm5, %v5762_v48  ;;  %4098 = vmatmul.mubr.msk.bf16.vlgmr.msra.gmra.mrb[120].mxu1 %vm3133_vm5, %v5762_v48 }
 0x677   :  { %3548 = vmatprep.mubr.bf16.mxu0 %v6944_v40  ;;  %3601 = vmatprep.mubr.bf16.mxu1 %v6944_v40 }
 0x67e   :  { %4096 = vmatmul.mubr.msk.bf16.gmra.mrb[128].mxu0 %vm3133_vm5, %v4257_v44  ;;  %4099 = vmatmul.mubr.msk.bf16.gmra.mrb[124].mxu1 %vm3133_vm5, %v4257_v44  ;;  %v5929_v44 = vpop.permute.xlu0 %2534 }
 0x67f   :  { %v5973_v7 = vadd.f32 %v5801_v26, %v5929_v44  ;;  %v5977_v43 = vadd.f32 %v5803_v41, %v5929_v44  ;;  %v5981_v53 = vadd.f32 %v5807_v2, %v5929_v44  ;;  %v5985_v17 = vadd.f32 %v5809_v25, %v5929_v44 }
 0x680   :  { %v5993_v26 = vadd.f32 %v5811_v4, %v5927_v22  ;;  %v5997_v41 = vadd.f32 %v5813_v18, %v5927_v22  ;;  %v6001_v2 = vadd.f32 %v5815_v19, %v5927_v22  ;;  %v6005_v25 = vadd.f32 %v5817_v63, %v5927_v22 }
 0x687   :  { %v5859_v39 = vpop.f32.mrb[76].mxu0  ;;  %v5861_v52 = vpop.f32.mrb[72].mxu1 }
 0x688   :  { %v5863_v34 = vpop.f32.mrb[77].mxu0  ;;  %v5865_v36 = vpop.f32.mrb[73].mxu1 }
 0x689   :  { %v5867_v35 = vpop.f32.mrb[78].mxu0  ;;  %v5869_v57 = vpop.f32.mrb[74].mxu1 }
 0x68a   :  { %v5871_v61 = vpop.f32.mrb[79].mxu0  ;;  %v5873_v45 = vpop.f32.mrb[75].mxu1 }
 0x68f   :  { %v5875_v40 = vpop.f32.mrb[80].mxu0  ;;  %v5877_v28 = vpop.f32.mrb[76].mxu1 }
 0x690   :  { %v5879_v13 = vpop.f32.mrb[81].mxu0  ;;  %v5881_v10 = vpop.f32.mrb[77].mxu1 }
 0x691   :  { %v5883_v11 = vpop.f32.mrb[82].mxu0  ;;  %v5885_v5 = vpop.f32.mrb[78].mxu1 }
 0x692   :  { %v5887_v6 = vpop.f32.mrb[83].mxu0  ;;  %v5889_v49 = vpop.f32.mrb[79].mxu1 }
 0x6c8   :  { %v5891_v42 = vpop.f32.mrb[84].mxu0  ;;  %v5893_v29 = vpop.f32.mrb[80].mxu1 }
 0x6c9   :  { %v5895_v3 = vpop.f32.mrb[85].mxu0  ;;  %v5897_v9 = vpop.f32.mrb[81].mxu1 }
 0x6ca   :  { %v5899_v46 = vpop.f32.mrb[86].mxu0  ;;  %v5901_v0 = vpop.f32.mrb[82].mxu1 }
 0x6cb   :  { %v5903_v59 = vpop.f32.mrb[87].mxu0  ;;  %v5905_v16 = vpop.f32.mrb[83].mxu1 }
 0x6d0   :  { %v5907_v50 = vpop.f32.mrb[88].mxu0  ;;  %v5909_v47 = vpop.f32.mrb[84].mxu1 }
 0x6d1   :  { %v5911_v60 = vpop.f32.mrb[89].mxu0  ;;  %v5913_v8 = vpop.f32.mrb[85].mxu1 }
 0x6d2   :  { %v5915_v48 = vpop.f32.mrb[90].mxu0  ;;  %v5917_v56 = vpop.f32.mrb[86].mxu1 }
 0x6d3   :  { %v5919_v14 = vpop.f32.mrb[91].mxu0  ;;  %v5921_v12 = vpop.f32.mrb[87].mxu1 }
 0x709   :  { %v5947_v21 = vpop.f32.mrb[92].mxu0  ;;  %v5949_v30 = vpop.f32.mrb[88].mxu1 }
 0x70a   :  { %6947 = vst [vmem:[#allocation4_spill] sm:$0xff] %v5947_v21  ;;  %6948 = vst [vmem:[#allocation5_spill] sm:$0xff] %v5949_v30  ;;  %v5967_v31 = vpop.f32.mrb[93].mxu0  ;;  %v5969_v33 = vpop.f32.mrb[89].mxu1 }
 0x70b   :  { %6949 = vst [vmem:[#allocation6_spill] sm:$0xff] %v5967_v31  ;;  %6950 = vst [vmem:[#allocation7_spill] sm:$0xff] %v5969_v33  ;;  %v5987_v23 = vpop.f32.mrb[94].mxu0  ;;  %v5989_v37 = vpop.f32.mrb[90].mxu1  ;;  %v6029_v31 = vadd.f32 %v5859_v39, %v5925_v24  ;;  %v6049_v39 = vadd.f32 %v5867_v35, %v5923_v55  ;;  %v6069_v35 = vadd.f32 %v5875_v40, %v5929_v44 }
 0x70c   :  { %6951 = vst [vmem:[#allocation8_spill] sm:$0xff] %v5987_v23  ;;  %6952 = vst [vmem:[#allocation9_spill] sm:$0xff] %v5989_v37  ;;  %v6007_v27 = vpop.f32.mrb[95].mxu0  ;;  %v6009_v38 = vpop.f32.mrb[91].mxu1  ;;  %v6037_v37 = vadd.f32 %v5863_v34, %v5925_v24  ;;  %v6041_v23 = vadd.f32 %v5865_v36, %v5925_v24  ;;  %v6057_v34 = vadd.f32 %v5871_v61, %v5923_v55 }
 0x70d   :  { %6953 = vst [vmem:[#allocation10_spill] sm:$0xff] %v6007_v27  ;;  %6954 = vst [vmem:[#allocation11_spill] sm:$0xff] %v6009_v38  ;;  %v6033_v27 = vadd.f32 %v5861_v52, %v5925_v24  ;;  %v6053_v52 = vadd.f32 %v5869_v57, %v5923_v55  ;;  %v6061_v36 = vadd.f32 %v5873_v45, %v5923_v55  ;;  %v6119_v30 = vpop.permute.xlu1 %3070 }
 0x70e   :  { %6958 = vst [vmem:[#allocation15_spill] sm:$0xff] %v6057_v34  ;;  %6962 = vst [vmem:[#allocation19_spill] sm:$0xff] %v6069_v35  ;;  %v6073_v57 = vadd.f32 %v5877_v28, %v5929_v44  ;;  %v6077_v61 = vadd.f32 %v5879_v13, %v5929_v44  ;;  %v6081_v45 = vadd.f32 %v5881_v10, %v5929_v44 }
 0x70f   :  { %6957 = vst [vmem:[#allocation14_spill] sm:$0xff] %v6053_v52  ;;  %6959 = vst [vmem:[#allocation16_spill] sm:$0xff] %v6061_v36  ;;  %v6089_v40 = vadd.f32 %v5883_v11, %v5927_v22  ;;  %v6093_v28 = vadd.f32 %v5885_v5, %v5927_v22  ;;  %v6097_v13 = vadd.f32 %v5887_v6, %v5927_v22 }
 0x710   :  { %6963 = vst [vmem:[#allocation20_spill] sm:$0xff] %v6073_v57  ;;  %6964 = vst [vmem:[#allocation21_spill] sm:$0xff] %v6077_v61  ;;  %v6101_v10 = vadd.f32 %v5889_v49, %v5927_v22  ;;  %v6137_v11 = vadd.f32 %v5895_v3, %v5925_v24  ;;  %v6145_v49 = vadd.f32 %v5899_v46, %v5923_v55 }
 0x711   :  { %v6043_v18 = vpop.f32.mrb[96].mxu0  ;;  %v6045_v33 = vpop.f32.mrb[92].mxu1  ;;  %6965 = vst [vmem:[#allocation22_spill] sm:$0xff] %v6081_v45  ;;  %6968 = vst [vmem:[#allocation27_spill] sm:$0xff] %v6089_v40 }
 0x712   :  { %6955 = vst [vmem:[#allocation12_spill] sm:$0xff] %v6043_v18  ;;  %6956 = vst [vmem:[#allocation13_spill] sm:$0xff] %v6045_v33  ;;  %v6063_v19 = vpop.f32.mrb[97].mxu0  ;;  %v6065_v4 = vpop.f32.mrb[93].mxu1  ;;  %v6141_v33 = vadd.f32 %v5897_v9, %v5925_v24  ;;  %v6155_v9 = vadd.f32 %v5903_v59, %v5923_v55 }
 0x713   :  { %6960 = vst [vmem:[#allocation17_spill] sm:$0xff] %v6063_v19  ;;  %6961 = vst [vmem:[#allocation18_spill] sm:$0xff] %v6065_v4  ;;  %v6083_v38 = vpop.f32.mrb[98].mxu0  ;;  %v6085_v63 = vpop.f32.mrb[94].mxu1 }
 0x714   :  { %6966 = vst [vmem:[#allocation23_spill] sm:$0xff] %v6083_v38  ;;  %6967 = vst [vmem:[#allocation24_spill] sm:$0xff] %v6085_v63  ;;  %v6103_v4 = vpop.f32.mrb[99].mxu0  ;;  %v6105_v38 = vpop.f32.mrb[95].mxu1  ;;  %v6133_v63 = vadd.f32 %v5893_v29, %v5925_v24 }
 0x715   :  { %6969 = vst [vmem:[#allocation25_spill] sm:$0xff] %v6093_v28  ;;  %6970 = vst [vmem:[#allocation26_spill] sm:$0xff] %v6097_v13  ;;  %v6121_v19 = vpop.permute.xlu0 %3065  ;;  %v6175_v52 = vpop.permute.xlu1 %3080 }
 0x716   :  { %6971 = vst [vmem:[#allocation28_spill] sm:$0xff] %v6101_v10  ;;  %6972 = vst [vmem:[#allocation31_spill] sm:$0xff] %v6103_v4  ;;  %v6129_v4 = vadd.f32 %v5891_v42, %v5925_v24  ;;  %v6149_v42 = vadd.f32 %v5901_v0, %v5923_v55  ;;  %v6159_v10 = vadd.f32 %v5905_v16, %v5923_v55 }
 0x717   :  { %6973 = vst [vmem:[#allocation29_spill] sm:$0xff] %v6105_v38 }
 0x719   :  { %v3222_v6 = vpop.f32.mrb[100].mxu0  ;;  %v3275_v18 = vpop.f32.mrb[96].mxu1 }
 0x71a   :  { %v3223_v29 = vadd.f32 %v3222_v6, %v6121_v19  ;;  %v3276_v38 = vadd.f32 %v3275_v18, %v6121_v19  ;;  %v3224_v3 = vpop.f32.mrb[101].mxu0  ;;  %v3277_v5 = vpop.f32.mrb[97].mxu1 }
 0x71b   :  { %v3225_v46 = vadd.f32 %v3224_v3, %v6121_v19  ;;  %v3278_v13 = vadd.f32 %v3277_v5, %v6121_v19  ;;  %v3226_v0 = vpop.f32.mrb[102].mxu0  ;;  %v3279_v28 = vpop.f32.mrb[98].mxu1  ;;  %v6974_v3 = vmax.f32 %v5933_v32, 0.0  ;;  %v6975_v5 = vmax.f32 %v5937_v51, 0.0 }
 0x71c   :  { %v3612_v40 = vmax.f32 %v3223_v29, 0.0  ;;  %v3614_v6 = vmax.f32 %v3276_v38, 0.0  ;;  %v3227_v18 = vadd.f32 %v3226_v0, %v6119_v30  ;;  %v3280_v21 = vadd.f32 %v3279_v28, %v6119_v30  ;;  %v3228_v24 = vpop.f32.mrb[103].mxu0  ;;  %v3281_v45 = vpop.f32.mrb[99].mxu1 }
 0x71d   :  { %v3613_v59 = vmax.f32 %v3225_v46, 0.0  ;;  %v3615_v61 = vmax.f32 %v3278_v13, 0.0  ;;  %v3229_v57 = vadd.f32 %v3228_v24, %v6119_v30  ;;  %v3282_v16 = vadd.f32 %v3281_v45, %v6119_v30  ;;  %v6177_v24 = vpop.permute.xlu0 %3075 }
 0x71e   :  { %v3676_v55 = vadd.f32 %v3612_v40, %v6974_v3  ;;  %v3678_v35 = vadd.f32 %v3614_v6, %v6975_v5  ;;  %v3628_v29 = vmax.f32 %v3227_v18, 0.0  ;;  %v3630_v38 = vmax.f32 %v3280_v21, 0.0 }
 0x71f   :  { %v6976_v0 = vmax.f32 %v5941_v58, 0.0  ;;  %v6977_v28 = vmax.f32 %v5945_v20, 0.0  ;;  %v3629_v46 = vmax.f32 %v3229_v57, 0.0  ;;  %v3631_v13 = vmax.f32 %v3282_v16, 0.0 }
 0x720   :  { %v2990_v32 = vmax.f32 %v6129_v4, 0.0  ;;  %v2992_v45 = vmax.f32 %v6133_v63, 0.0  ;;  %3740 = vst [vmem:[%s6676_s17] sm:$0xff] %v3676_v55  ;;  %3742 = vst [vmem:[%s6676_s17 + $0x10] sm:$0xff] %v3678_v35  ;;  %v6978_v51 = vmax.f32 %v5953_v54, 0.0  ;;  %v6979_v20 = vmax.f32 %v5957_v62, 0.0 }
 0x721   :  { %v3677_v36 = vadd.f32 %v3613_v59, %v6976_v0  ;;  %v3679_v34 = vadd.f32 %v3615_v61, %v6977_v28  ;;  %v2991_v57 = vmax.f32 %v6137_v11, 0.0  ;;  %v2993_v61 = vmax.f32 %v6141_v33, 0.0  ;;  %v3232_v62 = vpop.f32.mrb[104].mxu0  ;;  %v3285_v6 = vpop.f32.mrb[100].mxu1 }
 0x722   :  { %v3692_v58 = vadd.f32 %v3628_v29, %v6978_v51  ;;  %v3694_v21 = vadd.f32 %v3630_v38, %v6979_v20  ;;  %v6980_v55 = vmax.f32 %v5961_v1, 0.0  ;;  %v6981_v54 = vmax.f32 %v5965_v15, 0.0  ;;  %v3234_v15 = vpop.f32.mrb[105].mxu0 }
 0x723   :  { %3741 = vst [vmem:[%s6676_s17 + $0x8] sm:$0xff] %v3677_v36  ;;  %3743 = vst [vmem:[%s6676_s17 + $0x18] sm:$0xff] %v3679_v34  ;;  %v3006_v18 = vmax.f32 %v6145_v49, 0.0  ;;  %v3008_v59 = vmax.f32 %v6149_v42, 0.0  ;;  %v3233_v1 = vadd.f32 %v3232_v62, %v6177_v24  ;;  %v3286_v34 = vadd.f32 %v3285_v6, %v6177_v24  ;;  %v3287_v36 = vpop.f32.mrb[101].mxu1  ;;  %v3236_v38 = vpop.f32.mrb[106].mxu0 }
 0x724   :  { %v3693_v35 = vadd.f32 %v3629_v46, %v6980_v55  ;;  %v3695_v40 = vadd.f32 %v3631_v13, %v6981_v54  ;;  %3756 = vst [vmem:[%s6676_s17 + $0x80] sm:$0xff] %v3692_v58  ;;  %3758 = vst [vmem:[%s6676_s17 + $0x90] sm:$0xff] %v3694_v21  ;;  %v3007_v16 = vmax.f32 %v6155_v9, 0.0  ;;  %v3235_v5 = vadd.f32 %v3234_v15, %v6177_v24  ;;  %v3289_v0 = vpop.f32.mrb[102].mxu1  ;;  %v3238_v58 = vpop.f32.mrb[107].mxu0 }
 0x725   :  { %v3288_v29 = vadd.f32 %v3287_v36, %v6177_v24  ;;  %v3644_v28 = vmax.f32 %v3233_v1, 0.0  ;;  %v3646_v46 = vmax.f32 %v3286_v34, 0.0  ;;  %v3237_v13 = vadd.f32 %v3236_v38, %v6175_v52  ;;  %v3291_v20 = vpop.f32.mrb[103].mxu1 }
 0x726   :  { %3757 = vst [vmem:[%s6676_s17 + $0x88] sm:$0xff] %v3693_v35  ;;  %3759 = vst [vmem:[%s6676_s17 + $0x98] sm:$0xff] %v3695_v40  ;;  %v3290_v51 = vadd.f32 %v3289_v0, %v6175_v52  ;;  %v3645_v21 = vmax.f32 %v3235_v5, 0.0  ;;  %v3239_v35 = vadd.f32 %v3238_v58, %v6175_v52  ;;  %v3292_v54 = vadd.f32 %v3291_v20, %v6175_v52 }
 0x727   :  { %v3647_v55 = vmax.f32 %v3288_v29, 0.0  ;;  %v6982_v40 = vmax.f32 %v5973_v7, 0.0  ;;  %v6983_v6 = vmax.f32 %v5977_v43, 0.0  ;;  %v3660_v1 = vmax.f32 %v3237_v13, 0.0 }
 0x728   :  { %v3662_v34 = vmax.f32 %v3290_v51, 0.0  ;;  %v6984_v36 = vmax.f32 %v5981_v53, 0.0  ;;  %v6985_v0 = vmax.f32 %v5985_v17, 0.0  ;;  %v3661_v5 = vmax.f32 %v3239_v35, 0.0 }
 0x729   :  { %v3708_v62 = vadd.f32 %v3644_v28, %v6982_v40  ;;  %v3710_v15 = vadd.f32 %v3646_v46, %v6983_v6  ;;  %v3663_v29 = vmax.f32 %v3292_v54, 0.0  ;;  %v6237_v58 = vadd.f32 %v5907_v50, %v5929_v44  ;;  %v3381_v51 = vpop.f32.mrb[104].mxu1 }
 0x72a   :  { %v3709_v38 = vadd.f32 %v3645_v21, %v6984_v36  ;;  %v3711_v3 = vadd.f32 %v3647_v55, %v6985_v0  ;;  %v6241_v7 = vadd.f32 %v5909_v47, %v5929_v44  ;;  %v6986_v43 = vmax.f32 %v5993_v26, 0.0  ;;  %v3383_v21 = vpop.f32.mrb[105].mxu1 }
 0x72b   :  { %3772 = vst [vmem:[%s6676_s17 + $0x100] sm:$0xff] %v3708_v62  ;;  %3774 = vst [vmem:[%s6676_s17 + $0x110] sm:$0xff] %v3710_v15  ;;  %v6987_v17 = vmax.f32 %v5997_v41, 0.0  ;;  %v6255_v50 = vadd.f32 %v5911_v60, %v5929_v44  ;;  %v6259_v47 = vadd.f32 %v5913_v8, %v5929_v44  ;;  %v6988_v26 = vmax.f32 %v6001_v2, 0.0  ;;  %v3328_v60 = vpop.f32.mrb[108].mxu0  ;;  %v3385_v40 = vpop.f32.mrb[106].mxu1 }
 0x72c   :  { %v3724_v53 = vadd.f32 %v3660_v1, %v6986_v43  ;;  %3773 = vst [vmem:[%s6676_s17 + $0x108] sm:$0xff] %v3709_v38  ;;  %3775 = vst [vmem:[%s6676_s17 + $0x118] sm:$0xff] %v3711_v3  ;;  %v6989_v46 = vmax.f32 %v6005_v25, 0.0  ;;  %v6273_v8 = vadd.f32 %v5915_v48, %v5927_v22  ;;  %v6277_v20 = vadd.f32 %v5917_v56, %v5927_v22  ;;  %v3330_v3 = vpop.f32.mrb[109].mxu0  ;;  %v3387_v1 = vpop.f32.mrb[107].mxu1 }
 0x72d   :  { %v3726_v28 = vadd.f32 %v3662_v34, %v6987_v17  ;;  %v3725_v41 = vadd.f32 %v3661_v5, %v6988_v26  ;;  %v3329_v2 = vadd.f32 %v3328_v60, %v6121_v19  ;;  %v3382_v25 = vadd.f32 %v3381_v51, %v6121_v19  ;;  %v3332_v54 = vpop.f32.mrb[110].mxu0 }
 0x72e   :  { %v3727_v13 = vadd.f32 %v3663_v29, %v6989_v46  ;;  %3788 = vst [vmem:[%s6676_s17 + $0x180] sm:$0xff] %v3724_v53  ;;  %v6289_v48 = vadd.f32 %v5919_v14, %v5927_v22  ;;  %v6293_v56 = vadd.f32 %v5921_v12, %v5927_v22  ;;  %v3331_v55 = vadd.f32 %v3330_v3, %v6121_v19  ;;  %v3334_v15 = vpop.f32.mrb[111].mxu0 }
 0x72f   :  { %3790 = vst [vmem:[%s6676_s17 + $0x190] sm:$0xff] %v3726_v28  ;;  %3789 = vst [vmem:[%s6676_s17 + $0x188] sm:$0xff] %v3725_v41  ;;  %v3384_v35 = vadd.f32 %v3383_v21, %v6121_v19  ;;  %v3616_v14 = vmax.f32 %v3329_v2, 0.0  ;;  %v3618_v62 = vmax.f32 %v3382_v25, 0.0  ;;  %v3333_v6 = vadd.f32 %v3332_v54, %v6119_v30 }
 0x730   :  { %3791 = vst [vmem:[%s6676_s17 + $0x198] sm:$0xff] %v3727_v13  ;;  %v3386_v12 = vadd.f32 %v3385_v40, %v6119_v30  ;;  %v3617_v34 = vmax.f32 %v3331_v55, 0.0  ;;  %v3335_v38 = vadd.f32 %v3334_v15, %v6119_v30  ;;  %v3388_v0 = vadd.f32 %v3387_v1, %v6119_v30 }
 0x731   :  { %v3619_v36 = vmax.f32 %v3384_v35, 0.0  ;;  %v6990_v5 = vmax.f32 %v6029_v31, 0.0  ;;  %v6991_v43 = vmax.f32 %v6033_v27, 0.0  ;;  %v3632_v17 = vmax.f32 %v3333_v6, 0.0  ;;  %v6995_v27 = vld [vmem:[#allocation14_spill] sm:$0xff]  ;;  %v6997_v35 = vld [vmem:[#allocation15_spill] sm:$0xff] }
 0x732   :  { %v3634_v28 = vmax.f32 %v3386_v12, 0.0  ;;  %v6992_v26 = vmax.f32 %v6037_v37, 0.0  ;;  %v6993_v46 = vmax.f32 %v6041_v23, 0.0  ;;  %v3633_v60 = vmax.f32 %v3335_v38, 0.0  ;;  %v3338_v6 = vpop.f32.mrb[112].mxu0  ;;  %v3391_v12 = vpop.f32.mrb[108].mxu1 }
 0x733   :  { %v3680_v29 = vadd.f32 %v3616_v14, %v6990_v5  ;;  %v3682_v53 = vadd.f32 %v3618_v62, %v6991_v43  ;;  %v3635_v51 = vmax.f32 %v3388_v0, 0.0  ;;  %v3022_v2 = vmax.f32 %v6237_v58, 0.0  ;;  %v3340_v38 = vpop.f32.mrb[113].mxu0  ;;  %v3393_v0 = vpop.f32.mrb[109].mxu1  ;;  %v7029_v58 = vld [vmem:[#allocation13_spill] sm:$0xff] }
 0x734   :  { %v3681_v41 = vadd.f32 %v3617_v34, %v6992_v26  ;;  %v3683_v13 = vadd.f32 %v3619_v36, %v6993_v46  ;;  %v3024_v25 = vmax.f32 %v6241_v7, 0.0  ;;  %v6994_v31 = vmax.f32 %v6049_v39, 0.0  ;;  %v6999_v39 = vld [vmem:[#allocation16_spill] sm:$0xff] }
 0x735   :  { %3744 = vst [vmem:[%s6676_s17 + $0x20] sm:$0xff] %v3680_v29  ;;  %3746 = vst [vmem:[%s6676_s17 + $0x30] sm:$0xff] %v3682_v53  ;;  %v6996_v23 = vmax.f32 %v6995_v27, 0.0  ;;  %v3023_v21 = vmax.f32 %v6255_v50, 0.0  ;;  %v3025_v55 = vmax.f32 %v6259_v47, 0.0  ;;  %v6998_v54 = vmax.f32 %v6997_v35, 0.0 }
 0x736   :  { %v3696_v37 = vadd.f32 %v3632_v17, %v6994_v31  ;;  %3745 = vst [vmem:[%s6676_s17 + $0x28] sm:$0xff] %v3681_v41  ;;  %3747 = vst [vmem:[%s6676_s17 + $0x38] sm:$0xff] %v3683_v13  ;;  %v7000_v14 = vmax.f32 %v6999_v39, 0.0  ;;  %v3038_v15 = vmax.f32 %v6273_v8, 0.0  ;;  %v3040_v1 = vmax.f32 %v6277_v20, 0.0  ;;  %v3342_v17 = vpop.f32.mrb[114].mxu0 }
 0x737   :  { %v3698_v3 = vadd.f32 %v3634_v28, %v6996_v23  ;;  %v3697_v40 = vadd.f32 %v3633_v60, %v6998_v54  ;;  %v3339_v34 = vadd.f32 %v3338_v6, %v6177_v24  ;;  %v3392_v36 = vadd.f32 %v3391_v12, %v6177_v24  ;;  %v3395_v28 = vpop.f32.mrb[110].mxu1  ;;  %v3344_v60 = vpop.f32.mrb[115].mxu0  ;;  %v7005_v12 = vld [vmem:[#allocation21_spill] sm:$0xff] }
 0x738   :  { %v3699_v62 = vadd.f32 %v3635_v51, %v7000_v14  ;;  %3760 = vst [vmem:[%s6676_s17 + $0xa0] sm:$0xff] %v3696_v37  ;;  %v3039_v5 = vmax.f32 %v6289_v48, 0.0  ;;  %v3341_v43 = vadd.f32 %v3340_v38, %v6177_v24  ;;  %v3394_v53 = vadd.f32 %v3393_v0, %v6177_v24  ;;  %v3397_v51 = vpop.f32.mrb[111].mxu1  ;;  %v7007_v38 = vld [vmem:[#allocation22_spill] sm:$0xff]  ;;  %v7030_v47 = vld [vmem:[#allocation17_spill] sm:$0xff] }
 0x739   :  { %3762 = vst [vmem:[%s6676_s17 + $0xb0] sm:$0xff] %v3698_v3  ;;  %3761 = vst [vmem:[%s6676_s17 + $0xa8] sm:$0xff] %v3697_v40  ;;  %v3648_v26 = vmax.f32 %v3339_v34, 0.0  ;;  %v3650_v41 = vmax.f32 %v3392_v36, 0.0  ;;  %v3343_v46 = vadd.f32 %v3342_v17, %v6175_v52  ;;  %v3396_v13 = vadd.f32 %v3395_v28, %v6175_v52  ;;  %v7001_v3 = vld [vmem:[#allocation19_spill] sm:$0xff]  ;;  %v7003_v40 = vld [vmem:[#allocation20_spill] sm:$0xff] }
 0x73a   :  { %3763 = vst [vmem:[%s6676_s17 + $0xb8] sm:$0xff] %v3699_v62  ;;  %v3649_v31 = vmax.f32 %v3341_v43, 0.0  ;;  %v3651_v37 = vmax.f32 %v3394_v53, 0.0  ;;  %v3345_v27 = vadd.f32 %v3344_v60, %v6175_v52  ;;  %v3398_v23 = vadd.f32 %v3397_v51, %v6175_v52  ;;  %v7009_v28 = vld [vmem:[#allocation3_spill] sm:$0xff]  ;;  %v7010_v60 = vld [vmem:[#allocation4_spill] sm:$0xff]  ;;  %v7011_v51 = vld [vmem:[#allocation5_spill] sm:$0xff] }
 0x73b   :  { %v7002_v35 = vmax.f32 %v7001_v3, 0.0  ;;  %v7004_v39 = vmax.f32 %v7003_v40, 0.0  ;;  %v3664_v62 = vmax.f32 %v3343_v46, 0.0  ;;  %v3666_v6 = vmax.f32 %v3396_v13, 0.0 }
 0x73c   :  { %v7006_v34 = vmax.f32 %v7005_v12, 0.0  ;;  %v7008_v0 = vmax.f32 %v7007_v38, 0.0  ;;  %v3665_v43 = vmax.f32 %v3345_v27, 0.0  ;;  %v3667_v53 = vmax.f32 %v3398_v23, 0.0  ;;  %v7016_v23 = vld [vmem:[#allocation6_spill] sm:$0xff]  ;;  %v3487_v38 = vpop.f32.mrb[112].mxu1 }
 0x73d   :  { %v3712_v54 = vadd.f32 %v3648_v26, %v7002_v35  ;;  %v3714_v14 = vadd.f32 %v3650_v41, %v7004_v39  ;;  %v6373_v29 = vadd.f32 %v7010_v60, %v7009_v28  ;;  %v6377_v26 = vadd.f32 %v7011_v51, %v7009_v28  ;;  %v7012_v41 = vld [vmem:[#allocation27_spill] sm:$0xff]  ;;  %v7023_v60 = vld [vmem:[#allocation8_spill] sm:$0xff]  ;;  %v7024_v51 = vld [vmem:[#allocation9_spill] sm:$0xff] }
 0x73e   :  { %v3713_v36 = vadd.f32 %v3649_v31, %v7006_v34  ;;  %v3715_v17 = vadd.f32 %v3651_v37, %v7008_v0  ;;  %v7013_v46 = vmax.f32 %v7012_v41, 0.0  ;;  %v7014_v31 = vld [vmem:[#allocation25_spill] sm:$0xff]  ;;  %v6391_v3 = vadd.f32 %v7016_v23, %v7009_v28  ;;  %v7017_v35 = vld [vmem:[#allocation7_spill] sm:$0xff]  ;;  %v3434_v34 = vpop.f32.mrb[116].mxu0  ;;  %v7022_v0 = vld [vmem:[#allocation2_spill] sm:$0xff] }
 0x73f   :  { %3776 = vst [vmem:[%s6676_s17 + $0x120] sm:$0xff] %v3712_v54  ;;  %3778 = vst [vmem:[%s6676_s17 + $0x130] sm:$0xff] %v3714_v14  ;;  %v7015_v37 = vmax.f32 %v7014_v31, 0.0  ;;  %v6395_v40 = vadd.f32 %v7017_v35, %v7009_v28  ;;  %v7018_v54 = vld [vmem:[#allocation26_spill] sm:$0xff]  ;;  %v6409_v28 = vadd.f32 %v7023_v60, %v7022_v0  ;;  %v6413_v41 = vadd.f32 %v7024_v51, %v7022_v0 }
 0x740   :  { %v3728_v13 = vadd.f32 %v3664_v62, %v7013_v46  ;;  %3777 = vst [vmem:[%s6676_s17 + $0x128] sm:$0xff] %v3713_v36  ;;  %3779 = vst [vmem:[%s6676_s17 + $0x138] sm:$0xff] %v3715_v17  ;;  %v7019_v39 = vmax.f32 %v7018_v54, 0.0  ;;  %v7020_v62 = vld [vmem:[#allocation28_spill] sm:$0xff]  ;;  %v3435_v36 = vadd.f32 %v3434_v34, %v6121_v19  ;;  %v3488_v17 = vadd.f32 %v3487_v38, %v6121_v19  ;;  %v7025_v46 = vld [vmem:[#allocation10_spill] sm:$0xff] }
 0x741   :  { %v3730_v27 = vadd.f32 %v3666_v6, %v7015_v37  ;;  %v7021_v6 = vmax.f32 %v7020_v62, 0.0  ;;  %v6425_v31 = vadd.f32 %v7025_v46, %v7022_v0  ;;  %v7026_v37 = vld [vmem:[#allocation11_spill] sm:$0xff]  ;;  %v2995_v63 = vmax.f32 %v6391_v3, 0.0 }
 0x742   :  { %v3729_v14 = vadd.f32 %v3665_v43, %v7019_v39  ;;  %3792 = vst [vmem:[%s6676_s17 + $0x1a0] sm:$0xff] %v3728_v13  ;;  %v3436_v43 = vpop.f32.mrb[117].mxu0  ;;  %v6429_v23 = vadd.f32 %v7026_v37, %v7022_v0  ;;  %v3620_v39 = vmax.f32 %v3435_v36, 0.0  ;;  %v3622_v62 = vmax.f32 %v3488_v17, 0.0 }
 0x743   :  { %v3731_v12 = vadd.f32 %v3667_v53, %v7021_v6  ;;  %3794 = vst [vmem:[%s6676_s17 + $0x1b0] sm:$0xff] %v3730_v27  ;;  %v3489_v53 = vpop.f32.mrb[113].mxu1  ;;  %v3437_v13 = vadd.f32 %v3436_v43, %v6121_v19  ;;  %v3438_v35 = vpop.f32.mrb[118].mxu0  ;;  %v2997_v11 = vmax.f32 %v6395_v40, 0.0  ;;  %v7027_v49 = vmax.f32 %v6159_v10, 0.0 }
 0x744   :  { %3793 = vst [vmem:[%s6676_s17 + $0x1a8] sm:$0xff] %v3729_v14  ;;  %v3490_v27 = vadd.f32 %v3489_v53, %v6121_v19  ;;  %v3491_v54 = vpop.f32.mrb[114].mxu1  ;;  %v3439_v6 = vadd.f32 %v3438_v35, %v6119_v30  ;;  %v3440_v38 = vpop.f32.mrb[119].mxu0  ;;  %v3684_v43 = vadd.f32 %v3620_v39, %v2990_v32  ;;  %v3686_v53 = vadd.f32 %v3622_v62, %v2992_v45 }
 0x745   :  { %3795 = vst [vmem:[%s6676_s17 + $0x1b8] sm:$0xff] %v3731_v12  ;;  %v3492_v34 = vadd.f32 %v3491_v54, %v6119_v30  ;;  %v3493_v0 = vpop.f32.mrb[115].mxu1  ;;  %v3621_v60 = vmax.f32 %v3437_v13, 0.0  ;;  %v3441_v51 = vadd.f32 %v3440_v38, %v6119_v30  ;;  %v2994_v35 = vmax.f32 %v6373_v29, 0.0  ;;  %v3444_v42 = vpop.f32.mrb[120].mxu0 }
 0x746   :  { %v3623_v14 = vmax.f32 %v3490_v27, 0.0  ;;  %v3494_v12 = vadd.f32 %v3493_v0, %v6119_v30  ;;  %v3636_v36 = vmax.f32 %v3439_v6, 0.0  ;;  %v2996_v54 = vmax.f32 %v6377_v26, 0.0  ;;  %3748 = vst [vmem:[%s6676_s17 + $0x40] sm:$0xff] %v3684_v43  ;;  %3750 = vst [vmem:[%s6676_s17 + $0x50] sm:$0xff] %v3686_v53  ;;  %v3446_v10 = vpop.f32.mrb[121].mxu0 }
 0x747   :  { %v3638_v17 = vmax.f32 %v3492_v34, 0.0  ;;  %v3685_v46 = vadd.f32 %v3621_v60, %v2991_v57  ;;  %v3637_v13 = vmax.f32 %v3441_v51, 0.0  ;;  %v3497_v57 = vpop.f32.mrb[116].mxu1  ;;  %v3445_v9 = vadd.f32 %v3444_v42, %v6177_v24  ;;  %v3448_v38 = vpop.f32.mrb[122].mxu0 }
 0x748   :  { %v3687_v37 = vadd.f32 %v3623_v14, %v2993_v61  ;;  %v3639_v27 = vmax.f32 %v3494_v12, 0.0  ;;  %v3700_v4 = vadd.f32 %v3636_v36, %v3006_v18  ;;  %v3010_v61 = vmax.f32 %v6409_v28, 0.0  ;;  %v3450_v43 = vpop.f32.mrb[123].mxu0 }
 0x749   :  { %v3702_v33 = vadd.f32 %v3638_v17, %v3008_v59  ;;  %3749 = vst [vmem:[%s6676_s17 + $0x48] sm:$0xff] %v3685_v46  ;;  %v3701_v32 = vadd.f32 %v3637_v13, %v3007_v16  ;;  %v3012_v18 = vmax.f32 %v6413_v41, 0.0  ;;  %v3498_v59 = vadd.f32 %v3497_v57, %v6177_v24  ;;  %v3499_v16 = vpop.f32.mrb[117].mxu1  ;;  %v7028_v57 = vld [vmem:[#allocation12_spill] sm:$0xff] }
 0x74a   :  { %3751 = vst [vmem:[%s6676_s17 + $0x58] sm:$0xff] %v3687_v37  ;;  %v3703_v45 = vadd.f32 %v3639_v27, %v7027_v49  ;;  %3764 = vst [vmem:[%s6676_s17 + $0xc0] sm:$0xff] %v3700_v4  ;;  %v3011_v39 = vmax.f32 %v6425_v31, 0.0  ;;  %v3013_v62 = vmax.f32 %v6429_v23, 0.0  ;;  %v3447_v6 = vadd.f32 %v3446_v10, %v6177_v24  ;;  %v3501_v0 = vpop.f32.mrb[118].mxu1  ;;  %v7033_v10 = vld [vmem:[#allocation23_spill] sm:$0xff] }
 0x74b   :  { %3766 = vst [vmem:[%s6676_s17 + $0xd0] sm:$0xff] %v3702_v33  ;;  %3765 = vst [vmem:[%s6676_s17 + $0xc8] sm:$0xff] %v3701_v32  ;;  %v3500_v34 = vadd.f32 %v3499_v16, %v6177_v24  ;;  %v3652_v60 = vmax.f32 %v3445_v9, 0.0  ;;  %v3654_v14 = vmax.f32 %v3498_v59, 0.0  ;;  %v3449_v51 = vadd.f32 %v3448_v38, %v6175_v52  ;;  %v3503_v53 = vpop.f32.mrb[119].mxu1  ;;  %v7034_v16 = vld [vmem:[#allocation24_spill] sm:$0xff] }
 0x74c   :  { %3767 = vst [vmem:[%s6676_s17 + $0xd8] sm:$0xff] %v3703_v45  ;;  %v3502_v12 = vadd.f32 %v3501_v0, %v6175_v52  ;;  %v3653_v36 = vmax.f32 %v3447_v6, 0.0  ;;  %v3451_v46 = vadd.f32 %v3450_v43, %v6175_v52  ;;  %v3504_v37 = vadd.f32 %v3503_v53, %v6175_v52  ;;  %v3593_v59 = vpop.f32.mrb[120].mxu1  ;;  %v7035_v38 = vld [vmem:[#allocation31_spill] sm:$0xff] }
 0x74d   :  { %v3655_v17 = vmax.f32 %v3500_v34, 0.0  ;;  %v3716_v13 = vadd.f32 %v3652_v60, %v3022_v2  ;;  %v3718_v27 = vadd.f32 %v3654_v14, %v3024_v25  ;;  %v3668_v4 = vmax.f32 %v3449_v51, 0.0  ;;  %v3595_v34 = vpop.f32.mrb[121].mxu1  ;;  %v7036_v60 = vld [vmem:[#allocation29_spill] sm:$0xff] }
 0x74e   :  { %v3670_v33 = vmax.f32 %v3502_v12, 0.0  ;;  %v3717_v32 = vadd.f32 %v3653_v36, %v3023_v21  ;;  %v3669_v45 = vmax.f32 %v3451_v46, 0.0  ;;  %v3671_v42 = vmax.f32 %v3504_v37, 0.0  ;;  %v7031_v21 = vld [vmem:[#allocation18_spill] sm:$0xff]  ;;  %v3597_v53 = vpop.f32.mrb[122].mxu1 }
 0x74f   :  { %v3719_v49 = vadd.f32 %v3655_v17, %v3025_v55  ;;  %v6509_v9 = vadd.f32 %v7028_v57, %v5929_v44  ;;  %v6513_v2 = vadd.f32 %v7029_v58, %v5929_v44  ;;  %3780 = vst [vmem:[%s6676_s17 + $0x140] sm:$0xff] %v3716_v13  ;;  %3782 = vst [vmem:[%s6676_s17 + $0x150] sm:$0xff] %v3718_v27  ;;  %v7032_v20 = vmax.f32 %v6293_v56, 0.0  ;;  %v3599_v13 = vpop.f32.mrb[123].mxu1 }
 0x750   :  { %v3732_v7 = vadd.f32 %v3668_v4, %v3038_v15  ;;  %v3734_v50 = vadd.f32 %v3670_v33, %v3040_v1  ;;  %v6527_v25 = vadd.f32 %v7030_v47, %v5929_v44  ;;  %v6531_v55 = vadd.f32 %v7031_v21, %v5929_v44  ;;  %3781 = vst [vmem:[%s6676_s17 + $0x148] sm:$0xff] %v3717_v32  ;;  %v3540_v1 = vpop.f32.mrb[124].mxu0 }
 0x751   :  { %3783 = vst [vmem:[%s6676_s17 + $0x158] sm:$0xff] %v3719_v49  ;;  %v3733_v8 = vadd.f32 %v3669_v45, %v3039_v5  ;;  %v3735_v15 = vadd.f32 %v3671_v42, %v7032_v20  ;;  %v6545_v44 = vadd.f32 %v7033_v10, %v5927_v22  ;;  %v6549_v6 = vadd.f32 %v7034_v16, %v5927_v22  ;;  %v3542_v5 = vpop.f32.mrb[125].mxu0 }
 0x752   :  { %3796 = vst [vmem:[%s6676_s17 + $0x1c0] sm:$0xff] %v3732_v7  ;;  %3798 = vst [vmem:[%s6676_s17 + $0x1d0] sm:$0xff] %v3734_v50  ;;  %v3541_v48 = vadd.f32 %v3540_v1, %v6121_v19  ;;  %v3594_v56 = vadd.f32 %v3593_v59, %v6121_v19  ;;  %v6561_v0 = vadd.f32 %v7035_v38, %v5927_v22  ;;  %v3544_v43 = vpop.f32.mrb[126].mxu0  ;;  %v3026_v47 = vmax.f32 %v6509_v9, 0.0 }
 0x753   :  { %v6565_v14 = vadd.f32 %v7036_v60, %v5927_v22  ;;  %3797 = vst [vmem:[%s6676_s17 + $0x1c8] sm:$0xff] %v3733_v8  ;;  %3799 = vst [vmem:[%s6676_s17 + $0x1d8] sm:$0xff] %v3735_v15  ;;  %v3543_v51 = vadd.f32 %v3542_v5, %v6121_v19  ;;  %v3596_v12 = vadd.f32 %v3595_v34, %v6121_v19  ;;  %v3546_v37 = vpop.f32.mrb[127].mxu0  ;;  %v3027_v3 = vmax.f32 %v6527_v25, 0.0 }
 0x754   :  { %v3624_v36 = vmax.f32 %v3541_v48, 0.0  ;;  %v3626_v17 = vmax.f32 %v3594_v56, 0.0  ;;  %v3545_v46 = vadd.f32 %v3544_v43, %v6119_v30  ;;  %v3598_v22 = vadd.f32 %v3597_v53, %v6119_v30  ;;  %v3550_v41 = vpop.f32.mrb[128].mxu0 }
 0x755   :  { %v3625_v27 = vmax.f32 %v3543_v51, 0.0  ;;  %v3627_v4 = vmax.f32 %v3596_v12, 0.0  ;;  %v3547_v33 = vadd.f32 %v3546_v37, %v6119_v30  ;;  %v3600_v32 = vadd.f32 %v3599_v13, %v6119_v30  ;;  %v3552_v23 = vpop.f32.mrb[129].mxu0 }
 0x756   :  { %v3688_v49 = vadd.f32 %v3624_v36, %v2994_v35  ;;  %v3690_v19 = vadd.f32 %v3626_v17, %v2996_v54  ;;  %v3640_v45 = vmax.f32 %v3545_v46, 0.0  ;;  %v3642_v42 = vmax.f32 %v3598_v22, 0.0  ;;  %v3603_v54 = vpop.f32.mrb[124].mxu1  ;;  %v3554_v25 = vpop.f32.mrb[130].mxu0 }
 0x757   :  { %v3689_v57 = vadd.f32 %v3625_v27, %v2995_v63  ;;  %v3691_v58 = vadd.f32 %v3627_v4, %v2997_v11  ;;  %v3641_v7 = vmax.f32 %v3547_v33, 0.0  ;;  %v3643_v50 = vmax.f32 %v3600_v32, 0.0  ;;  %v3556_v1 = vpop.f32.mrb[131].mxu0 }
 0x758   :  { %v3028_v30 = vmax.f32 %v6513_v2, 0.0  ;;  %3752 = vst [vmem:[%s6676_s17 + $0x60] sm:$0xff] %v3688_v49  ;;  %3754 = vst [vmem:[%s6676_s17 + $0x70] sm:$0xff] %v3690_v19  ;;  %v3704_v29 = vadd.f32 %v3640_v45, %v3010_v61  ;;  %v3706_v26 = vadd.f32 %v3642_v42, %v3012_v18  ;;  %v3029_v40 = vmax.f32 %v6531_v55, 0.0  ;;  %v3605_v18 = vpop.f32.mrb[125].mxu1 }
 0x759   :  { %3753 = vst [vmem:[%s6676_s17 + $0x68] sm:$0xff] %v3689_v57  ;;  %3755 = vst [vmem:[%s6676_s17 + $0x78] sm:$0xff] %v3691_v58  ;;  %v3705_v35 = vadd.f32 %v3641_v7, %v3011_v39  ;;  %v3707_v28 = vadd.f32 %v3643_v50, %v3013_v62  ;;  %v3042_v63 = vmax.f32 %v6545_v44, 0.0  ;;  %v3044_v11 = vmax.f32 %v6549_v6, 0.0  ;;  %v3607_v21 = vpop.f32.mrb[126].mxu1 }
 0x75a   :  { %3768 = vst [vmem:[%s6676_s17 + $0xe0] sm:$0xff] %v3704_v29  ;;  %3770 = vst [vmem:[%s6676_s17 + $0xf0] sm:$0xff] %v3706_v26  ;;  %v3551_v31 = vadd.f32 %v3550_v41, %v6177_v24  ;;  %v3604_v61 = vadd.f32 %v3603_v54, %v6177_v24  ;;  %v3043_v39 = vmax.f32 %v6561_v0, 0.0  ;;  %v3045_v62 = vmax.f32 %v6565_v14, 0.0  ;;  %v3609_v59 = vpop.f32.mrb[127].mxu1 }
 0x75b   :  { %3769 = vst [vmem:[%s6676_s17 + $0xe8] sm:$0xff] %v3705_v35  ;;  %3771 = vst [vmem:[%s6676_s17 + $0xf8] sm:$0xff] %v3707_v28  ;;  %v3553_v9 = vadd.f32 %v3552_v23, %v6177_v24  ;;  %v3606_v2 = vadd.f32 %v3605_v18, %v6177_v24  ;;  %v3555_v20 = vadd.f32 %v3554_v25, %v6175_v52 }
 0x75c   :  { %v3656_v55 = vmax.f32 %v3551_v31, 0.0  ;;  %v3658_v8 = vmax.f32 %v3604_v61, 0.0  ;;  %v3608_v15 = vadd.f32 %v3607_v21, %v6175_v52  ;;  %v3557_v16 = vadd.f32 %v3556_v1, %v6175_v52 }
 0x75d   :  { %v3657_v10 = vmax.f32 %v3553_v9, 0.0  ;;  %v3659_v44 = vmax.f32 %v3606_v2, 0.0  ;;  %v3610_v6 = vadd.f32 %v3609_v59, %v6175_v52  ;;  %v3672_v5 = vmax.f32 %v3555_v20, 0.0 }
 0x75e   :  { %v3720_v48 = vadd.f32 %v3656_v55, %v3026_v47  ;;  %v3722_v56 = vadd.f32 %v3658_v8, %v3028_v30  ;;  %v3674_v24 = vmax.f32 %v3608_v15, 0.0  ;;  %v3673_v0 = vmax.f32 %v3557_v16, 0.0 }
 0x75f   :  { %v3721_v34 = vadd.f32 %v3657_v10, %v3027_v3  ;;  %v3723_v38 = vadd.f32 %v3659_v44, %v3029_v40  ;;  %v3675_v60 = vmax.f32 %v3610_v6, 0.0  ;;  %v3736_v14 = vadd.f32 %v3672_v5, %v3042_v63 }
 0x760   :  { %3784 = vst [vmem:[%s6676_s17 + $0x160] sm:$0xff] %v3720_v48  ;;  %3786 = vst [vmem:[%s6676_s17 + $0x170] sm:$0xff] %v3722_v56  ;;  %v3738_v51 = vadd.f32 %v3674_v24, %v3044_v11  ;;  %v3737_v52 = vadd.f32 %v3673_v0, %v3043_v39 }
 0x761   :  { %3785 = vst [vmem:[%s6676_s17 + $0x168] sm:$0xff] %v3721_v34  ;;  %3787 = vst [vmem:[%s6676_s17 + $0x178] sm:$0xff] %v3723_v38  ;;  %v3739_v12 = vadd.f32 %v3675_v60, %v3045_v62 }
 0x762   :  { %3800 = vst [vmem:[%s6676_s17 + $0x1e0] sm:$0xff] %v3736_v14  ;;  %3802 = vst [vmem:[%s6676_s17 + $0x1f0] sm:$0xff] %v3738_v51 }
 0x763   :  { %3801 = vst [vmem:[%s6676_s17 + $0x1e8] sm:$0xff] %v3737_v52  ;;  %3803 = vst [vmem:[%s6676_s17 + $0x1f8] sm:$0xff] %v3739_v12 }

</bundles_post_ra>
